<compile_context>
chip_gen: v7x
topology: tpu7x:2x2x1
jax: 0.10.0
libtpu: 0.0.40
codegen_flags: <defaults>
</compile_context>

<pallas_src>
import jax
import jax.numpy as jnp
from jax.experimental import pallas as pl
from jax.experimental.pallas import tpu as pltpu


def fire_kernel(x_ref, wsq_ref, bsq_ref, w1_ref, b1_ref, w3_ref, b3_ref,
                o_ref, spad_ref):
    """One grid step over Bt images (NHWC layout, channels on the lane dim).

    x_ref:    (Bt, H, W, Cin)      input activations (compute dtype)
    wsq_ref:  (Cin, Csq)           squeeze 1x1 weight (compute dtype)
    bsq_ref:  (1, Csq)             squeeze bias (f32)
    w1_ref:   (Csq, Ce1)           expand1x1 weight (compute dtype)
    b1_ref:   (1, Ce1)             expand1x1 bias (f32)
    w3_ref:   (9*Csq, Ce3)         expand3x3 weight, rows = tap*Csq + c (compute dtype)
    b3_ref:   (1, Ce3)             expand3x3 bias (f32)
    o_ref:    (Bt, H, W, Ce1+Ce3)  fused [expand1x1 | expand3x3] output
    spad_ref: (Bt, H+2, W+2, Csq)  zero-padded squeeze activations (compute dtype)
    """
    Bt, H, W, Cin = x_ref.shape
    Csq = wsq_ref.shape[1]
    Ce1 = w1_ref.shape[1]
    Ce3 = w3_ref.shape[1]
    M = Bt * H * W
    cdt = spad_ref.dtype

    # ---- squeeze: 1x1 conv + ReLU (one MXU matmul over all Bt*H*W pixels) ----
    x = x_ref[...].reshape(M, Cin)
    s = jnp.dot(x, wsq_ref[...], preferred_element_type=jnp.float32)
    s = jnp.maximum(s + bsq_ref[...], 0.0)          # bias + ReLU in f32

    # ---- zero-padded squeeze buffer (padding=1 for the 3x3 expand) ----
    # The 1-pixel ring is rewritten to zero every step (no cross-step state,
    # so this stays correct under megacore "parallel" grid sharding), and all
    # nine 3x3 tap reads below become identical full-size rectangles.
    spad_ref[:, 0:1, :, :] = jnp.zeros((Bt, 1, W + 2, Csq), cdt)
    spad_ref[:, H + 1:H + 2, :, :] = jnp.zeros((Bt, 1, W + 2, Csq), cdt)
    spad_ref[:, 1:H + 1, 0:1, :] = jnp.zeros((Bt, H, 1, Csq), cdt)
    spad_ref[:, 1:H + 1, W + 1:W + 2, :] = jnp.zeros((Bt, H, 1, Csq), cdt)
    spad_ref[:, 1:H + 1, 1:W + 1, :] = s.reshape(Bt, H, W, Csq).astype(cdt)

    # ---- expand3x3: 9 shifted-window K=Csq matmuls into one f32 accumulator
    # (no 9x im2col scratch, no masked per-tap border stores).  expand1x1 is
    # its own small GEMM from the centre window (no zero-padded weight cols).
    e1 = None
    acc3 = jnp.zeros((M, Ce3), jnp.float32)
    for dy in range(3):
        for dx in range(3):
            t = dy * 3 + dx
            win = spad_ref[:, dy:dy + H, dx:dx + W, :].reshape(M, Csq)
            acc3 = acc3 + jnp.dot(win, w3_ref[t * Csq:(t + 1) * Csq, :],
                                  preferred_element_type=jnp.float32)
            if t == 4:  # centre-tap window == ReLU(squeeze) itself
                e1 = jnp.dot(win, w1_ref[...],
                             preferred_element_type=jnp.float32)

    e1 = jnp.maximum(e1 + b1_ref[...], 0.0)          # bias + ReLU in f32
    e3 = jnp.maximum(acc3 + b3_ref[...], 0.0)

    # Single lane-dense store of the fused [expand1x1 | expand3x3] result
    # (== torch.cat along channels).
    out = jnp.concatenate([e1, e3], axis=-1).reshape(Bt, H, W, Ce1 + Ce3)
    o_ref[...] = out.astype(o_ref.dtype)


def _tpu_budgets():
    """Generation-aware VMEM sizing: (blocks+scratch budget, compiler vmem
    limit, minimum grid steps so every TensorCore gets work)."""
    budget = 8 << 20
    vmem_limit = 32 << 20
    min_steps = 1
    try:
        cap = pltpu.get_tpu_info().vmem_capacity_bytes
        budget = max(8 << 20, int(cap * 0.35))   # target for blocks + scratch
        vmem_limit = int(cap * 0.75)             # leave compiler headroom
    except Exception:
        pass
    try:
        kind = jax.devices()[0].device_kind.lower()
        if "v7" in kind:  # 2 TensorCores per chip share the "parallel" grid
            min_steps = 2
    except Exception:
        pass
    return budget, vmem_limit, min_steps


def _pick_batch_tile(N, per_image_bytes, budget_bytes, min_steps):
    """Largest divisor of N fitting the VMEM budget while keeping at least
    `min_steps` grid steps (only >1 on parts with multiple TensorCores)."""
    # TODO(synk): add an H-tiled (spatial) grid fallback when even one image
    # exceeds the budget (very large feature maps on v7x's 64 MiB VMEM).
    bt = 1
    for cand in range(1, N + 1):
        if N % cand:
            continue
        if cand * per_image_bytes > budget_bytes:
            continue
        if N >= min_steps and N // cand < min_steps:
            continue
        bt = cand
    return bt


def fire_forward(x_nchw, params, compute_dtype=jnp.bfloat16):
    """Fire forward pass. x_nchw: (N, Cin, H, W) -> (N, Ce1+Ce3, H, W)."""
    wsq, bsq, we1, be1, we3, be3 = params
    N, Cin, H, W = x_nchw.shape
    Csq = wsq.shape[1]
    Ce1 = we1.shape[1]
    Ce3 = we3.shape[3]
    Cout = Ce1 + Ce3
    out_dtype = x_nchw.dtype

    # GEMM-layout weights; expand3x3 rows ordered tap-major (t = dy*3 + dx).
    wsq_c = wsq.astype(compute_dtype)
    w1_c = we1.astype(compute_dtype)
    w3_c = we3.reshape(9 * Csq, Ce3).astype(compute_dtype)
    bsq_f = bsq.astype(jnp.float32)
    b1_f = be1.astype(jnp.float32)
    b3_f = be3.astype(jnp.float32)

    # NCHW -> NHWC; cast MXU operands to the compute dtype (bf16 by default).
    # TODO(synk): when chaining Fire modules, keep NHWC between modules so the
    # boundary transposes happen once per network, not once per module.
    x = jnp.transpose(x_nchw, (0, 2, 3, 1)).astype(compute_dtype)

    budget, vmem_limit, min_steps = _tpu_budgets()
    in_b = jnp.dtype(compute_dtype).itemsize
    out_b = jnp.dtype(out_dtype).itemsize
    per_image = (2 * H * W * Cin * in_b                # input block (double buffered)
                 + 2 * H * W * Cout * out_b            # output block (double buffered)
                 + (H + 2) * (W + 2) * Csq * in_b      # padded squeeze scratch
                 + H * W * (Csq + 2 * Cout) * 4)       # live f32 intermediates
    Bt = _pick_batch_tile(N, per_image, budget, min_steps)
    grid = (N // Bt,)

    out = pl.pallas_call(
        fire_kernel,
        out_shape=jax.ShapeDtypeStruct((N, H, W, Cout), out_dtype),
        grid_spec=pltpu.PrefetchScalarGridSpec(
            num_scalar_prefetch=0,
            grid=grid,
            in_specs=[
                pl.BlockSpec((Bt, H, W, Cin), lambda n: (n, 0, 0, 0)),
                pl.BlockSpec((Cin, Csq), lambda n: (0, 0)),
                pl.BlockSpec((1, Csq), lambda n: (0, 0)),
                pl.BlockSpec((Csq, Ce1), lambda n: (0, 0)),
                pl.BlockSpec((1, Ce1), lambda n: (0, 0)),
                pl.BlockSpec((9 * Csq, Ce3), lambda n: (0, 0)),
                pl.BlockSpec((1, Ce3), lambda n: (0, 0)),
            ],
            out_specs=pl.BlockSpec((Bt, H, W, Cout), lambda n: (n, 0, 0, 0)),
            scratch_shapes=[pltpu.VMEM((Bt, H + 2, W + 2, Csq), compute_dtype)],
        ),
        compiler_params=pltpu.CompilerParams(
            dimension_semantics=("parallel",),
            vmem_limit_bytes=vmem_limit),
    )(x, wsq_c, bsq_f, w1_c, b1_f, w3_c, b3_f)

    # NHWC -> NCHW for PyTorch parity.
    return jnp.transpose(out, (0, 3, 1, 2))


def fire_reference(x_nchw, params):
    """Pure-JAX reference (lax conv) for verification."""
    wsq, bsq, we1, be1, we3, be3 = params
    x = jnp.transpose(x_nchw, (0, 2, 3, 1))
    dn = ("NHWC", "HWIO", "NHWC")

    s = jax.lax.conv_general_dilated(
        x, wsq[None, None], (1, 1), "VALID", dimension_numbers=dn) + bsq[0]
    s = jnp.maximum(s, 0.0)

    e1 = jax.lax.conv_general_dilated(
        s, we1[None, None], (1, 1), "VALID", dimension_numbers=dn) + be1[0]
    e1 = jnp.maximum(e1, 0.0)

    e3 = jax.lax.conv_general_dilated(
        s, we3, (1, 1), "SAME", dimension_numbers=dn) + be3[0]
    e3 = jnp.maximum(e3, 0.0)

    out = jnp.concatenate([e1, e3], axis=-1)
    return jnp.transpose(out, (0, 3, 1, 2))


def init_fire_params(key, inplanes, squeeze_planes, expand1x1_planes,
                     expand3x3_planes, dtype=jnp.float32):
    """Deterministic synthetic params (uniform(-1/sqrt(fan_in), +...))."""
    ks = jax.random.split(key, 6)

    def u(k, shape, fan_in):
        b = 1.0 / jnp.sqrt(fan_in)
        return jax.random.uniform(k, shape, dtype, minval=-b, maxval=b)

    wsq = u(ks[0], (inplanes, squeeze_planes), inplanes)                # (Cin, Csq)
    bsq = u(ks[1], (1, squeeze_planes), inplanes)
    we1 = u(ks[2], (squeeze_planes, expand1x1_planes), squeeze_planes)  # (Csq, Ce1)
    be1 = u(ks[3], (1, expand1x1_planes), squeeze_planes)
    we3 = u(ks[4], (3, 3, squeeze_planes, expand3x3_planes),
            9 * squeeze_planes)                                         # HWIO
    be3 = u(ks[5], (1, expand3x3_planes), 9 * squeeze_planes)
    return (wsq, bsq, we1, be1, we3, be3)


if __name__ == "__main__":
    key = jax.random.PRNGKey(0)
    k_x, k_p = jax.random.split(key)

    N, Cin, H, W = 2, 4, 16, 16
    squeeze_planes, expand1x1_planes, expand3x3_planes = 8, 16, 16

    x = jax.random.normal(k_x, (N, Cin, H, W), jnp.float32)
    params = init_fire_params(k_p, Cin, squeeze_planes,
                              expand1x1_planes, expand3x3_planes)

    ref = jax.block_until_ready(fire_reference(x, params))

    # Exactness check: f32 MXU operands.
    out_f32 = jax.block_until_ready(
        fire_forward(x, params, compute_dtype=jnp.float32))
    assert out_f32.shape == (N, expand1x1_planes + expand3x3_planes, H, W)
    assert jnp.allclose(out_f32, ref, atol=2e-3, rtol=2e-3)

    # Performance path: bf16 MXU operands with f32 accumulation (looser tol).
    out_bf16 = jax.block_until_ready(
        fire_forward(x, params, compute_dtype=jnp.bfloat16))
    assert out_bf16.shape == (N, expand1x1_planes + expand3x3_planes, H, W)
    assert jnp.allclose(out_bf16, ref, atol=5e-2, rtol=5e-2)

    print("KERNEL_OK")
</pallas_src>

<mosaic_0001>
module attributes {stable_mosaic.version = 11 : i64} {
  func.func @fire_kernel(%arg0: i32, %arg1: memref<2x16x16x4xf32, #tpu.memory_space<vmem>>, %arg2: memref<4x8xf32, #tpu.memory_space<vmem>>, %arg3: memref<1x8xf32, #tpu.memory_space<vmem>>, %arg4: memref<8x16xf32, #tpu.memory_space<vmem>>, %arg5: memref<1x16xf32, #tpu.memory_space<vmem>>, %arg6: memref<72x16xf32, #tpu.memory_space<vmem>>, %arg7: memref<1x16xf32, #tpu.memory_space<vmem>>, %arg8: memref<2x16x16x32xf32, #tpu.memory_space<vmem>>, %arg9: memref<2x18x18x8xf32, #tpu.memory_space<vmem>>) attributes {dimension_semantics = [#tpu.dimension_semantics<parallel>], iteration_bounds = array<i64: 1>, scalar_prefetch = 0 : i64, scratch_operands = 1 : i64, tpu.core_type = #tpu.core_type<tc>, window_params = [{transform_indices = @transform_0, window_bounds = array<i64: 2, 16, 16, 4>}, {pipeline_mode = #tpu.pipeline_mode<synchronous>, transform_indices = @transform_1, window_bounds = array<i64: 4, 8>}, {pipeline_mode = #tpu.pipeline_mode<synchronous>, transform_indices = @transform_2, window_bounds = array<i64: 1, 8>}, {pipeline_mode = #tpu.pipeline_mode<synchronous>, transform_indices = @transform_3, window_bounds = array<i64: 8, 16>}, {pipeline_mode = #tpu.pipeline_mode<synchronous>, transform_indices = @transform_4, window_bounds = array<i64: 1, 16>}, {pipeline_mode = #tpu.pipeline_mode<synchronous>, transform_indices = @transform_5, window_bounds = array<i64: 72, 16>}, {pipeline_mode = #tpu.pipeline_mode<synchronous>, transform_indices = @transform_6, window_bounds = array<i64: 1, 16>}, {transform_indices = @transform_7, window_bounds = array<i64: 2, 16, 16, 32>}]} {
    %c0 = arith.constant 0 : index
    %c0_0 = arith.constant 0 : index
    %c0_1 = arith.constant 0 : index
    %c0_2 = arith.constant 0 : index
    %0 = vector.load %arg1[%c0, %c0_0, %c0_1, %c0_2] : memref<2x16x16x4xf32, #tpu.memory_space<vmem>>, vector<2x16x16x4xf32>
    %1 = vector.shape_cast %0 : vector<2x16x16x4xf32> to vector<512x4xf32>
    %c0_3 = arith.constant 0 : index
    %c0_4 = arith.constant 0 : index
    %2 = vector.load %arg2[%c0_3, %c0_4] : memref<4x8xf32, #tpu.memory_space<vmem>>, vector<4x8xf32>
    %cst = arith.constant dense<0.000000e+00> : vector<512x8xf32>
    %3 = tpu.matmul %1, %2, %cst {dimension_numbers = #tpu.dot_dimension_numbers<[1], [0], [0], [1], [0, 0, 1, 1], [], []>} : vector<512x4xf32>, vector<4x8xf32>, vector<512x8xf32> -> vector<512x8xf32>
    %c0_5 = arith.constant 0 : index
    %c0_6 = arith.constant 0 : index
    %4 = vector.load %arg3[%c0_5, %c0_6] : memref<1x8xf32, #tpu.memory_space<vmem>>, vector<1x8xf32>
    %5 = vector.broadcast %4 : vector<1x8xf32> to vector<512x8xf32>
    %6 = arith.addf %3, %5 : vector<512x8xf32>
    %cst_7 = arith.constant 0.000000e+00 : f32
    %7 = vector.broadcast %cst_7 : f32 to vector<512x8xf32>
    %8 = arith.maximumf %6, %7 : vector<512x8xf32>
    %cst_8 = arith.constant 0.000000e+00 : f32
    %9 = vector.broadcast %cst_8 : f32 to vector<2x1x18x8xf32>
    %c0_9 = arith.constant 0 : index
    %c0_10 = arith.constant 0 : index
    %c0_11 = arith.constant 0 : index
    %c0_12 = arith.constant 0 : index
    %10 = vector.load %arg9[%c0_9, %c0_10, %c0_11, %c0_12] : memref<2x18x18x8xf32, #tpu.memory_space<vmem>>, vector<2x1x18x8xf32>
    tpu.vector_store %arg9[%c0_9, %c0_10, %c0_11, %c0_12], %9 {strides = array<i32>} : memref<2x18x18x8xf32, #tpu.memory_space<vmem>>, vector<2x1x18x8xf32>,
    %cst_13 = arith.constant 0.000000e+00 : f32
    %11 = vector.broadcast %cst_13 : f32 to vector<2x1x18x8xf32>
    %c0_14 = arith.constant 0 : index
    %c17 = arith.constant 17 : index
    %c0_15 = arith.constant 0 : index
    %c0_16 = arith.constant 0 : index
    %12 = vector.load %arg9[%c0_14, %c17, %c0_15, %c0_16] : memref<2x18x18x8xf32, #tpu.memory_space<vmem>>, vector<2x1x18x8xf32>
    tpu.vector_store %arg9[%c0_14, %c17, %c0_15, %c0_16], %11 {strides = array<i32>} : memref<2x18x18x8xf32, #tpu.memory_space<vmem>>, vector<2x1x18x8xf32>,
    %cst_17 = arith.constant 0.000000e+00 : f32
    %13 = vector.broadcast %cst_17 : f32 to vector<2x16x1x8xf32>
    %c0_18 = arith.constant 0 : index
    %c1 = arith.constant 1 : index
    %c0_19 = arith.constant 0 : index
    %c0_20 = arith.constant 0 : index
    %14 = vector.load %arg9[%c0_18, %c1, %c0_19, %c0_20] : memref<2x18x18x8xf32, #tpu.memory_space<vmem>>, vector<2x16x1x8xf32>
    tpu.vector_store %arg9[%c0_18, %c1, %c0_19, %c0_20], %13 {strides = array<i32>} : memref<2x18x18x8xf32, #tpu.memory_space<vmem>>, vector<2x16x1x8xf32>,
    %cst_21 = arith.constant 0.000000e+00 : f32
    %15 = vector.broadcast %cst_21 : f32 to vector<2x16x1x8xf32>
    %c0_22 = arith.constant 0 : index
    %c1_23 = arith.constant 1 : index
    %c17_24 = arith.constant 17 : index
    %c0_25 = arith.constant 0 : index
    %16 = vector.load %arg9[%c0_22, %c1_23, %c17_24, %c0_25] : memref<2x18x18x8xf32, #tpu.memory_space<vmem>>, vector<2x16x1x8xf32>
    tpu.vector_store %arg9[%c0_22, %c1_23, %c17_24, %c0_25], %15 {strides = array<i32>} : memref<2x18x18x8xf32, #tpu.memory_space<vmem>>, vector<2x16x1x8xf32>,
    %17 = vector.shape_cast %8 : vector<512x8xf32> to vector<2x16x16x8xf32>
    %c0_26 = arith.constant 0 : index
    %c1_27 = arith.constant 1 : index
    %c1_28 = arith.constant 1 : index
    %c0_29 = arith.constant 0 : index
    %18 = vector.load %arg9[%c0_26, %c1_27, %c1_28, %c0_29] : memref<2x18x18x8xf32, #tpu.memory_space<vmem>>, vector<2x16x16x8xf32>
    tpu.vector_store %arg9[%c0_26, %c1_27, %c1_28, %c0_29], %17 {strides = array<i32>} : memref<2x18x18x8xf32, #tpu.memory_space<vmem>>, vector<2x16x16x8xf32>,
    %cst_30 = arith.constant 0.000000e+00 : f32
    %19 = vector.broadcast %cst_30 : f32 to vector<512x16xf32>
    %c0_31 = arith.constant 0 : index
    %c0_32 = arith.constant 0 : index
    %c0_33 = arith.constant 0 : index
    %c0_34 = arith.constant 0 : index
    %20 = vector.load %arg9[%c0_31, %c0_32, %c0_33, %c0_34] : memref<2x18x18x8xf32, #tpu.memory_space<vmem>>, vector<2x16x16x8xf32>
    %21 = vector.shape_cast %20 : vector<2x16x16x8xf32> to vector<512x8xf32>
    %c0_35 = arith.constant 0 : index
    %c0_36 = arith.constant 0 : index
    %22 = vector.load %arg6[%c0_35, %c0_36] : memref<72x16xf32, #tpu.memory_space<vmem>>, vector<8x16xf32>
    %cst_37 = arith.constant dense<0.000000e+00> : vector<512x16xf32>
    %23 = tpu.matmul %21, %22, %cst_37 {dimension_numbers = #tpu.dot_dimension_numbers<[1], [0], [0], [1], [0, 0, 1, 1], [], []>} : vector<512x8xf32>, vector<8x16xf32>, vector<512x16xf32> -> vector<512x16xf32>
    %24 = arith.addf %19, %23 : vector<512x16xf32>
    %c0_38 = arith.constant 0 : index
    %c0_39 = arith.constant 0 : index
    %c1_40 = arith.constant 1 : index
    %c0_41 = arith.constant 0 : index
    %25 = vector.load %arg9[%c0_38, %c0_39, %c1_40, %c0_41] : memref<2x18x18x8xf32, #tpu.memory_space<vmem>>, vector<2x16x16x8xf32>
    %26 = vector.shape_cast %25 : vector<2x16x16x8xf32> to vector<512x8xf32>
    %c8 = arith.constant 8 : index
    %c0_42 = arith.constant 0 : index
    %27 = vector.load %arg6[%c8, %c0_42] : memref<72x16xf32, #tpu.memory_space<vmem>>, vector<8x16xf32>
    %cst_43 = arith.constant dense<0.000000e+00> : vector<512x16xf32>
    %28 = tpu.matmul %26, %27, %cst_43 {dimension_numbers = #tpu.dot_dimension_numbers<[1], [0], [0], [1], [0, 0, 1, 1], [], []>} : vector<512x8xf32>, vector<8x16xf32>, vector<512x16xf32> -> vector<512x16xf32>
    %29 = arith.addf %24, %28 : vector<512x16xf32>
    %c0_44 = arith.constant 0 : index
    %c0_45 = arith.constant 0 : index
    %c2 = arith.constant 2 : index
    %c0_46 = arith.constant 0 : index
    %30 = vector.load %arg9[%c0_44, %c0_45, %c2, %c0_46] : memref<2x18x18x8xf32, #tpu.memory_space<vmem>>, vector<2x16x16x8xf32>
    %31 = vector.shape_cast %30 : vector<2x16x16x8xf32> to vector<512x8xf32>
    %c16 = arith.constant 16 : index
    %c0_47 = arith.constant 0 : index
    %32 = vector.load %arg6[%c16, %c0_47] : memref<72x16xf32, #tpu.memory_space<vmem>>, vector<8x16xf32>
    %cst_48 = arith.constant dense<0.000000e+00> : vector<512x16xf32>
    %33 = tpu.matmul %31, %32, %cst_48 {dimension_numbers = #tpu.dot_dimension_numbers<[1], [0], [0], [1], [0, 0, 1, 1], [], []>} : vector<512x8xf32>, vector<8x16xf32>, vector<512x16xf32> -> vector<512x16xf32>
    %34 = arith.addf %29, %33 : vector<512x16xf32>
    %c0_49 = arith.constant 0 : index
    %c1_50 = arith.constant 1 : index
    %c0_51 = arith.constant 0 : index
    %c0_52 = arith.constant 0 : index
    %35 = vector.load %arg9[%c0_49, %c1_50, %c0_51, %c0_52] : memref<2x18x18x8xf32, #tpu.memory_space<vmem>>, vector<2x16x16x8xf32>
    %36 = vector.shape_cast %35 : vector<2x16x16x8xf32> to vector<512x8xf32>
    %c24 = arith.constant 24 : index
    %c0_53 = arith.constant 0 : index
    %37 = vector.load %arg6[%c24, %c0_53] : memref<72x16xf32, #tpu.memory_space<vmem>>, vector<8x16xf32>
    %cst_54 = arith.constant dense<0.000000e+00> : vector<512x16xf32>
    %38 = tpu.matmul %36, %37, %cst_54 {dimension_numbers = #tpu.dot_dimension_numbers<[1], [0], [0], [1], [0, 0, 1, 1], [], []>} : vector<512x8xf32>, vector<8x16xf32>, vector<512x16xf32> -> vector<512x16xf32>
    %39 = arith.addf %34, %38 : vector<512x16xf32>
    %c0_55 = arith.constant 0 : index
    %c1_56 = arith.constant 1 : index
    %c1_57 = arith.constant 1 : index
    %c0_58 = arith.constant 0 : index
    %40 = vector.load %arg9[%c0_55, %c1_56, %c1_57, %c0_58] : memref<2x18x18x8xf32, #tpu.memory_space<vmem>>, vector<2x16x16x8xf32>
    %41 = vector.shape_cast %40 : vector<2x16x16x8xf32> to vector<512x8xf32>
    %c32 = arith.constant 32 : index
    %c0_59 = arith.constant 0 : index
    %42 = vector.load %arg6[%c32, %c0_59] : memref<72x16xf32, #tpu.memory_space<vmem>>, vector<8x16xf32>
    %cst_60 = arith.constant dense<0.000000e+00> : vector<512x16xf32>
    %43 = tpu.matmul %41, %42, %cst_60 {dimension_numbers = #tpu.dot_dimension_numbers<[1], [0], [0], [1], [0, 0, 1, 1], [], []>} : vector<512x8xf32>, vector<8x16xf32>, vector<512x16xf32> -> vector<512x16xf32>
    %44 = arith.addf %39, %43 : vector<512x16xf32>
    %c0_61 = arith.constant 0 : index
    %c0_62 = arith.constant 0 : index
    %45 = vector.load %arg4[%c0_61, %c0_62] : memref<8x16xf32, #tpu.memory_space<vmem>>, vector<8x16xf32>
    %cst_63 = arith.constant dense<0.000000e+00> : vector<512x16xf32>
    %46 = tpu.matmul %41, %45, %cst_63 {dimension_numbers = #tpu.dot_dimension_numbers<[1], [0], [0], [1], [0, 0, 1, 1], [], []>} : vector<512x8xf32>, vector<8x16xf32>, vector<512x16xf32> -> vector<512x16xf32>
    %c0_64 = arith.constant 0 : index
    %c1_65 = arith.constant 1 : index
    %c2_66 = arith.constant 2 : index
    %c0_67 = arith.constant 0 : index
    %47 = vector.load %arg9[%c0_64, %c1_65, %c2_66, %c0_67] : memref<2x18x18x8xf32, #tpu.memory_space<vmem>>, vector<2x16x16x8xf32>
    %48 = vector.shape_cast %47 : vector<2x16x16x8xf32> to vector<512x8xf32>
    %c40 = arith.constant 40 : index
    %c0_68 = arith.constant 0 : index
    %49 = vector.load %arg6[%c40, %c0_68] : memref<72x16xf32, #tpu.memory_space<vmem>>, vector<8x16xf32>
    %cst_69 = arith.constant dense<0.000000e+00> : vector<512x16xf32>
    %50 = tpu.matmul %48, %49, %cst_69 {dimension_numbers = #tpu.dot_dimension_numbers<[1], [0], [0], [1], [0, 0, 1, 1], [], []>} : vector<512x8xf32>, vector<8x16xf32>, vector<512x16xf32> -> vector<512x16xf32>
    %51 = arith.addf %44, %50 : vector<512x16xf32>
    %c0_70 = arith.constant 0 : index
    %c2_71 = arith.constant 2 : index
    %c0_72 = arith.constant 0 : index
    %c0_73 = arith.constant 0 : index
    %52 = vector.load %arg9[%c0_70, %c2_71, %c0_72, %c0_73] : memref<2x18x18x8xf32, #tpu.memory_space<vmem>>, vector<2x16x16x8xf32>
    %53 = vector.shape_cast %52 : vector<2x16x16x8xf32> to vector<512x8xf32>
    %c48 = arith.constant 48 : index
    %c0_74 = arith.constant 0 : index
    %54 = vector.load %arg6[%c48, %c0_74] : memref<72x16xf32, #tpu.memory_space<vmem>>, vector<8x16xf32>
    %cst_75 = arith.constant dense<0.000000e+00> : vector<512x16xf32>
    %55 = tpu.matmul %53, %54, %cst_75 {dimension_numbers = #tpu.dot_dimension_numbers<[1], [0], [0], [1], [0, 0, 1, 1], [], []>} : vector<512x8xf32>, vector<8x16xf32>, vector<512x16xf32> -> vector<512x16xf32>
    %56 = arith.addf %51, %55 : vector<512x16xf32>
    %c0_76 = arith.constant 0 : index
    %c2_77 = arith.constant 2 : index
    %c1_78 = arith.constant 1 : index
    %c0_79 = arith.constant 0 : index
    %57 = vector.load %arg9[%c0_76, %c2_77, %c1_78, %c0_79] : memref<2x18x18x8xf32, #tpu.memory_space<vmem>>, vector<2x16x16x8xf32>
    %58 = vector.shape_cast %57 : vector<2x16x16x8xf32> to vector<512x8xf32>
    %c56 = arith.constant 56 : index
    %c0_80 = arith.constant 0 : index
    %59 = vector.load %arg6[%c56, %c0_80] : memref<72x16xf32, #tpu.memory_space<vmem>>, vector<8x16xf32>
    %cst_81 = arith.constant dense<0.000000e+00> : vector<512x16xf32>
    %60 = tpu.matmul %58, %59, %cst_81 {dimension_numbers = #tpu.dot_dimension_numbers<[1], [0], [0], [1], [0, 0, 1, 1], [], []>} : vector<512x8xf32>, vector<8x16xf32>, vector<512x16xf32> -> vector<512x16xf32>
    %61 = arith.addf %56, %60 : vector<512x16xf32>
    %c0_82 = arith.constant 0 : index
    %c2_83 = arith.constant 2 : index
    %c2_84 = arith.constant 2 : index
    %c0_85 = arith.constant 0 : index
    %62 = vector.load %arg9[%c0_82, %c2_83, %c2_84, %c0_85] : memref<2x18x18x8xf32, #tpu.memory_space<vmem>>, vector<2x16x16x8xf32>
    %63 = vector.shape_cast %62 : vector<2x16x16x8xf32> to vector<512x8xf32>
    %c64 = arith.constant 64 : index
    %c0_86 = arith.constant 0 : index
    %64 = vector.load %arg6[%c64, %c0_86] : memref<72x16xf32, #tpu.memory_space<vmem>>, vector<8x16xf32>
    %cst_87 = arith.constant dense<0.000000e+00> : vector<512x16xf32>
    %65 = tpu.matmul %63, %64, %cst_87 {dimension_numbers = #tpu.dot_dimension_numbers<[1], [0], [0], [1], [0, 0, 1, 1], [], []>} : vector<512x8xf32>, vector<8x16xf32>, vector<512x16xf32> -> vector<512x16xf32>
    %66 = arith.addf %61, %65 : vector<512x16xf32>
    %c0_88 = arith.constant 0 : index
    %c0_89 = arith.constant 0 : index
    %67 = vector.load %arg5[%c0_88, %c0_89] : memref<1x16xf32, #tpu.memory_space<vmem>>, vector<1x16xf32>
    %68 = vector.broadcast %67 : vector<1x16xf32> to vector<512x16xf32>
    %69 = arith.addf %46, %68 : vector<512x16xf32>
    %cst_90 = arith.constant 0.000000e+00 : f32
    %70 = vector.broadcast %cst_90 : f32 to vector<512x16xf32>
    %71 = arith.maximumf %69, %70 : vector<512x16xf32>
    %c0_91 = arith.constant 0 : index
    %c0_92 = arith.constant 0 : index
    %72 = vector.load %arg7[%c0_91, %c0_92] : memref<1x16xf32, #tpu.memory_space<vmem>>, vector<1x16xf32>
    %73 = vector.broadcast %72 : vector<1x16xf32> to vector<512x16xf32>
    %74 = arith.addf %66, %73 : vector<512x16xf32>
    %cst_93 = arith.constant 0.000000e+00 : f32
    %75 = vector.broadcast %cst_93 : f32 to vector<512x16xf32>
    %76 = arith.maximumf %74, %75 : vector<512x16xf32>
    %77 = tpu.concatenate %71, %76 in 1 : vector<512x16xf32>, vector<512x16xf32> -> vector<512x32xf32>
    %78 = vector.shape_cast %77 : vector<512x32xf32> to vector<2x16x16x32xf32>
    %c0_94 = arith.constant 0 : index
    %c0_95 = arith.constant 0 : index
    %c0_96 = arith.constant 0 : index
    %c0_97 = arith.constant 0 : index
    %79 = vector.load %arg8[%c0_94, %c0_95, %c0_96, %c0_97] : memref<2x16x16x32xf32, #tpu.memory_space<vmem>>, vector<2x16x16x32xf32>
    tpu.vector_store %arg8[%c0_94, %c0_95, %c0_96, %c0_97], %78 {strides = array<i32>} : memref<2x16x16x32xf32, #tpu.memory_space<vmem>>, vector<2x16x16x32xf32>,
    return
  }
  func.func @transform_0(%arg0: i32) -> (i32, i32, i32, i32) {
    %c0_i32 = arith.constant 0 : i32
    %c0_i32_0 = arith.constant 0 : i32
    %c0_i32_1 = arith.constant 0 : i32
    %c0_i32_2 = arith.constant 0 : i32
    return %arg0, %c0_i32, %c0_i32_0, %c0_i32_1 : i32, i32, i32, i32
  }
  func.func @transform_1(%arg0: i32) -> (i32, i32) {
    %c0_i32 = arith.constant 0 : i32
    %c0_i32_0 = arith.constant 0 : i32
    %c0_i32_1 = arith.constant 0 : i32
    return %c0_i32, %c0_i32_0 : i32, i32
  }
  func.func @transform_2(%arg0: i32) -> (i32, i32) {
    %c0_i32 = arith.constant 0 : i32
    %c0_i32_0 = arith.constant 0 : i32
    %c0_i32_1 = arith.constant 0 : i32
    return %c0_i32, %c0_i32_0 : i32, i32
  }
  func.func @transform_3(%arg0: i32) -> (i32, i32) {
    %c0_i32 = arith.constant 0 : i32
    %c0_i32_0 = arith.constant 0 : i32
    %c0_i32_1 = arith.constant 0 : i32
    return %c0_i32, %c0_i32_0 : i32, i32
  }
  func.func @transform_4(%arg0: i32) -> (i32, i32) {
    %c0_i32 = arith.constant 0 : i32
    %c0_i32_0 = arith.constant 0 : i32
    %c0_i32_1 = arith.constant 0 : i32
    return %c0_i32, %c0_i32_0 : i32, i32
  }
  func.func @transform_5(%arg0: i32) -> (i32, i32) {
    %c0_i32 = arith.constant 0 : i32
    %c0_i32_0 = arith.constant 0 : i32
    %c0_i32_1 = arith.constant 0 : i32
    return %c0_i32, %c0_i32_0 : i32, i32
  }
  func.func @transform_6(%arg0: i32) -> (i32, i32) {
    %c0_i32 = arith.constant 0 : i32
    %c0_i32_0 = arith.constant 0 : i32
    %c0_i32_1 = arith.constant 0 : i32
    return %c0_i32, %c0_i32_0 : i32, i32
  }
  func.func @transform_7(%arg0: i32) -> (i32, i32, i32, i32) {
    %c0_i32 = arith.constant 0 : i32
    %c0_i32_0 = arith.constant 0 : i32
    %c0_i32_1 = arith.constant 0 : i32
    %c0_i32_2 = arith.constant 0 : i32
    return %arg0, %c0_i32, %c0_i32_0, %c0_i32_1 : i32, i32, i32, i32
  }
}

</mosaic_0001>

<bundles_post_ra>
// kernel: tpu_custom_call.1
= control target key start
LH: loop header
LB: loop body
LE: loop exit
PB: predicated region body
PF: predicated region fallthrough
CT: control target
= control target key end

     0   :  { %vm292_vm0 = vcmask 1043456   ;;  %vm99_vm1 = vcmask 31744   ;;  %s13606_s0 = inlined_call_operand.vmem [shape: f32[2,16,16,4], index: 0, kind: input, shape index: {}]   ;;  %s13607_s1 = inlined_call_operand.vmem [shape: f32[4,8], index: 1, kind: input, shape index: {}]   ;;  %s13608_s2 = inlined_call_operand.vmem [shape: f32[1,8], index: 2, kind: input, shape index: {}]   ;;  %s13609_s3 = inlined_call_operand.vmem [shape: f32[8,16], index: 3, kind: input, shape index: {}]   ;;  %s13610_s4 = inlined_call_operand.vmem [shape: f32[1,16], index: 4, kind: input, shape index: {}]   ;;  %s13611_s5 = inlined_call_operand.vmem [shape: f32[72,16], index: 5, kind: input, shape index: {}]   ;;  %s13612_s6 = inlined_call_operand.vmem [shape: f32[1,16], index: 6, kind: input, shape index: {}]   ;;  %s13613_s7 = inlined_call_operand.hbm [shape: f32[2,16,16,32], index: 7, kind: output, shape index: {}]  }
   0x1   :  { %v91_v0 = vld [vmem:[%s13607_s1] sm:$0xf]  ;;  %v28_v2 = vld [vmem:[%s13606_s0 + $0x8] sm:$0xff]  ;;  %v29_v3 = vld [vmem:[%s13606_s0 + $0x10] sm:$0xff] }
   0x2   :  { %v27_v1 = vld [vmem:[%s13606_s0] sm:$0xff]  ;;  %9534 = vmatprep.subr.msk.mxu0 %vm292_vm0, %v91_v0  ;;  %v30_v4 = vld [vmem:[%s13606_s0 + $0x18] sm:$0xff]  ;;  %v32_v6 = vld [vmem:[%s13606_s0 + $0x28] sm:$0xff] }
   0x3   :  { %9536 = vmatprep.mubr.msk.f32.mxu0 %vm99_vm1, %v27_v1  ;;  %9535 = vmatpush3.msk.msra.mxu0 %vm292_vm0, %v91_v0  ;;  %v31_v5 = vld [vmem:[%s13606_s0 + $0x20] sm:$0xff]  ;;  %v33_v7 = vld [vmem:[%s13606_s0 + $0x30] sm:$0xff]  ;;  %v34_v8 = vld [vmem:[%s13606_s0 + $0x38] sm:$0xff] }
   0x4   :  { %9537 = vmatmul.mubr.msk.f32.vlgmr.msra.gmra.mrb[0].mxu0 %vm99_vm1, %v28_v2  ;;  %v35_v9 = vld [vmem:[%s13606_s0 + $0x40] sm:$0xff]  ;;  %v36_v10 = vld [vmem:[%s13606_s0 + $0x48] sm:$0xff]  ;;  %v37_v11 = vld [vmem:[%s13606_s0 + $0x50] sm:$0xff] }
   0x5   :  { %9539 = vmatprep.mubr.msk.f32.mxu0 %vm99_vm1, %v29_v3  ;;  %v38_v12 = vld [vmem:[%s13606_s0 + $0x58] sm:$0xff]  ;;  %v39_v13 = vld [vmem:[%s13606_s0 + $0x60] sm:$0xff] }
   0x8   :  { %9540 = vmatmul.mubr.msk.f32.gmra.mrb[2].mxu0 %vm99_vm1, %v30_v4 }
   0x9   :  { %9542 = vmatprep.mubr.msk.f32.mxu0 %vm99_vm1, %v31_v5 }
   0xc   :  { %9543 = vmatmul.mubr.msk.f32.gmra.mrb[4].mxu0 %vm99_vm1, %v32_v6 }
   0xd   :  { %9545 = vmatprep.mubr.msk.f32.mxu0 %vm99_vm1, %v33_v7 }
  0x10   :  { %9546 = vmatmul.mubr.msk.f32.gmra.mrb[6].mxu0 %vm99_vm1, %v34_v8 }
  0x11   :  { %9548 = vmatprep.mubr.msk.f32.mxu0 %vm99_vm1, %v35_v9 }
  0x14   :  { %9549 = vmatmul.mubr.msk.f32.gmra.mrb[8].mxu0 %vm99_vm1, %v36_v10 }
  0x15   :  { %9551 = vmatprep.mubr.msk.f32.mxu0 %vm99_vm1, %v37_v11 }
  0x16   :  { %12 = vsyncpa [#allocation4], 0  ;;  %v40_v14 = vld [vmem:[%s13606_s0 + $0x68] sm:$0xff]  ;;  %v41_v15 = vld [vmem:[%s13606_s0 + $0x70] sm:$0xff]  ;;  %vm745_vm2 = vcmask 64512   ;;  %v11218_v47 = vmov 0.0  }
  0x17   :  { %v42_v16 = vld [vmem:[%s13606_s0 + $0x78] sm:$0xff]  ;;  %v43_v17 = vld [vmem:[%s13606_s0 + $0x80] sm:$0xff]  ;;  %v44_v18 = vld [vmem:[%s13606_s0 + $0x88] sm:$0xff]  ;;  %746 = vst.msk [vmem:[#allocation2] sm:$0xff] %vm745_vm2, %v11218_v47  ;;  %vm748_vm3 = vcmask 58368   ;;  %vm761_vm4 = vcmask 57344  }
  0x18   :  { %9552 = vmatmul.mubr.msk.f32.gmra.mrb[10].mxu0 %vm99_vm1, %v38_v12  ;;  %v45_v19 = vld [vmem:[%s13606_s0 + $0x90] sm:$0xff]  ;;  %v46_v20 = vld [vmem:[%s13606_s0 + $0x98] sm:$0xff]  ;;  %v47_v21 = vld [vmem:[%s13606_s0 + $0xa0] sm:$0xff]  ;;  %747 = vst.msk [vmem:[#allocation2 + $0x8] sm:$0xff] %vm745_vm2, %v11218_v47  ;;  %s11219_s1 = smov 16   ;;  %vm7965_vm5 = vcmask 130048  }
  0x19   :  { %9554 = vmatprep.mubr.msk.f32.mxu0 %vm99_vm1, %v39_v13  ;;  %v48_v22 = vld [vmem:[%s13606_s0 + $0xa8] sm:$0xff]  ;;  %v49_v23 = vld [vmem:[%s13606_s0 + $0xb0] sm:$0xff]  ;;  %v50_v24 = vld [vmem:[%s13606_s0 + $0xb8] sm:$0xff]  ;;  %750 = vst.msk [vmem:[#allocation2 + $0x1b0] sm:$0xff] %vm745_vm2, %v11218_v47  ;;  %vm8030_vm6 = vcmask 261120  }
  0x1a   :  { %v51_v25 = vld [vmem:[%s13606_s0 + $0xc0] sm:$0xff]  ;;  %v52_v26 = vld [vmem:[%s13606_s0 + $0xc8] sm:$0xff]  ;;  %v53_v27 = vld [vmem:[%s13606_s0 + $0xd0] sm:$0xff]  ;;  %751 = vst.msk [vmem:[#allocation2 + $0x1b8] sm:$0xff] %vm745_vm2, %v11218_v47 }
  0x1b   :  { %v54_v28 = vld [vmem:[%s13606_s0 + $0xd8] sm:$0xff]  ;;  %v55_v29 = vld [vmem:[%s13606_s0 + $0xe0] sm:$0xff]  ;;  %v56_v30 = vld [vmem:[%s13606_s0 + $0xe8] sm:$0xff]  ;;  %754 = vst.msk [vmem:[#allocation2 + $0x198] sm:$0xff] %vm745_vm2, %v11218_v47 }
  0x1c   :  { %9555 = vmatmul.mubr.msk.f32.gmra.mrb[12].mxu0 %vm99_vm1, %v40_v14  ;;  %v57_v31 = vld [vmem:[%s13606_s0 + $0xf0] sm:$0xff]  ;;  %v58_v32 = vld [vmem:[%s13606_s0 + $0xf8] sm:$0xff]  ;;  %v59_v33 = vld [vmem:[%s13606_s0 + $0x100] sm:$0xff]  ;;  %755 = vst.msk [vmem:[#allocation2 + $0x1a0] sm:$0xff] %vm745_vm2, %v11218_v47 }
  0x1d   :  { %9557 = vmatprep.mubr.msk.f32.mxu0 %vm99_vm1, %v41_v15  ;;  %v60_v34 = vld [vmem:[%s13606_s0 + $0x108] sm:$0xff]  ;;  %v61_v35 = vld [vmem:[%s13606_s0 + $0x110] sm:$0xff]  ;;  %v62_v36 = vld [vmem:[%s13606_s0 + $0x118] sm:$0xff]  ;;  %757 = vst.msk [vmem:[#allocation2 + $0x348] sm:$0xff] %vm745_vm2, %v11218_v47 }
  0x1e   :  { %v63_v37 = vld [vmem:[%s13606_s0 + $0x120] sm:$0xff]  ;;  %v64_v38 = vld [vmem:[%s13606_s0 + $0x128] sm:$0xff]  ;;  %v65_v39 = vld [vmem:[%s13606_s0 + $0x130] sm:$0xff]  ;;  %758 = vst.msk [vmem:[#allocation2 + $0x350] sm:$0xff] %vm745_vm2, %v11218_v47 }
  0x1f   :  { %v66_v40 = vld [vmem:[%s13606_s0 + $0x138] sm:$0xff]  ;;  %v67_v41 = vld [vmem:[%s13606_s0 + $0x140] sm:$0xff]  ;;  %v68_v42 = vld [vmem:[%s13606_s0 + $0x148] sm:$0xff]  ;;  %749 = vst.msk [vmem:[#allocation2 + $0x10] sm:$0x3] %vm748_vm3, %v11218_v47 }
  0x20   :  { %9558 = vmatmul.mubr.msk.f32.gmra.mrb[14].mxu0 %vm99_vm1, %v42_v16  ;;  %v69_v43 = vld [vmem:[%s13606_s0 + $0x150] sm:$0xff]  ;;  %v70_v44 = vld [vmem:[%s13606_s0 + $0x158] sm:$0xff]  ;;  %v71_v45 = vld [vmem:[%s13606_s0 + $0x160] sm:$0xff]  ;;  %752 = vst.msk [vmem:[#allocation2 + $0x1c0] sm:$0x3] %vm748_vm3, %v11218_v47 }
  0x21   :  { %9560 = vmatprep.mubr.msk.f32.mxu0 %vm99_vm1, %v43_v17  ;;  %v72_v46 = vld [vmem:[%s13606_s0 + $0x168] sm:$0xff]  ;;  %v11468_v48 = vld [vmem:[%s13606_s0 + $0x170] sm:$0xff]  ;;  %756 = vst.msk [vmem:[#allocation2 + $0x1a8] sm:$0x3] %vm748_vm3, %v11218_v47  ;;  %759 = vst.msk [vmem:[#allocation2 + $0x358] sm:$0x3] %vm748_vm3, %v11218_v47 }
  0x22   :  { %778 = vst.msk [vmem:[#allocation2 + $0x1c8] sm:$0x1] %vm761_vm4, %v11218_v47  ;;  %762 = vst.msk [vmem:[#allocation2 + $0x18] sm:$0x1] %vm761_vm4, %v11218_v47  ;;  %v74_v49 = vld [vmem:[%s13606_s0 + $0x178] sm:$0xff]  ;;  %v75_v50 = vld [vmem:[%s13606_s0 + $0x180] sm:$0xff] }
  0x23   :  { %763 = vst.msk [vmem:[#allocation2 + $0x30] sm:$0x1] %vm761_vm4, %v11218_v47  ;;  %764 = vst.msk [vmem:[#allocation2 + $0x48] sm:$0x1] %vm761_vm4, %v11218_v47  ;;  %v1019_v51 = vld [vmem:[%s13611_s5 + $0x8] sm:$0xff]  ;;  %v77_v53 = vld [vmem:[%s13606_s0 + $0x190] sm:$0xff] }
  0x24   :  { %9561 = vmatmul.mubr.msk.f32.gmra.mrb[16].mxu0 %vm99_vm1, %v44_v18  ;;  %765 = vst.msk [vmem:[#allocation2 + $0x60] sm:$0x1] %vm761_vm4, %v11218_v47  ;;  %766 = vst.msk [vmem:[#allocation2 + $0x78] sm:$0x1] %vm761_vm4, %v11218_v47  ;;  %9632 = vmatprep.subr.mxu0 %v1019_v51  ;;  %v76_v52 = vld [vmem:[%s13606_s0 + $0x188] sm:$0xff]  ;;  %v78_v54 = vld [vmem:[%s13606_s0 + $0x198] sm:$0xff] }
  0x25   :  { %9563 = vmatprep.mubr.msk.f32.mxu0 %vm99_vm1, %v45_v19  ;;  %767 = vst.msk [vmem:[#allocation2 + $0x90] sm:$0x1] %vm761_vm4, %v11218_v47  ;;  %768 = vst.msk [vmem:[#allocation2 + $0xa8] sm:$0x1] %vm761_vm4, %v11218_v47  ;;  %9633 = vmatpush3.msra.mxu0 %v1019_v51  ;;  %v79_v55 = vld [vmem:[%s13606_s0 + $0x1a0] sm:$0xff]  ;;  %v80_v56 = vld [vmem:[%s13606_s0 + $0x1a8] sm:$0xff] }
  0x26   :  { %769 = vst.msk [vmem:[#allocation2 + $0xc0] sm:$0x1] %vm761_vm4, %v11218_v47  ;;  %770 = vst.msk [vmem:[#allocation2 + $0xd8] sm:$0x1] %vm761_vm4, %v11218_v47  ;;  %v81_v57 = vld [vmem:[%s13606_s0 + $0x1b0] sm:$0xff]  ;;  %v82_v58 = vld [vmem:[%s13606_s0 + $0x1b8] sm:$0xff] }
  0x27   :  { %771 = vst.msk [vmem:[#allocation2 + $0xf0] sm:$0x1] %vm761_vm4, %v11218_v47  ;;  %772 = vst.msk [vmem:[#allocation2 + $0x108] sm:$0x1] %vm761_vm4, %v11218_v47  ;;  %v83_v59 = vld [vmem:[%s13606_s0 + $0x1c0] sm:$0xff]  ;;  %v84_v60 = vld [vmem:[%s13606_s0 + $0x1c8] sm:$0xff] }
  0x28   :  { %9564 = vmatmul.mubr.msk.f32.gmra.mrb[18].mxu0 %vm99_vm1, %v46_v20  ;;  %773 = vst.msk [vmem:[#allocation2 + $0x120] sm:$0x1] %vm761_vm4, %v11218_v47  ;;  %774 = vst.msk [vmem:[#allocation2 + $0x138] sm:$0x1] %vm761_vm4, %v11218_v47  ;;  %v85_v61 = vld [vmem:[%s13606_s0 + $0x1d0] sm:$0xff]  ;;  %v86_v62 = vld [vmem:[%s13606_s0 + $0x1d8] sm:$0xff] }
  0x29   :  { %9566 = vmatprep.mubr.msk.f32.mxu0 %vm99_vm1, %v47_v21  ;;  %775 = vst.msk [vmem:[#allocation2 + $0x150] sm:$0x1] %vm761_vm4, %v11218_v47  ;;  %776 = vst.msk [vmem:[#allocation2 + $0x168] sm:$0x1] %vm761_vm4, %v11218_v47  ;;  %v87_v63 = vld [vmem:[%s13606_s0 + $0x1e0] sm:$0xff]  ;;  %v88_v0 = vld [vmem:[%s13606_s0 + $0x1e8] sm:$0xff] }
  0x2a   :  { %777 = vst.msk [vmem:[#allocation2 + $0x180] sm:$0x1] %vm761_vm4, %v11218_v47  ;;  %779 = vst.msk [vmem:[#allocation2 + $0x1e0] sm:$0x1] %vm761_vm4, %v11218_v47  ;;  %v89_v1 = vld [vmem:[%s13606_s0 + $0x1f0] sm:$0xff]  ;;  %v90_v2 = vld [vmem:[%s13606_s0 + $0x1f8] sm:$0xff] }
  0x2b   :  { %780 = vst.msk [vmem:[#allocation2 + $0x1f8] sm:$0x1] %vm761_vm4, %v11218_v47  ;;  %781 = vst.msk [vmem:[#allocation2 + $0x210] sm:$0x1] %vm761_vm4, %v11218_v47  ;;  %v955_v3 = vld [vmem:[#allocation2 + $0x1] sm:$0xff]  ;;  %v956_v4 = vld [vmem:[#allocation2 + $0x9] sm:$0xff] }
  0x2c   :  { %9567 = vmatmul.mubr.msk.f32.gmra.mrb[20].mxu0 %vm99_vm1, %v48_v22  ;;  %782 = vst.msk [vmem:[#allocation2 + $0x228] sm:$0x1] %vm761_vm4, %v11218_v47  ;;  %783 = vst.msk [vmem:[#allocation2 + $0x240] sm:$0x1] %vm761_vm4, %v11218_v47  ;;  %v11681_v5 = vld [vmem:[%s13611_s5 + $0x18] sm:$0xff]  ;;  %v11688_v6 = vld [vmem:[%s13611_s5 + $0x20] sm:$0xff] }
  0x2d   :  { %9569 = vmatprep.mubr.msk.f32.mxu0 %vm99_vm1, %v49_v23  ;;  %784 = vst.msk [vmem:[#allocation2 + $0x258] sm:$0x1] %vm761_vm4, %v11218_v47  ;;  %785 = vst.msk [vmem:[#allocation2 + $0x270] sm:$0x1] %vm761_vm4, %v11218_v47  ;;  %10612 = vmatprep.subr.mxu1 %v11681_v5  ;;  %v11694_v7 = vld [vmem:[%s13608_s2] ss:$0 sm:$0xff] }
  0x2e   :  { %786 = vst.msk [vmem:[#allocation2 + $0x288] sm:$0x1] %vm761_vm4, %v11218_v47  ;;  %787 = vst.msk [vmem:[#allocation2 + $0x2a0] sm:$0x1] %vm761_vm4, %v11218_v47  ;;  %10613 = vmatpush3.msra.mxu1 %v11681_v5  ;;  %v954_v19 = vld [vmem:[%s13611_s5] sm:$0xff] }
  0x2f   :  { %788 = vst.msk [vmem:[#allocation2 + $0x2b8] sm:$0x1] %vm761_vm4, %v11218_v47  ;;  %789 = vst.msk [vmem:[#allocation2 + $0x2d0] sm:$0x1] %vm761_vm4, %v11218_v47  ;;  %10024 = vmatprep.subr.mxu1 %v11688_v6  ;;  %9730 = vmatprep.subr.mxu0 %v954_v19 }
  0x30   :  { %9570 = vmatmul.mubr.msk.f32.gmra.mrb[22].mxu0 %vm99_vm1, %v50_v24  ;;  %790 = vst.msk [vmem:[#allocation2 + $0x2e8] sm:$0x1] %vm761_vm4, %v11218_v47  ;;  %791 = vst.msk [vmem:[#allocation2 + $0x300] sm:$0x1] %vm761_vm4, %v11218_v47 }
  0x31   :  { %9572 = vmatprep.mubr.msk.f32.mxu0 %vm99_vm1, %v51_v25  ;;  %792 = vst.msk [vmem:[#allocation2 + $0x318] sm:$0x1] %vm761_vm4, %v11218_v47  ;;  %793 = vst.msk [vmem:[#allocation2 + $0x330] sm:$0x1] %vm761_vm4, %v11218_v47 }
  0x32   :  { %794 = vst.msk [vmem:[#allocation2 + $0x29] sm:$0x1] %vm761_vm4, %v11218_v47  ;;  %795 = vst.msk [vmem:[#allocation2 + $0x41] sm:$0x1] %vm761_vm4, %v11218_v47 }
  0x33   :  { %796 = vst.msk [vmem:[#allocation2 + $0x59] sm:$0x1] %vm761_vm4, %v11218_v47  ;;  %797 = vst.msk [vmem:[#allocation2 + $0x71] sm:$0x1] %vm761_vm4, %v11218_v47 }
  0x34   :  { %9573 = vmatmul.mubr.msk.f32.gmra.mrb[24].mxu0 %vm99_vm1, %v52_v26  ;;  %798 = vst.msk [vmem:[#allocation2 + $0x89] sm:$0x1] %vm761_vm4, %v11218_v47  ;;  %799 = vst.msk [vmem:[#allocation2 + $0xa1] sm:$0x1] %vm761_vm4, %v11218_v47 }
  0x35   :  { %9575 = vmatprep.mubr.msk.f32.mxu0 %vm99_vm1, %v53_v27  ;;  %800 = vst.msk [vmem:[#allocation2 + $0xb9] sm:$0x1] %vm761_vm4, %v11218_v47  ;;  %801 = vst.msk [vmem:[#allocation2 + $0xd1] sm:$0x1] %vm761_vm4, %v11218_v47 }
  0x36   :  { %802 = vst.msk [vmem:[#allocation2 + $0xe9] sm:$0x1] %vm761_vm4, %v11218_v47  ;;  %803 = vst.msk [vmem:[#allocation2 + $0x101] sm:$0x1] %vm761_vm4, %v11218_v47 }
  0x37   :  { %804 = vst.msk [vmem:[#allocation2 + $0x119] sm:$0x1] %vm761_vm4, %v11218_v47  ;;  %805 = vst.msk [vmem:[#allocation2 + $0x131] sm:$0x1] %vm761_vm4, %v11218_v47 }
  0x38   :  { %9576 = vmatmul.mubr.msk.f32.gmra.mrb[26].mxu0 %vm99_vm1, %v54_v28  ;;  %806 = vst.msk [vmem:[#allocation2 + $0x149] sm:$0x1] %vm761_vm4, %v11218_v47  ;;  %807 = vst.msk [vmem:[#allocation2 + $0x161] sm:$0x1] %vm761_vm4, %v11218_v47 }
  0x39   :  { %9578 = vmatprep.mubr.msk.f32.mxu0 %vm99_vm1, %v55_v29  ;;  %808 = vst.msk [vmem:[#allocation2 + $0x179] sm:$0x1] %vm761_vm4, %v11218_v47  ;;  %809 = vst.msk [vmem:[#allocation2 + $0x191] sm:$0x1] %vm761_vm4, %v11218_v47 }
  0x3a   :  { %810 = vst.msk [vmem:[#allocation2 + $0x1d9] sm:$0x1] %vm761_vm4, %v11218_v47  ;;  %811 = vst.msk [vmem:[#allocation2 + $0x1f1] sm:$0x1] %vm761_vm4, %v11218_v47 }
  0x3b   :  { %812 = vst.msk [vmem:[#allocation2 + $0x209] sm:$0x1] %vm761_vm4, %v11218_v47  ;;  %813 = vst.msk [vmem:[#allocation2 + $0x221] sm:$0x1] %vm761_vm4, %v11218_v47 }
  0x3c   :  { %9579 = vmatmul.mubr.msk.f32.gmra.mrb[28].mxu0 %vm99_vm1, %v56_v30  ;;  %814 = vst.msk [vmem:[#allocation2 + $0x239] sm:$0x1] %vm761_vm4, %v11218_v47  ;;  %815 = vst.msk [vmem:[#allocation2 + $0x251] sm:$0x1] %vm761_vm4, %v11218_v47 }
  0x3d   :  { %9581 = vmatprep.mubr.msk.f32.mxu0 %vm99_vm1, %v57_v31  ;;  %816 = vst.msk [vmem:[#allocation2 + $0x269] sm:$0x1] %vm761_vm4, %v11218_v47  ;;  %817 = vst.msk [vmem:[#allocation2 + $0x281] sm:$0x1] %vm761_vm4, %v11218_v47 }
  0x3e   :  { %818 = vst.msk [vmem:[#allocation2 + $0x299] sm:$0x1] %vm761_vm4, %v11218_v47  ;;  %819 = vst.msk [vmem:[#allocation2 + $0x2b1] sm:$0x1] %vm761_vm4, %v11218_v47 }
  0x3f   :  { %820 = vst.msk [vmem:[#allocation2 + $0x2c9] sm:$0x1] %vm761_vm4, %v11218_v47  ;;  %821 = vst.msk [vmem:[#allocation2 + $0x2e1] sm:$0x1] %vm761_vm4, %v11218_v47 }
  0x40   :  { %9582 = vmatmul.mubr.msk.f32.gmra.mrb[30].mxu0 %vm99_vm1, %v58_v32  ;;  %822 = vst.msk [vmem:[#allocation2 + $0x2f9] sm:$0x1] %vm761_vm4, %v11218_v47  ;;  %823 = vst.msk [vmem:[#allocation2 + $0x311] sm:$0x1] %vm761_vm4, %v11218_v47 }
  0x41   :  { %9584 = vmatprep.mubr.msk.f32.mxu0 %vm99_vm1, %v59_v33  ;;  %824 = vst.msk [vmem:[#allocation2 + $0x329] sm:$0x1] %vm761_vm4, %v11218_v47  ;;  %825 = vst.msk [vmem:[#allocation2 + $0x341] sm:$0x1] %vm761_vm4, %v11218_v47 }
  0x44   :  { %9585 = vmatmul.mubr.msk.f32.gmra.mrb[32].mxu0 %vm99_vm1, %v60_v34 }
  0x45   :  { %9587 = vmatprep.mubr.msk.f32.mxu0 %vm99_vm1, %v61_v35 }
  0x48   :  { %9588 = vmatmul.mubr.msk.f32.gmra.mrb[34].mxu0 %vm99_vm1, %v62_v36 }
  0x49   :  { %9590 = vmatprep.mubr.msk.f32.mxu0 %vm99_vm1, %v63_v37 }
  0x4c   :  { %9591 = vmatmul.mubr.msk.f32.gmra.mrb[36].mxu0 %vm99_vm1, %v64_v38 }
  0x4d   :  { %9593 = vmatprep.mubr.msk.f32.mxu0 %vm99_vm1, %v65_v39 }
  0x50   :  { %9594 = vmatmul.mubr.msk.f32.gmra.mrb[38].mxu0 %vm99_vm1, %v66_v40 }
  0x51   :  { %9596 = vmatprep.mubr.msk.f32.mxu0 %vm99_vm1, %v67_v41 }
  0x54   :  { %9597 = vmatmul.mubr.msk.f32.gmra.mrb[40].mxu0 %vm99_vm1, %v68_v42 }
  0x55   :  { %9599 = vmatprep.mubr.msk.f32.mxu0 %vm99_vm1, %v69_v43 }
  0x58   :  { %9600 = vmatmul.mubr.msk.f32.gmra.mrb[42].mxu0 %vm99_vm1, %v70_v44 }
  0x59   :  { %9602 = vmatprep.mubr.msk.f32.mxu0 %vm99_vm1, %v71_v45 }
  0x5c   :  { %9603 = vmatmul.mubr.msk.f32.gmra.mrb[44].mxu0 %vm99_vm1, %v72_v46 }
  0x5d   :  { %9605 = vmatprep.mubr.msk.f32.mxu0 %vm99_vm1, %v11468_v48 }
  0x60   :  { %9606 = vmatmul.mubr.msk.f32.gmra.mrb[46].mxu0 %vm99_vm1, %v74_v49 }
  0x61   :  { %9608 = vmatprep.mubr.msk.f32.mxu0 %vm99_vm1, %v75_v50 }
  0x64   :  { %9609 = vmatmul.mubr.msk.f32.gmra.mrb[48].mxu0 %vm99_vm1, %v76_v52 }
  0x65   :  { %9611 = vmatprep.mubr.msk.f32.mxu0 %vm99_vm1, %v77_v53 }
  0x68   :  { %9612 = vmatmul.mubr.msk.f32.gmra.mrb[50].mxu0 %vm99_vm1, %v78_v54 }
  0x69   :  { %9614 = vmatprep.mubr.msk.f32.mxu0 %vm99_vm1, %v79_v55 }
  0x6c   :  { %9615 = vmatmul.mubr.msk.f32.gmra.mrb[52].mxu0 %vm99_vm1, %v80_v56 }
  0x6d   :  { %9617 = vmatprep.mubr.msk.f32.mxu0 %vm99_vm1, %v81_v57 }
  0x70   :  { %9618 = vmatmul.mubr.msk.f32.gmra.mrb[54].mxu0 %vm99_vm1, %v82_v58 }
  0x71   :  { %9620 = vmatprep.mubr.msk.f32.mxu0 %vm99_vm1, %v83_v59 }
  0x74   :  { %9621 = vmatmul.mubr.msk.f32.gmra.mrb[56].mxu0 %vm99_vm1, %v84_v60 }
  0x75   :  { %9623 = vmatprep.mubr.msk.f32.mxu0 %vm99_vm1, %v85_v61 }
  0x78   :  { %9624 = vmatmul.mubr.msk.f32.gmra.mrb[58].mxu0 %vm99_vm1, %v86_v62 }
  0x79   :  { %9626 = vmatprep.mubr.msk.f32.mxu0 %vm99_vm1, %v87_v63 }
  0x7c   :  { %9627 = vmatmul.mubr.msk.f32.gmra.mrb[60].mxu0 %vm99_vm1, %v88_v0 }
  0x7d   :  { %9629 = vmatprep.mubr.msk.f32.mxu0 %vm99_vm1, %v89_v1 }
  0x80   :  { %9630 = vmatmul.mubr.msk.f32.gmra.mrb[62].mxu0 %vm99_vm1, %v90_v2 }
  0x81   :  { %9634 = vmatprep.mubr.msk.f32.mxu0 %vm745_vm2, %v955_v3 }
  0x84   :  { %9635 = vmatmul.mubr.msk.f32.vlgmr.msra.gmra.mrb[64].mxu0 %vm745_vm2, %v956_v4 }
  0x85   :  { %9731 = vmatpush3.msra.mxu0 %v954_v19 }
  0xd7   :  { %v9538_v8 = vpop.f32.mrb[0].mxu0 }
  0xd8   :  { %v368_v9 = vadd.f32 %v9538_v8, %v11694_v7  ;;  %v362_v10 = vpop.f32.mrb[1].mxu0 }
  0xd9   :  { %v363_v11 = vadd.f32 %v11694_v7, %v362_v10 }
  0xda   :  { %v682_v12 = vmax.f32 %v368_v9, 0.0 }
  0xdb   :  { %v681_v13 = vmax.f32 %v363_v11, 0.0  ;;  %v9541_v14 = vpop.f32.mrb[2].mxu0 }
  0xdc   :  { %827 = vst.msk [vmem:[#allocation2 + $0x21] sm:$0xff] %vm745_vm2, %v682_v12  ;;  %v378_v15 = vadd.f32 %v9541_v14, %v11694_v7  ;;  %v372_v16 = vpop.f32.mrb[3].mxu0 }
  0xdd   :  { %826 = vst.msk [vmem:[#allocation2 + $0x19] sm:$0xff] %vm745_vm2, %v681_v13  ;;  %v373_v17 = vadd.f32 %v11694_v7, %v372_v16 }
  0xde   :  { %v684_v18 = vmax.f32 %v378_v15, 0.0 }
  0xdf   :  { %v683_v20 = vmax.f32 %v373_v17, 0.0  ;;  %v9544_v21 = vpop.f32.mrb[4].mxu0 }
  0xe0   :  { %829 = vst.msk [vmem:[#allocation2 + $0x39] sm:$0xff] %vm745_vm2, %v684_v18  ;;  %v388_v22 = vadd.f32 %v9544_v21, %v11694_v7  ;;  %v382_v23 = vpop.f32.mrb[5].mxu0 }
  0xe1   :  { %828 = vst.msk [vmem:[#allocation2 + $0x31] sm:$0xff] %vm745_vm2, %v683_v20  ;;  %v383_v24 = vadd.f32 %v11694_v7, %v382_v23 }
  0xe2   :  { %v686_v25 = vmax.f32 %v388_v22, 0.0 }
  0xe3   :  { %v685_v26 = vmax.f32 %v383_v24, 0.0  ;;  %v9547_v27 = vpop.f32.mrb[6].mxu0  ;;  %v11717_v32 = vld [vmem:[#allocation2 + $0x21] sm:$0xff] }
  0xe4   :  { %831 = vst.msk [vmem:[#allocation2 + $0x51] sm:$0xff] %vm745_vm2, %v686_v25  ;;  %v398_v28 = vadd.f32 %v9547_v27, %v11694_v7  ;;  %v392_v29 = vpop.f32.mrb[7].mxu0  ;;  %v11711_v30 = vld [vmem:[#allocation2 + $0x19] sm:$0xff] }
  0xe5   :  { %830 = vst.msk [vmem:[#allocation2 + $0x49] sm:$0xff] %vm745_vm2, %v685_v26  ;;  %v393_v31 = vadd.f32 %v11694_v7, %v392_v29  ;;  %9637 = vmatprep.mubr.msk.f32.mxu0 %vm745_vm2, %v11711_v30 }
  0xe6   :  { %v688_v33 = vmax.f32 %v398_v28, 0.0  ;;  %9638 = vmatmul.mubr.msk.f32.gmra.mrb[66].mxu0 %vm745_vm2, %v11717_v32 }
  0xe7   :  { %v687_v34 = vmax.f32 %v393_v31, 0.0  ;;  %v9550_v35 = vpop.f32.mrb[8].mxu0  ;;  %v11729_v40 = vld [vmem:[#allocation2 + $0x39] sm:$0xff] }
  0xe8   :  { %833 = vst.msk [vmem:[#allocation2 + $0x69] sm:$0xff] %vm745_vm2, %v688_v33  ;;  %v408_v36 = vadd.f32 %v9550_v35, %v11694_v7  ;;  %v402_v37 = vpop.f32.mrb[9].mxu0  ;;  %v11723_v38 = vld [vmem:[#allocation2 + $0x31] sm:$0xff] }
  0xe9   :  { %832 = vst.msk [vmem:[#allocation2 + $0x61] sm:$0xff] %vm745_vm2, %v687_v34  ;;  %v403_v39 = vadd.f32 %v11694_v7, %v402_v37  ;;  %9640 = vmatprep.mubr.msk.f32.mxu0 %vm745_vm2, %v11723_v38 }
  0xea   :  { %v690_v41 = vmax.f32 %v408_v36, 0.0  ;;  %9641 = vmatmul.mubr.msk.f32.gmra.mrb[68].mxu0 %vm745_vm2, %v11729_v40 }
  0xeb   :  { %v689_v42 = vmax.f32 %v403_v39, 0.0  ;;  %v9553_v43 = vpop.f32.mrb[10].mxu0  ;;  %v11741_v48 = vld [vmem:[#allocation2 + $0x51] sm:$0xff] }
  0xec   :  { %835 = vst.msk [vmem:[#allocation2 + $0x81] sm:$0xff] %vm745_vm2, %v690_v41  ;;  %v418_v44 = vadd.f32 %v9553_v43, %v11694_v7  ;;  %v412_v45 = vpop.f32.mrb[11].mxu0  ;;  %v11735_v46 = vld [vmem:[#allocation2 + $0x49] sm:$0xff] }
  0xed   :  { %834 = vst.msk [vmem:[#allocation2 + $0x79] sm:$0xff] %vm745_vm2, %v689_v42  ;;  %v413_v47 = vadd.f32 %v11694_v7, %v412_v45  ;;  %9643 = vmatprep.mubr.msk.f32.mxu0 %vm745_vm2, %v11735_v46 }
  0xee   :  { %v692_v49 = vmax.f32 %v418_v44, 0.0  ;;  %9644 = vmatmul.mubr.msk.f32.gmra.mrb[70].mxu0 %vm745_vm2, %v11741_v48 }
  0xef   :  { %v691_v50 = vmax.f32 %v413_v47, 0.0  ;;  %v9556_v51 = vpop.f32.mrb[12].mxu0  ;;  %v11753_v56 = vld [vmem:[#allocation2 + $0x69] sm:$0xff] }
  0xf0   :  { %837 = vst.msk [vmem:[#allocation2 + $0x99] sm:$0xff] %vm745_vm2, %v692_v49  ;;  %v428_v52 = vadd.f32 %v9556_v51, %v11694_v7  ;;  %v422_v53 = vpop.f32.mrb[13].mxu0  ;;  %v11747_v54 = vld [vmem:[#allocation2 + $0x61] sm:$0xff] }
  0xf1   :  { %836 = vst.msk [vmem:[#allocation2 + $0x91] sm:$0xff] %vm745_vm2, %v691_v50  ;;  %v423_v55 = vadd.f32 %v11694_v7, %v422_v53  ;;  %9646 = vmatprep.mubr.msk.f32.mxu0 %vm745_vm2, %v11747_v54 }
  0xf2   :  { %v694_v57 = vmax.f32 %v428_v52, 0.0  ;;  %9647 = vmatmul.mubr.msk.f32.gmra.mrb[72].mxu0 %vm745_vm2, %v11753_v56 }
  0xf3   :  { %v693_v58 = vmax.f32 %v423_v55, 0.0  ;;  %v9559_v59 = vpop.f32.mrb[14].mxu0  ;;  %v11765_v0 = vld [vmem:[#allocation2 + $0x81] sm:$0xff] }
  0xf4   :  { %839 = vst.msk [vmem:[#allocation2 + $0xb1] sm:$0xff] %vm745_vm2, %v694_v57  ;;  %v438_v60 = vadd.f32 %v9559_v59, %v11694_v7  ;;  %v432_v61 = vpop.f32.mrb[15].mxu0  ;;  %v11759_v62 = vld [vmem:[#allocation2 + $0x79] sm:$0xff] }
  0xf5   :  { %838 = vst.msk [vmem:[#allocation2 + $0xa9] sm:$0xff] %vm745_vm2, %v693_v58  ;;  %v433_v63 = vadd.f32 %v11694_v7, %v432_v61  ;;  %9649 = vmatprep.mubr.msk.f32.mxu0 %vm745_vm2, %v11759_v62 }
  0xf6   :  { %v696_v1 = vmax.f32 %v438_v60, 0.0  ;;  %9650 = vmatmul.mubr.msk.f32.gmra.mrb[74].mxu0 %vm745_vm2, %v11765_v0 }
  0xf7   :  { %v695_v2 = vmax.f32 %v433_v63, 0.0  ;;  %v9562_v3 = vpop.f32.mrb[16].mxu0  ;;  %v11777_v11 = vld [vmem:[#allocation2 + $0x99] sm:$0xff] }
  0xf8   :  { %841 = vst.msk [vmem:[#allocation2 + $0xc9] sm:$0xff] %vm745_vm2, %v696_v1  ;;  %v448_v4 = vadd.f32 %v9562_v3, %v11694_v7  ;;  %v442_v8 = vpop.f32.mrb[17].mxu0  ;;  %v11771_v9 = vld [vmem:[#allocation2 + $0x91] sm:$0xff] }
  0xf9   :  { %840 = vst.msk [vmem:[#allocation2 + $0xc1] sm:$0xff] %vm745_vm2, %v695_v2  ;;  %v443_v10 = vadd.f32 %v11694_v7, %v442_v8  ;;  %9652 = vmatprep.mubr.msk.f32.mxu0 %vm745_vm2, %v11771_v9 }
  0xfa   :  { %v698_v12 = vmax.f32 %v448_v4, 0.0  ;;  %9653 = vmatmul.mubr.msk.f32.gmra.mrb[76].mxu0 %vm745_vm2, %v11777_v11 }
  0xfb   :  { %v697_v13 = vmax.f32 %v443_v10, 0.0  ;;  %v9565_v14 = vpop.f32.mrb[18].mxu0  ;;  %v11789_v19 = vld [vmem:[#allocation2 + $0xb1] sm:$0xff] }
  0xfc   :  { %843 = vst.msk [vmem:[#allocation2 + $0xe1] sm:$0xff] %vm745_vm2, %v698_v12  ;;  %v458_v15 = vadd.f32 %v9565_v14, %v11694_v7  ;;  %v452_v16 = vpop.f32.mrb[19].mxu0  ;;  %v11783_v17 = vld [vmem:[#allocation2 + $0xa9] sm:$0xff] }
  0xfd   :  { %842 = vst.msk [vmem:[#allocation2 + $0xd9] sm:$0xff] %vm745_vm2, %v697_v13  ;;  %v453_v18 = vadd.f32 %v11694_v7, %v452_v16  ;;  %9655 = vmatprep.mubr.msk.f32.mxu0 %vm745_vm2, %v11783_v17 }
  0xfe   :  { %v700_v20 = vmax.f32 %v458_v15, 0.0  ;;  %9656 = vmatmul.mubr.msk.f32.gmra.mrb[78].mxu0 %vm745_vm2, %v11789_v19 }
  0xff   :  { %v699_v21 = vmax.f32 %v453_v18, 0.0  ;;  %v9568_v22 = vpop.f32.mrb[20].mxu0  ;;  %v11801_v27 = vld [vmem:[#allocation2 + $0xc9] sm:$0xff] }
 0x100   :  { %845 = vst.msk [vmem:[#allocation2 + $0xf9] sm:$0xff] %vm745_vm2, %v700_v20  ;;  %v468_v23 = vadd.f32 %v9568_v22, %v11694_v7  ;;  %v462_v24 = vpop.f32.mrb[21].mxu0  ;;  %v11795_v25 = vld [vmem:[#allocation2 + $0xc1] sm:$0xff] }
 0x101   :  { %844 = vst.msk [vmem:[#allocation2 + $0xf1] sm:$0xff] %vm745_vm2, %v699_v21  ;;  %v463_v26 = vadd.f32 %v11694_v7, %v462_v24  ;;  %9658 = vmatprep.mubr.msk.f32.mxu0 %vm745_vm2, %v11795_v25 }
 0x102   :  { %v702_v28 = vmax.f32 %v468_v23, 0.0  ;;  %9659 = vmatmul.mubr.msk.f32.gmra.mrb[80].mxu0 %vm745_vm2, %v11801_v27 }
 0x103   :  { %v701_v29 = vmax.f32 %v463_v26, 0.0  ;;  %v9571_v31 = vpop.f32.mrb[22].mxu0  ;;  %v11813_v37 = vld [vmem:[#allocation2 + $0xe1] sm:$0xff] }
 0x104   :  { %847 = vst.msk [vmem:[#allocation2 + $0x111] sm:$0xff] %vm745_vm2, %v702_v28  ;;  %v478_v33 = vadd.f32 %v9571_v31, %v11694_v7  ;;  %v472_v34 = vpop.f32.mrb[23].mxu0  ;;  %v11807_v35 = vld [vmem:[#allocation2 + $0xd9] sm:$0xff] }
 0x105   :  { %846 = vst.msk [vmem:[#allocation2 + $0x109] sm:$0xff] %vm745_vm2, %v701_v29  ;;  %v473_v36 = vadd.f32 %v11694_v7, %v472_v34  ;;  %9661 = vmatprep.mubr.msk.f32.mxu0 %vm745_vm2, %v11807_v35 }
 0x106   :  { %v704_v39 = vmax.f32 %v478_v33, 0.0  ;;  %9662 = vmatmul.mubr.msk.f32.gmra.mrb[82].mxu0 %vm745_vm2, %v11813_v37 }
 0x107   :  { %v703_v41 = vmax.f32 %v473_v36, 0.0  ;;  %v9574_v42 = vpop.f32.mrb[24].mxu0  ;;  %v11825_v49 = vld [vmem:[#allocation2 + $0xf9] sm:$0xff] }
 0x108   :  { %849 = vst.msk [vmem:[#allocation2 + $0x129] sm:$0xff] %vm745_vm2, %v704_v39  ;;  %v488_v43 = vadd.f32 %v9574_v42, %v11694_v7  ;;  %v482_v44 = vpop.f32.mrb[25].mxu0  ;;  %v11819_v45 = vld [vmem:[#allocation2 + $0xf1] sm:$0xff] }
 0x109   :  { %848 = vst.msk [vmem:[#allocation2 + $0x121] sm:$0xff] %vm745_vm2, %v703_v41  ;;  %v483_v47 = vadd.f32 %v11694_v7, %v482_v44  ;;  %9664 = vmatprep.mubr.msk.f32.mxu0 %vm745_vm2, %v11819_v45 }
 0x10a   :  { %v706_v50 = vmax.f32 %v488_v43, 0.0  ;;  %9665 = vmatmul.mubr.msk.f32.gmra.mrb[84].mxu0 %vm745_vm2, %v11825_v49  ;;  %v987_v43 = vld [vmem:[#allocation2 + $0x1b1] sm:$0xff] }
 0x10b   :  { %v705_v51 = vmax.f32 %v483_v47, 0.0  ;;  %v9577_v52 = vpop.f32.mrb[26].mxu0  ;;  %v11837_v59 = vld [vmem:[#allocation2 + $0x111] sm:$0xff] }
 0x10c   :  { %851 = vst.msk [vmem:[#allocation2 + $0x141] sm:$0xff] %vm745_vm2, %v706_v50  ;;  %v498_v53 = vadd.f32 %v9577_v52, %v11694_v7  ;;  %v492_v55 = vpop.f32.mrb[27].mxu0  ;;  %v11831_v57 = vld [vmem:[#allocation2 + $0x109] sm:$0xff] }
 0x10d   :  { %850 = vst.msk [vmem:[#allocation2 + $0x139] sm:$0xff] %vm745_vm2, %v705_v51  ;;  %v493_v58 = vadd.f32 %v11694_v7, %v492_v55  ;;  %9667 = vmatprep.mubr.msk.f32.mxu0 %vm745_vm2, %v11831_v57 }
 0x10e   :  { %v708_v60 = vmax.f32 %v498_v53, 0.0  ;;  %9668 = vmatmul.mubr.msk.f32.gmra.mrb[86].mxu0 %vm745_vm2, %v11837_v59  ;;  %v988_v53 = vld [vmem:[#allocation2 + $0x1b9] sm:$0xff] }
 0x10f   :  { %v707_v61 = vmax.f32 %v493_v58, 0.0  ;;  %v9580_v63 = vpop.f32.mrb[28].mxu0  ;;  %v11849_v8 = vld [vmem:[#allocation2 + $0x129] sm:$0xff] }
 0x110   :  { %853 = vst.msk [vmem:[#allocation2 + $0x159] sm:$0xff] %vm745_vm2, %v708_v60  ;;  %v508_v1 = vadd.f32 %v9580_v63, %v11694_v7  ;;  %v502_v2 = vpop.f32.mrb[29].mxu0  ;;  %v11843_v3 = vld [vmem:[#allocation2 + $0x121] sm:$0xff] }
 0x111   :  { %852 = vst.msk [vmem:[#allocation2 + $0x151] sm:$0xff] %vm745_vm2, %v707_v61  ;;  %v503_v4 = vadd.f32 %v11694_v7, %v502_v2  ;;  %9670 = vmatprep.mubr.msk.f32.mxu0 %vm745_vm2, %v11843_v3 }
 0x112   :  { %v710_v10 = vmax.f32 %v508_v1, 0.0  ;;  %9671 = vmatmul.mubr.msk.f32.gmra.mrb[88].mxu0 %vm745_vm2, %v11849_v8 }
 0x113   :  { %v709_v12 = vmax.f32 %v503_v4, 0.0  ;;  %v9583_v13 = vpop.f32.mrb[30].mxu0  ;;  %v11861_v20 = vld [vmem:[#allocation2 + $0x141] sm:$0xff] }
 0x114   :  { %855 = vst.msk [vmem:[#allocation2 + $0x171] sm:$0xff] %vm745_vm2, %v710_v10  ;;  %v518_v14 = vadd.f32 %v9583_v13, %v11694_v7  ;;  %v512_v15 = vpop.f32.mrb[31].mxu0  ;;  %v11855_v16 = vld [vmem:[#allocation2 + $0x139] sm:$0xff] }
 0x115   :  { %854 = vst.msk [vmem:[#allocation2 + $0x169] sm:$0xff] %vm745_vm2, %v709_v12  ;;  %v513_v18 = vadd.f32 %v11694_v7, %v512_v15  ;;  %9673 = vmatprep.mubr.msk.f32.mxu0 %vm745_vm2, %v11855_v16 }
 0x116   :  { %v712_v21 = vmax.f32 %v518_v14, 0.0  ;;  %9674 = vmatmul.mubr.msk.f32.gmra.mrb[90].mxu0 %vm745_vm2, %v11861_v20 }
 0x117   :  { %v711_v22 = vmax.f32 %v513_v18, 0.0  ;;  %v9586_v23 = vpop.f32.mrb[32].mxu0  ;;  %v11873_v31 = vld [vmem:[#allocation2 + $0x159] sm:$0xff]  ;;  %v11914_v18 = vld [vmem:[%s13611_s5 + $0x28] sm:$0xff] }
 0x118   :  { %857 = vst.msk [vmem:[#allocation2 + $0x189] sm:$0xff] %vm745_vm2, %v712_v21  ;;  %v528_v24 = vadd.f32 %v9586_v23, %v11694_v7  ;;  %v522_v26 = vpop.f32.mrb[33].mxu0  ;;  %v11867_v28 = vld [vmem:[#allocation2 + $0x151] sm:$0xff] }
 0x119   :  { %856 = vst.msk [vmem:[#allocation2 + $0x181] sm:$0xff] %vm745_vm2, %v711_v22  ;;  %v523_v29 = vadd.f32 %v11694_v7, %v522_v26  ;;  %9676 = vmatprep.mubr.msk.f32.mxu0 %vm745_vm2, %v11867_v28 }
 0x11a   :  { %v714_v33 = vmax.f32 %v528_v24, 0.0  ;;  %9677 = vmatmul.mubr.msk.f32.gmra.mrb[92].mxu0 %vm745_vm2, %v11873_v31 }
 0x11b   :  { %v713_v34 = vmax.f32 %v523_v29, 0.0  ;;  %v9589_v36 = vpop.f32.mrb[34].mxu0  ;;  %v11885_v47 = vld [vmem:[#allocation2 + $0x171] sm:$0xff] }
 0x11c   :  { %859 = vst.msk [vmem:[#allocation2 + $0x1d1] sm:$0xff] %vm745_vm2, %v714_v33  ;;  %v538_v39 = vadd.f32 %v9589_v36, %v11694_v7  ;;  %v532_v41 = vpop.f32.mrb[35].mxu0  ;;  %v11879_v42 = vld [vmem:[#allocation2 + $0x169] sm:$0xff] }
 0x11d   :  { %858 = vst.msk [vmem:[#allocation2 + $0x1c9] sm:$0xff] %vm745_vm2, %v713_v34  ;;  %v533_v44 = vadd.f32 %v11694_v7, %v532_v41  ;;  %9679 = vmatprep.mubr.msk.f32.mxu0 %vm745_vm2, %v11879_v42 }
 0x11e   :  { %v716_v50 = vmax.f32 %v538_v39, 0.0  ;;  %9680 = vmatmul.mubr.msk.f32.gmra.mrb[94].mxu0 %vm745_vm2, %v11885_v47 }
 0x11f   :  { %v715_v51 = vmax.f32 %v533_v44, 0.0  ;;  %v9592_v52 = vpop.f32.mrb[36].mxu0  ;;  %9682 = vmatprep.mubr.msk.f32.mxu0 %vm745_vm2, %v987_v43 }
 0x120   :  { %861 = vst.msk [vmem:[#allocation2 + $0x1e9] sm:$0xff] %vm745_vm2, %v716_v50  ;;  %v548_v55 = vadd.f32 %v9592_v52, %v11694_v7  ;;  %v542_v58 = vpop.f32.mrb[37].mxu0 }
 0x121   :  { %860 = vst.msk [vmem:[#allocation2 + $0x1e1] sm:$0xff] %vm745_vm2, %v715_v51  ;;  %v543_v60 = vadd.f32 %v11694_v7, %v542_v58 }
 0x122   :  { %v718_v61 = vmax.f32 %v548_v55, 0.0  ;;  %9683 = vmatmul.mubr.msk.f32.gmra.mrb[96].mxu0 %vm745_vm2, %v988_v53 }
 0x123   :  { %v717_v63 = vmax.f32 %v543_v60, 0.0  ;;  %v9595_v1 = vpop.f32.mrb[38].mxu0  ;;  %v11909_v15 = vld [vmem:[#allocation2 + $0x1d1] sm:$0xff] }
 0x124   :  { %863 = vst.msk [vmem:[#allocation2 + $0x201] sm:$0xff] %vm745_vm2, %v718_v61  ;;  %v558_v2 = vadd.f32 %v9595_v1, %v11694_v7  ;;  %v552_v4 = vpop.f32.mrb[39].mxu0  ;;  %v11897_v10 = vld [vmem:[#allocation2 + $0x1c9] sm:$0xff] }
 0x125   :  { %v11899_v12 = vld [vmem:[#allocation2 + $0x1c8] sm:$0xff]  ;;  %v11901_v13 = vld [vmem:[#allocation2 + $0x1d0] sm:$0xff]  ;;  %862 = vst.msk [vmem:[#allocation2 + $0x1f9] sm:$0xff] %vm745_vm2, %v717_v63  ;;  %v553_v14 = vadd.f32 %v11694_v7, %v552_v4  ;;  %9685 = vmatprep.mubr.msk.f32.mxu0 %vm745_vm2, %v11897_v10 }
 0x126   :  { %9976 = vmatprep.mubr.msk.f32.mxu1 %vm745_vm2, %v11899_v12  ;;  %v720_v21 = vmax.f32 %v558_v2, 0.0  ;;  %9686 = vmatmul.mubr.msk.f32.gmra.mrb[98].mxu0 %vm745_vm2, %v11909_v15 }
 0x127   :  { %9977 = vmatmul.mubr.msk.f32.vlgmr.msra.gmra.mrb[0].mxu1 %vm745_vm2, %v11901_v13  ;;  %v719_v22 = vmax.f32 %v553_v14, 0.0  ;;  %v9598_v23 = vpop.f32.mrb[40].mxu0 }
 0x128   :  { %10025 = vmatpush3.msra.mxu1 %v11688_v6  ;;  %865 = vst.msk [vmem:[#allocation2 + $0x219] sm:$0xff] %vm745_vm2, %v720_v21  ;;  %v568_v24 = vadd.f32 %v9598_v23, %v11694_v7  ;;  %v562_v26 = vpop.f32.mrb[41].mxu0  ;;  %v11923_v29 = vld [vmem:[#allocation2 + $0x1e1] sm:$0xff]  ;;  %v11936_v6 = vld [vmem:[#allocation2 + $0x1e9] sm:$0xff] }
 0x129   :  { %v11925_v33 = vld [vmem:[#allocation2 + $0x1e0] sm:$0xff]  ;;  %v11927_v34 = vld [vmem:[#allocation2 + $0x1e8] sm:$0xff]  ;;  %10122 = vmatprep.subr.mxu1 %v11914_v18  ;;  %864 = vst.msk [vmem:[#allocation2 + $0x211] sm:$0xff] %vm745_vm2, %v719_v22  ;;  %v563_v36 = vadd.f32 %v11694_v7, %v562_v26  ;;  %9688 = vmatprep.mubr.msk.f32.mxu0 %vm745_vm2, %v11923_v29 }
 0x12a   :  { %9979 = vmatprep.mubr.msk.f32.mxu1 %vm745_vm2, %v11925_v33  ;;  %v722_v39 = vmax.f32 %v568_v24, 0.0  ;;  %9689 = vmatmul.mubr.msk.f32.gmra.mrb[100].mxu0 %vm745_vm2, %v11936_v6 }
 0x12b   :  { %9980 = vmatmul.mubr.msk.f32.gmra.mrb[2].mxu1 %vm745_vm2, %v11927_v34  ;;  %v721_v41 = vmax.f32 %v563_v36, 0.0  ;;  %v9601_v43 = vpop.f32.mrb[42].mxu0  ;;  %v11956_v58 = vld [vmem:[#allocation2 + $0x201] sm:$0xff] }
 0x12c   :  { %867 = vst.msk [vmem:[#allocation2 + $0x231] sm:$0xff] %vm745_vm2, %v722_v39  ;;  %v578_v44 = vadd.f32 %v9601_v43, %v11694_v7  ;;  %v572_v50 = vpop.f32.mrb[43].mxu0  ;;  %v11944_v51 = vld [vmem:[#allocation2 + $0x1f9] sm:$0xff] }
 0x12d   :  { %v11946_v52 = vld [vmem:[#allocation2 + $0x1f8] sm:$0xff]  ;;  %v11948_v53 = vld [vmem:[#allocation2 + $0x200] sm:$0xff]  ;;  %866 = vst.msk [vmem:[#allocation2 + $0x229] sm:$0xff] %vm745_vm2, %v721_v41  ;;  %v573_v55 = vadd.f32 %v11694_v7, %v572_v50  ;;  %9691 = vmatprep.mubr.msk.f32.mxu0 %vm745_vm2, %v11944_v51 }
 0x12e   :  { %9982 = vmatprep.mubr.msk.f32.mxu1 %vm745_vm2, %v11946_v52  ;;  %v724_v60 = vmax.f32 %v578_v44, 0.0  ;;  %9692 = vmatmul.mubr.msk.f32.gmra.mrb[102].mxu0 %vm745_vm2, %v11956_v58 }
 0x12f   :  { %9983 = vmatmul.mubr.msk.f32.gmra.mrb[4].mxu1 %vm745_vm2, %v11948_v53  ;;  %v723_v61 = vmax.f32 %v573_v55, 0.0  ;;  %v9604_v63 = vpop.f32.mrb[44].mxu0  ;;  %v11976_v23 = vld [vmem:[#allocation2 + $0x219] sm:$0xff] }
 0x130   :  { %869 = vst.msk [vmem:[#allocation2 + $0x249] sm:$0xff] %vm745_vm2, %v724_v60  ;;  %v588_v1 = vadd.f32 %v9604_v63, %v11694_v7  ;;  %v582_v2 = vpop.f32.mrb[45].mxu0  ;;  %v11964_v4 = vld [vmem:[#allocation2 + $0x211] sm:$0xff] }
 0x131   :  { %v11966_v14 = vld [vmem:[#allocation2 + $0x210] sm:$0xff]  ;;  %v11968_v21 = vld [vmem:[#allocation2 + $0x218] sm:$0xff]  ;;  %868 = vst.msk [vmem:[#allocation2 + $0x241] sm:$0xff] %vm745_vm2, %v723_v61  ;;  %v583_v22 = vadd.f32 %v11694_v7, %v582_v2  ;;  %9694 = vmatprep.mubr.msk.f32.mxu0 %vm745_vm2, %v11964_v4 }
 0x132   :  { %9985 = vmatprep.mubr.msk.f32.mxu1 %vm745_vm2, %v11966_v14  ;;  %v726_v24 = vmax.f32 %v588_v1, 0.0  ;;  %9695 = vmatmul.mubr.msk.f32.gmra.mrb[104].mxu0 %vm745_vm2, %v11976_v23 }
 0x133   :  { %9986 = vmatmul.mubr.msk.f32.gmra.mrb[6].mxu1 %vm745_vm2, %v11968_v21  ;;  %v725_v26 = vmax.f32 %v583_v22, 0.0  ;;  %v9607_v36 = vpop.f32.mrb[46].mxu0  ;;  %v11996_v60 = vld [vmem:[#allocation2 + $0x231] sm:$0xff] }
 0x134   :  { %871 = vst.msk [vmem:[#allocation2 + $0x261] sm:$0xff] %vm745_vm2, %v726_v24  ;;  %v598_v39 = vadd.f32 %v9607_v36, %v11694_v7  ;;  %v592_v41 = vpop.f32.mrb[47].mxu0  ;;  %v11984_v43 = vld [vmem:[#allocation2 + $0x229] sm:$0xff]  ;;  %13649 = vst [vmem:[#allocation6_spill] sm:$0xff] %v11996_v60 }
 0x135   :  { %v11986_v44 = vld [vmem:[#allocation2 + $0x228] sm:$0xff]  ;;  %v11988_v50 = vld [vmem:[#allocation2 + $0x230] sm:$0xff]  ;;  %870 = vst.msk [vmem:[#allocation2 + $0x259] sm:$0xff] %vm745_vm2, %v725_v26  ;;  %v593_v55 = vadd.f32 %v11694_v7, %v592_v41  ;;  %9697 = vmatprep.mubr.msk.f32.mxu0 %vm745_vm2, %v11984_v43 }
 0x136   :  { %9988 = vmatprep.mubr.msk.f32.mxu1 %vm745_vm2, %v11986_v44  ;;  %v728_v61 = vmax.f32 %v598_v39, 0.0  ;;  %9698 = vmatmul.mubr.msk.f32.gmra.mrb[106].mxu0 %vm745_vm2, %v11996_v60 }
 0x137   :  { %9989 = vmatmul.mubr.msk.f32.gmra.mrb[8].mxu1 %vm745_vm2, %v11988_v50  ;;  %v727_v63 = vmax.f32 %v593_v55, 0.0  ;;  %v9610_v1 = vpop.f32.mrb[48].mxu0  ;;  %v12016_v41 = vld [vmem:[#allocation2 + $0x249] sm:$0xff] }
 0x138   :  { %873 = vst.msk [vmem:[#allocation2 + $0x279] sm:$0xff] %vm745_vm2, %v728_v61  ;;  %v608_v2 = vadd.f32 %v9610_v1, %v11694_v7  ;;  %v602_v22 = vpop.f32.mrb[49].mxu0  ;;  %v12004_v24 = vld [vmem:[#allocation2 + $0x241] sm:$0xff]  ;;  %13653 = vst [vmem:[#allocation10_spill] sm:$0xff] %v12016_v41 }
 0x139   :  { %13650 = vst [vmem:[#allocation7_spill] sm:$0xff] %v12004_v24  ;;  %v12006_v26 = vld [vmem:[#allocation2 + $0x240] sm:$0xff]  ;;  %v12008_v36 = vld [vmem:[#allocation2 + $0x248] sm:$0xff]  ;;  %872 = vst.msk [vmem:[#allocation2 + $0x271] sm:$0xff] %vm745_vm2, %v727_v63  ;;  %v603_v39 = vadd.f32 %v11694_v7, %v602_v22  ;;  %9700 = vmatprep.mubr.msk.f32.mxu0 %vm745_vm2, %v12004_v24 }
 0x13a   :  { %13651 = vst [vmem:[#allocation8_spill] sm:$0xff] %v12006_v26  ;;  %13652 = vst [vmem:[#allocation9_spill] sm:$0xff] %v12008_v36  ;;  %9991 = vmatprep.mubr.msk.f32.mxu1 %vm745_vm2, %v12006_v26  ;;  %v730_v55 = vmax.f32 %v608_v2, 0.0  ;;  %9701 = vmatmul.mubr.msk.f32.gmra.mrb[108].mxu0 %vm745_vm2, %v12016_v41 }
 0x13b   :  { %9992 = vmatmul.mubr.msk.f32.gmra.mrb[10].mxu1 %vm745_vm2, %v12008_v36  ;;  %v729_v61 = vmax.f32 %v603_v39, 0.0  ;;  %v9613_v1 = vpop.f32.mrb[50].mxu0  ;;  %v12036_v39 = vld [vmem:[#allocation2 + $0x261] sm:$0xff] }
 0x13c   :  { %875 = vst.msk [vmem:[#allocation2 + $0x291] sm:$0xff] %vm745_vm2, %v730_v55  ;;  %v618_v63 = vadd.f32 %v9613_v1, %v11694_v7  ;;  %v612_v22 = vpop.f32.mrb[51].mxu0  ;;  %v12024_v24 = vld [vmem:[#allocation2 + $0x259] sm:$0xff]  ;;  %13657 = vst [vmem:[#allocation14_spill] sm:$0xff] %v12036_v39 }
 0x13d   :  { %13654 = vst [vmem:[#allocation11_spill] sm:$0xff] %v12024_v24  ;;  %v12026_v60 = vld [vmem:[#allocation2 + $0x258] sm:$0xff]  ;;  %v12028_v26 = vld [vmem:[#allocation2 + $0x260] sm:$0xff]  ;;  %874 = vst.msk [vmem:[#allocation2 + $0x289] sm:$0xff] %vm745_vm2, %v729_v61  ;;  %v613_v2 = vadd.f32 %v11694_v7, %v612_v22  ;;  %9703 = vmatprep.mubr.msk.f32.mxu0 %vm745_vm2, %v12024_v24 }
 0x13e   :  { %13655 = vst [vmem:[#allocation12_spill] sm:$0xff] %v12026_v60  ;;  %13656 = vst [vmem:[#allocation13_spill] sm:$0xff] %v12028_v26  ;;  %9994 = vmatprep.mubr.msk.f32.mxu1 %vm745_vm2, %v12026_v60  ;;  %v732_v55 = vmax.f32 %v618_v63, 0.0  ;;  %9704 = vmatmul.mubr.msk.f32.gmra.mrb[110].mxu0 %vm745_vm2, %v12036_v39 }
 0x13f   :  { %9995 = vmatmul.mubr.msk.f32.gmra.mrb[12].mxu1 %vm745_vm2, %v12028_v26  ;;  %v731_v1 = vmax.f32 %v613_v2, 0.0  ;;  %v9616_v41 = vpop.f32.mrb[52].mxu0  ;;  %v12056_v2 = vld [vmem:[#allocation2 + $0x279] sm:$0xff] }
 0x140   :  { %877 = vst.msk [vmem:[#allocation2 + $0x2a9] sm:$0xff] %vm745_vm2, %v732_v55  ;;  %v628_v61 = vadd.f32 %v9616_v41, %v11694_v7  ;;  %v622_v22 = vpop.f32.mrb[53].mxu0  ;;  %v12044_v24 = vld [vmem:[#allocation2 + $0x271] sm:$0xff]  ;;  %13661 = vst [vmem:[#allocation18_spill] sm:$0xff] %v12056_v2 }
 0x141   :  { %13658 = vst [vmem:[#allocation15_spill] sm:$0xff] %v12044_v24  ;;  %v12046_v36 = vld [vmem:[#allocation2 + $0x270] sm:$0xff]  ;;  %v12048_v60 = vld [vmem:[#allocation2 + $0x278] sm:$0xff]  ;;  %876 = vst.msk [vmem:[#allocation2 + $0x2a1] sm:$0xff] %vm745_vm2, %v731_v1  ;;  %v623_v63 = vadd.f32 %v11694_v7, %v622_v22  ;;  %9706 = vmatprep.mubr.msk.f32.mxu0 %vm745_vm2, %v12044_v24 }
 0x142   :  { %13659 = vst [vmem:[#allocation16_spill] sm:$0xff] %v12046_v36  ;;  %13660 = vst [vmem:[#allocation17_spill] sm:$0xff] %v12048_v60  ;;  %9997 = vmatprep.mubr.msk.f32.mxu1 %vm745_vm2, %v12046_v36  ;;  %v734_v41 = vmax.f32 %v628_v61, 0.0  ;;  %9707 = vmatmul.mubr.msk.f32.gmra.mrb[112].mxu0 %vm745_vm2, %v12056_v2 }
 0x143   :  { %9998 = vmatmul.mubr.msk.f32.gmra.mrb[14].mxu1 %vm745_vm2, %v12048_v60  ;;  %v733_v55 = vmax.f32 %v623_v63, 0.0  ;;  %v9619_v39 = vpop.f32.mrb[54].mxu0  ;;  %v12076_v63 = vld [vmem:[#allocation2 + $0x291] sm:$0xff] }
 0x144   :  { %879 = vst.msk [vmem:[#allocation2 + $0x2c1] sm:$0xff] %vm745_vm2, %v734_v41  ;;  %v638_v1 = vadd.f32 %v9619_v39, %v11694_v7  ;;  %v632_v22 = vpop.f32.mrb[55].mxu0  ;;  %v12064_v24 = vld [vmem:[#allocation2 + $0x289] sm:$0xff]  ;;  %13665 = vst [vmem:[#allocation22_spill] sm:$0xff] %v12076_v63 }
 0x145   :  { %13662 = vst [vmem:[#allocation19_spill] sm:$0xff] %v12064_v24  ;;  %v12066_v26 = vld [vmem:[#allocation2 + $0x288] sm:$0xff]  ;;  %v12068_v36 = vld [vmem:[#allocation2 + $0x290] sm:$0xff]  ;;  %878 = vst.msk [vmem:[#allocation2 + $0x2b9] sm:$0xff] %vm745_vm2, %v733_v55  ;;  %v633_v61 = vadd.f32 %v11694_v7, %v632_v22  ;;  %9709 = vmatprep.mubr.msk.f32.mxu0 %vm745_vm2, %v12064_v24 }
 0x146   :  { %13663 = vst [vmem:[#allocation20_spill] sm:$0xff] %v12066_v26  ;;  %13664 = vst [vmem:[#allocation21_spill] sm:$0xff] %v12068_v36  ;;  %10000 = vmatprep.mubr.msk.f32.mxu1 %vm745_vm2, %v12066_v26  ;;  %v736_v39 = vmax.f32 %v638_v1, 0.0  ;;  %9710 = vmatmul.mubr.msk.f32.gmra.mrb[114].mxu0 %vm745_vm2, %v12076_v63 }
 0x147   :  { %10001 = vmatmul.mubr.msk.f32.gmra.mrb[16].mxu1 %vm745_vm2, %v12068_v36  ;;  %v735_v41 = vmax.f32 %v633_v61, 0.0  ;;  %v9622_v2 = vpop.f32.mrb[56].mxu0  ;;  %v12096_v61 = vld [vmem:[#allocation2 + $0x2a9] sm:$0xff] }
 0x148   :  { %881 = vst.msk [vmem:[#allocation2 + $0x2d9] sm:$0xff] %vm745_vm2, %v736_v39  ;;  %v648_v55 = vadd.f32 %v9622_v2, %v11694_v7  ;;  %v642_v22 = vpop.f32.mrb[57].mxu0  ;;  %v12084_v24 = vld [vmem:[#allocation2 + $0x2a1] sm:$0xff]  ;;  %13669 = vst [vmem:[#allocation26_spill] sm:$0xff] %v12096_v61 }
 0x149   :  { %13666 = vst [vmem:[#allocation23_spill] sm:$0xff] %v12084_v24  ;;  %v12086_v60 = vld [vmem:[#allocation2 + $0x2a0] sm:$0xff]  ;;  %v12088_v26 = vld [vmem:[#allocation2 + $0x2a8] sm:$0xff]  ;;  %880 = vst.msk [vmem:[#allocation2 + $0x2d1] sm:$0xff] %vm745_vm2, %v735_v41  ;;  %v643_v1 = vadd.f32 %v11694_v7, %v642_v22  ;;  %9712 = vmatprep.mubr.msk.f32.mxu0 %vm745_vm2, %v12084_v24 }
 0x14a   :  { %13667 = vst [vmem:[#allocation24_spill] sm:$0xff] %v12086_v60  ;;  %13668 = vst [vmem:[#allocation25_spill] sm:$0xff] %v12088_v26  ;;  %10003 = vmatprep.mubr.msk.f32.mxu1 %vm745_vm2, %v12086_v60  ;;  %v738_v2 = vmax.f32 %v648_v55, 0.0  ;;  %9713 = vmatmul.mubr.msk.f32.gmra.mrb[116].mxu0 %vm745_vm2, %v12096_v61 }
 0x14b   :  { %10004 = vmatmul.mubr.msk.f32.gmra.mrb[18].mxu1 %vm745_vm2, %v12088_v26  ;;  %v737_v39 = vmax.f32 %v643_v1, 0.0  ;;  %v9625_v63 = vpop.f32.mrb[58].mxu0  ;;  %v12116_v1 = vld [vmem:[#allocation2 + $0x2c1] sm:$0xff] }
 0x14c   :  { %883 = vst.msk [vmem:[#allocation2 + $0x2f1] sm:$0xff] %vm745_vm2, %v738_v2  ;;  %v658_v41 = vadd.f32 %v9625_v63, %v11694_v7  ;;  %v652_v22 = vpop.f32.mrb[59].mxu0  ;;  %v12104_v24 = vld [vmem:[#allocation2 + $0x2b9] sm:$0xff]  ;;  %13673 = vst [vmem:[#allocation30_spill] sm:$0xff] %v12116_v1 }
 0x14d   :  { %13670 = vst [vmem:[#allocation27_spill] sm:$0xff] %v12104_v24  ;;  %v12106_v36 = vld [vmem:[#allocation2 + $0x2b8] sm:$0xff]  ;;  %v12108_v60 = vld [vmem:[#allocation2 + $0x2c0] sm:$0xff]  ;;  %882 = vst.msk [vmem:[#allocation2 + $0x2e9] sm:$0xff] %vm745_vm2, %v737_v39  ;;  %v653_v55 = vadd.f32 %v11694_v7, %v652_v22  ;;  %9715 = vmatprep.mubr.msk.f32.mxu0 %vm745_vm2, %v12104_v24 }
 0x14e   :  { %13671 = vst [vmem:[#allocation28_spill] sm:$0xff] %v12106_v36  ;;  %13672 = vst [vmem:[#allocation29_spill] sm:$0xff] %v12108_v60  ;;  %10006 = vmatprep.mubr.msk.f32.mxu1 %vm745_vm2, %v12106_v36  ;;  %v740_v63 = vmax.f32 %v658_v41, 0.0  ;;  %9716 = vmatmul.mubr.msk.f32.gmra.mrb[118].mxu0 %vm745_vm2, %v12116_v1 }
 0x14f   :  { %10007 = vmatmul.mubr.msk.f32.gmra.mrb[20].mxu1 %vm745_vm2, %v12108_v60  ;;  %v739_v2 = vmax.f32 %v653_v55, 0.0  ;;  %v9628_v61 = vpop.f32.mrb[60].mxu0  ;;  %v12136_v55 = vld [vmem:[#allocation2 + $0x2d9] sm:$0xff] }
 0x150   :  { %885 = vst.msk [vmem:[#allocation2 + $0x309] sm:$0xff] %vm745_vm2, %v740_v63  ;;  %v668_v39 = vadd.f32 %v9628_v61, %v11694_v7  ;;  %v662_v22 = vpop.f32.mrb[61].mxu0  ;;  %v12124_v24 = vld [vmem:[#allocation2 + $0x2d1] sm:$0xff] }
 0x151   :  { %13674 = vst [vmem:[#allocation31_spill] sm:$0xff] %v12124_v24  ;;  %v12126_v26 = vld [vmem:[#allocation2 + $0x2d0] sm:$0xff]  ;;  %v12128_v36 = vld [vmem:[#allocation2 + $0x2d8] sm:$0xff]  ;;  %884 = vst.msk [vmem:[#allocation2 + $0x301] sm:$0xff] %vm745_vm2, %v739_v2  ;;  %v663_v41 = vadd.f32 %v11694_v7, %v662_v22  ;;  %9718 = vmatprep.mubr.msk.f32.mxu0 %vm745_vm2, %v12124_v24 }
 0x152   :  { %13675 = vst [vmem:[#allocation32_spill] sm:$0xff] %v12126_v26  ;;  %10009 = vmatprep.mubr.msk.f32.mxu1 %vm745_vm2, %v12126_v26  ;;  %v742_v61 = vmax.f32 %v668_v39, 0.0  ;;  %9719 = vmatmul.mubr.msk.f32.gmra.mrb[120].mxu0 %vm745_vm2, %v12136_v55 }
 0x153   :  { %10010 = vmatmul.mubr.msk.f32.gmra.mrb[22].mxu1 %vm745_vm2, %v12128_v36  ;;  %v741_v63 = vmax.f32 %v663_v41, 0.0  ;;  %v9631_v1 = vpop.f32.mrb[62].mxu0  ;;  %v12156_v41 = vld [vmem:[#allocation2 + $0x2f1] sm:$0xff] }
 0x154   :  { %887 = vst.msk [vmem:[#allocation2 + $0x321] sm:$0xff] %vm745_vm2, %v742_v61  ;;  %v678_v2 = vadd.f32 %v9631_v1, %v11694_v7  ;;  %v672_v22 = vpop.f32.mrb[63].mxu0  ;;  %v12144_v24 = vld [vmem:[#allocation2 + $0x2e9] sm:$0xff]  ;;  %13676 = vst [vmem:[#allocation33_spill] sm:$0xff] %v12156_v41 }
 0x155   :  { %v12146_v60 = vld [vmem:[#allocation2 + $0x2e8] sm:$0xff]  ;;  %v12148_v26 = vld [vmem:[#allocation2 + $0x2f0] sm:$0xff]  ;;  %886 = vst.msk [vmem:[#allocation2 + $0x319] sm:$0xff] %vm745_vm2, %v741_v63  ;;  %v673_v39 = vadd.f32 %v11694_v7, %v672_v22  ;;  %9721 = vmatprep.mubr.msk.f32.mxu0 %vm745_vm2, %v12144_v24 }
 0x156   :  { %10012 = vmatprep.mubr.msk.f32.mxu1 %vm745_vm2, %v12146_v60  ;;  %v744_v1 = vmax.f32 %v678_v2, 0.0  ;;  %9722 = vmatmul.mubr.msk.f32.gmra.mrb[122].mxu0 %vm745_vm2, %v12156_v41 }
 0x157   :  { %10013 = vmatmul.mubr.msk.f32.gmra.mrb[24].mxu1 %vm745_vm2, %v12148_v26  ;;  %v743_v61 = vmax.f32 %v673_v39, 0.0  ;;  %v12174_v2 = vld [vmem:[#allocation2 + $0x309] sm:$0xff]  ;;  %v890_v39 = vld [vmem:[#allocation2] sm:$0xff] }
 0x158   :  { %889 = vst.msk [vmem:[#allocation2 + $0x339] sm:$0xff] %vm745_vm2, %v744_v1  ;;  %v12163_v63 = vld [vmem:[#allocation2 + $0x301] sm:$0xff]  ;;  %13680 = vst [vmem:[#allocation37_spill] sm:$0xff] %v12174_v2 }
 0x159   :  { %13677 = vst [vmem:[#allocation34_spill] sm:$0xff] %v12163_v63  ;;  %v12165_v7 = vld [vmem:[#allocation2 + $0x300] sm:$0xff]  ;;  %v12167_v22 = vld [vmem:[#allocation2 + $0x308] sm:$0xff]  ;;  %888 = vst.msk [vmem:[#allocation2 + $0x331] sm:$0xff] %vm745_vm2, %v743_v61  ;;  %9724 = vmatprep.mubr.msk.f32.mxu0 %vm745_vm2, %v12163_v63 }
 0x15a   :  { %13678 = vst [vmem:[#allocation35_spill] sm:$0xff] %v12165_v7  ;;  %13679 = vst [vmem:[#allocation36_spill] sm:$0xff] %v12167_v22  ;;  %10015 = vmatprep.mubr.msk.f32.mxu1 %vm745_vm2, %v12165_v7  ;;  %9725 = vmatmul.mubr.msk.f32.gmra.mrb[124].mxu0 %vm745_vm2, %v12174_v2  ;;  %v891_v2 = vld [vmem:[#allocation2 + $0x8] sm:$0xff] }
 0x15b   :  { %10016 = vmatmul.mubr.msk.f32.gmra.mrb[26].mxu1 %vm745_vm2, %v12167_v22  ;;  %v12190_v63 = vld [vmem:[#allocation2 + $0x321] sm:$0xff]  ;;  %v2238_v22 = vld [vmem:[%s13611_s5 + $0x10] sm:$0xff] }
 0x15c   :  { %v12180_v1 = vld [vmem:[#allocation2 + $0x319] sm:$0xff]  ;;  %13683 = vst [vmem:[#allocation40_spill] sm:$0xff] %v12190_v63  ;;  %9828 = vmatprep.subr.mxu0 %v2238_v22 }
 0x15d   :  { %13681 = vst [vmem:[#allocation38_spill] sm:$0xff] %v12180_v1  ;;  %v12182_v41 = vld [vmem:[#allocation2 + $0x318] sm:$0xff]  ;;  %v12184_v61 = vld [vmem:[#allocation2 + $0x320] sm:$0xff]  ;;  %9727 = vmatprep.mubr.msk.f32.mxu0 %vm745_vm2, %v12180_v1 }
 0x15e   :  { %13682 = vst [vmem:[#allocation39_spill] sm:$0xff] %v12184_v61  ;;  %10018 = vmatprep.mubr.msk.f32.mxu1 %vm745_vm2, %v12182_v41  ;;  %9728 = vmatmul.mubr.msk.f32.gmra.mrb[126].mxu0 %vm745_vm2, %v12190_v63  ;;  %v892_v63 = vld [vmem:[#allocation2 + $0x18] sm:$0xff] }
 0x15f   :  { %10019 = vmatmul.mubr.msk.f32.gmra.mrb[28].mxu1 %vm745_vm2, %v12184_v61  ;;  %9732 = vmatprep.mubr.msk.f32.mxu0 %vm745_vm2, %v890_v39  ;;  %v893_v39 = vld [vmem:[#allocation2 + $0x20] sm:$0xff]  ;;  %v12209_v61 = vld [vmem:[%s13611_s5 + $0x30] sm:$0xff] }
 0x160   :  { %v2942_v7 = vld [vmem:[#allocation2 + $0x330] sm:$0xff]  ;;  %v2943_v1 = vld [vmem:[#allocation2 + $0x338] sm:$0xff] }
 0x161   :  { %10021 = vmatprep.mubr.msk.f32.mxu1 %vm745_vm2, %v2942_v7  ;;  %v12215_v7 = vld [vmem:[#allocation2 + $0x30] sm:$0xff] }
 0x162   :  { %9733 = vmatmul.mubr.msk.f32.vlgmr.msra.gmra.mrb[64].mxu0 %vm745_vm2, %v891_v2  ;;  %v13706_v2 = vld [vmem:[#allocation27_spill] sm:$0xff] }
 0x163   :  { %10022 = vmatmul.mubr.msk.f32.gmra.mrb[30].mxu1 %vm745_vm2, %v2943_v1  ;;  %9735 = vmatprep.mubr.msk.f32.mxu0 %vm745_vm2, %v892_v63  ;;  %v12309_v63 = vld [vmem:[#allocation2 + $0x189] sm:$0xff]  ;;  %v13707_v1 = vld [vmem:[#allocation29_spill] sm:$0xff] }
 0x164   :  { %10026 = vmatprep.mubr.msk.f32.mxu1 %vm745_vm2, %v11711_v30  ;;  %9829 = vmatpush3.msra.mxu0 %v2238_v22  ;;  %v895_v30 = vld [vmem:[#allocation2 + $0x38] sm:$0xff]  ;;  %v13705_v22 = vld [vmem:[#allocation28_spill] sm:$0xff] }
 0x165   :  { %9926 = vmatprep.subr.mxu0 %v11681_v5  ;;  %v896_v5 = vld [vmem:[#allocation2 + $0x48] sm:$0xff] }
 0x166   :  { %9736 = vmatmul.mubr.msk.f32.gmra.mrb[66].mxu0 %vm745_vm2, %v893_v39  ;;  %v13708_v39 = vld [vmem:[#allocation30_spill] sm:$0xff] }
 0x167   :  { %10027 = vmatmul.mubr.msk.f32.vlgmr.msra.gmra.mrb[32].mxu1 %vm745_vm2, %v11717_v32  ;;  %9738 = vmatprep.mubr.msk.f32.mxu0 %vm745_vm2, %v12215_v7  ;;  %v897_v32 = vld [vmem:[#allocation2 + $0x50] sm:$0xff] }
 0x168   :  { %10123 = vmatpush3.msra.mxu1 %v11914_v18  ;;  %10029 = vmatprep.mubr.msk.f32.mxu1 %vm745_vm2, %v11723_v38  ;;  %v898_v38 = vld [vmem:[#allocation2 + $0x60] sm:$0xff]  ;;  %v899_v18 = vld [vmem:[#allocation2 + $0x68] sm:$0xff] }
 0x169   :  { %10220 = vmatprep.subr.mxu1 %v12209_v61 }
 0x16a   :  { %9739 = vmatmul.mubr.msk.f32.gmra.mrb[68].mxu0 %vm745_vm2, %v895_v30  ;;  %v13709_v30 = vld [vmem:[#allocation32_spill] sm:$0xff] }
 0x16b   :  { %10030 = vmatmul.mubr.msk.f32.gmra.mrb[34].mxu1 %vm745_vm2, %v11729_v40  ;;  %9741 = vmatprep.mubr.msk.f32.mxu0 %vm745_vm2, %v896_v5  ;;  %v900_v40 = vld [vmem:[#allocation2 + $0x78] sm:$0xff]  ;;  %v13710_v5 = vld [vmem:[#allocation31_spill] sm:$0xff] }
 0x16c   :  { %10032 = vmatprep.mubr.msk.f32.mxu1 %vm745_vm2, %v11735_v46  ;;  %v901_v46 = vld [vmem:[#allocation2 + $0x80] sm:$0xff] }
 0x16e   :  { %9742 = vmatmul.mubr.msk.f32.gmra.mrb[70].mxu0 %vm745_vm2, %v897_v32  ;;  %v13711_v32 = vld [vmem:[#allocation33_spill] sm:$0xff] }
 0x16f   :  { %10033 = vmatmul.mubr.msk.f32.gmra.mrb[36].mxu1 %vm745_vm2, %v11741_v48  ;;  %9744 = vmatprep.mubr.msk.f32.mxu0 %vm745_vm2, %v898_v38  ;;  %v902_v48 = vld [vmem:[#allocation2 + $0x90] sm:$0xff]  ;;  %v13712_v38 = vld [vmem:[#allocation35_spill] sm:$0xff] }
 0x170   :  { %10035 = vmatprep.mubr.msk.f32.mxu1 %vm745_vm2, %v11747_v54  ;;  %v903_v54 = vld [vmem:[#allocation2 + $0x98] sm:$0xff] }
 0x172   :  { %9745 = vmatmul.mubr.msk.f32.gmra.mrb[72].mxu0 %vm745_vm2, %v899_v18  ;;  %v13713_v18 = vld [vmem:[#allocation34_spill] sm:$0xff] }
 0x173   :  { %10036 = vmatmul.mubr.msk.f32.gmra.mrb[38].mxu1 %vm745_vm2, %v11753_v56  ;;  %9747 = vmatprep.mubr.msk.f32.mxu0 %vm745_vm2, %v900_v40  ;;  %v904_v56 = vld [vmem:[#allocation2 + $0xa8] sm:$0xff]  ;;  %v13718_v40 = vld [vmem:[#allocation40_spill] sm:$0xff] }
 0x174   :  { %10038 = vmatprep.mubr.msk.f32.mxu1 %vm745_vm2, %v11759_v62  ;;  %v905_v62 = vld [vmem:[#allocation2 + $0xb0] sm:$0xff] }
 0x176   :  { %9748 = vmatmul.mubr.msk.f32.gmra.mrb[74].mxu0 %vm745_vm2, %v901_v46  ;;  %v3648_v46 = vld [vmem:[#allocation2 + $0x331] sm:$0xff] }
 0x177   :  { %10039 = vmatmul.mubr.msk.f32.gmra.mrb[40].mxu1 %vm745_vm2, %v11765_v0  ;;  %9750 = vmatprep.mubr.msk.f32.mxu0 %vm745_vm2, %v902_v48  ;;  %v906_v0 = vld [vmem:[#allocation2 + $0xc0] sm:$0xff]  ;;  %v2175_v48 = vld [vmem:[#allocation2 + $0xa] sm:$0xff] }
 0x178   :  { %10041 = vmatprep.mubr.msk.f32.mxu1 %vm745_vm2, %v11771_v9  ;;  %v907_v9 = vld [vmem:[#allocation2 + $0xc8] sm:$0xff] }
 0x17a   :  { %9751 = vmatmul.mubr.msk.f32.gmra.mrb[76].mxu0 %vm745_vm2, %v903_v54  ;;  %v3649_v54 = vld [vmem:[#allocation2 + $0x339] sm:$0xff] }
 0x17b   :  { %10042 = vmatmul.mubr.msk.f32.gmra.mrb[42].mxu1 %vm745_vm2, %v11777_v11  ;;  %9753 = vmatprep.mubr.msk.f32.mxu0 %vm745_vm2, %v904_v56  ;;  %v908_v11 = vld [vmem:[#allocation2 + $0xd8] sm:$0xff] }
 0x17c   :  { %10044 = vmatprep.mubr.msk.f32.mxu1 %vm745_vm2, %v11783_v17  ;;  %v909_v17 = vld [vmem:[#allocation2 + $0xe0] sm:$0xff]  ;;  %v11131_v56 = vld [vmem:[%s13611_s5 + $0x18] sm:$0xff] }
 0x17e   :  { %9754 = vmatmul.mubr.msk.f32.gmra.mrb[78].mxu0 %vm745_vm2, %v905_v62  ;;  %v2177_v62 = vld [vmem:[#allocation2 + $0x22] sm:$0xff] }
 0x17f   :  { %10045 = vmatmul.mubr.msk.f32.gmra.mrb[44].mxu1 %vm745_vm2, %v11789_v19  ;;  %9756 = vmatprep.mubr.msk.f32.mxu0 %vm745_vm2, %v906_v0  ;;  %v910_v19 = vld [vmem:[#allocation2 + $0xf0] sm:$0xff]  ;;  %v12446_v0 = vld [vmem:[%s13611_s5 + $0x38] sm:$0xff] }
 0x180   :  { %10047 = vmatprep.mubr.msk.f32.mxu1 %vm745_vm2, %v11795_v25  ;;  %v911_v25 = vld [vmem:[#allocation2 + $0xf8] sm:$0xff] }
 0x182   :  { %9757 = vmatmul.mubr.msk.f32.gmra.mrb[80].mxu0 %vm745_vm2, %v907_v9  ;;  %v2178_v9 = vld [vmem:[#allocation2 + $0x32] sm:$0xff] }
 0x183   :  { %10048 = vmatmul.mubr.msk.f32.gmra.mrb[46].mxu1 %vm745_vm2, %v11801_v27  ;;  %9759 = vmatprep.mubr.msk.f32.mxu0 %vm745_vm2, %v908_v11  ;;  %v912_v27 = vld [vmem:[#allocation2 + $0x108] sm:$0xff]  ;;  %v2179_v11 = vld [vmem:[#allocation2 + $0x3a] sm:$0xff] }
 0x184   :  { %10050 = vmatprep.mubr.msk.f32.mxu1 %vm745_vm2, %v11807_v35  ;;  %v913_v35 = vld [vmem:[#allocation2 + $0x110] sm:$0xff] }
 0x186   :  { %9760 = vmatmul.mubr.msk.f32.gmra.mrb[82].mxu0 %vm745_vm2, %v909_v17  ;;  %v2180_v17 = vld [vmem:[#allocation2 + $0x4a] sm:$0xff] }
 0x187   :  { %10051 = vmatmul.mubr.msk.f32.gmra.mrb[48].mxu1 %vm745_vm2, %v11813_v37  ;;  %9762 = vmatprep.mubr.msk.f32.mxu0 %vm745_vm2, %v910_v19  ;;  %v914_v37 = vld [vmem:[#allocation2 + $0x120] sm:$0xff]  ;;  %v2181_v19 = vld [vmem:[#allocation2 + $0x52] sm:$0xff] }
 0x188   :  { %10053 = vmatprep.mubr.msk.f32.mxu1 %vm745_vm2, %v11819_v45  ;;  %v915_v45 = vld [vmem:[#allocation2 + $0x128] sm:$0xff] }
 0x18a   :  { %9763 = vmatmul.mubr.msk.f32.gmra.mrb[84].mxu0 %vm745_vm2, %v911_v25  ;;  %v2183_v25 = vld [vmem:[#allocation2 + $0x6a] sm:$0xff] }
 0x18b   :  { %10054 = vmatmul.mubr.msk.f32.gmra.mrb[50].mxu1 %vm745_vm2, %v11825_v49  ;;  %9765 = vmatprep.mubr.msk.f32.mxu0 %vm745_vm2, %v912_v27  ;;  %v916_v49 = vld [vmem:[#allocation2 + $0x138] sm:$0xff] }
 0x18c   :  { %10056 = vmatprep.mubr.msk.f32.mxu1 %vm745_vm2, %v11831_v57  ;;  %v917_v57 = vld [vmem:[#allocation2 + $0x140] sm:$0xff] }
 0x18d   :  { %v2184_v27 = vld [vmem:[#allocation2 + $0x7a] sm:$0xff] }
 0x18e   :  { %9766 = vmatmul.mubr.msk.f32.gmra.mrb[86].mxu0 %vm745_vm2, %v913_v35  ;;  %v2185_v35 = vld [vmem:[#allocation2 + $0x82] sm:$0xff] }
 0x18f   :  { %10057 = vmatmul.mubr.msk.f32.gmra.mrb[52].mxu1 %vm745_vm2, %v11837_v59  ;;  %9768 = vmatprep.mubr.msk.f32.mxu0 %vm745_vm2, %v914_v37  ;;  %v918_v59 = vld [vmem:[#allocation2 + $0x150] sm:$0xff] }
 0x190   :  { %10059 = vmatprep.mubr.msk.f32.mxu1 %vm745_vm2, %v11843_v3  ;;  %v919_v3 = vld [vmem:[#allocation2 + $0x158] sm:$0xff] }
 0x191   :  { %v2186_v37 = vld [vmem:[#allocation2 + $0x92] sm:$0xff] }
 0x192   :  { %9769 = vmatmul.mubr.msk.f32.gmra.mrb[88].mxu0 %vm745_vm2, %v915_v45  ;;  %v2187_v45 = vld [vmem:[#allocation2 + $0x9a] sm:$0xff] }
 0x193   :  { %10060 = vmatmul.mubr.msk.f32.gmra.mrb[54].mxu1 %vm745_vm2, %v11849_v8  ;;  %9771 = vmatprep.mubr.msk.f32.mxu0 %vm745_vm2, %v916_v49  ;;  %v920_v8 = vld [vmem:[#allocation2 + $0x168] sm:$0xff] }
 0x194   :  { %10062 = vmatprep.mubr.msk.f32.mxu1 %vm745_vm2, %v11855_v16  ;;  %v922_v16 = vld [vmem:[#allocation2 + $0x1b0] sm:$0xff] }
 0x195   :  { %v2188_v49 = vld [vmem:[#allocation2 + $0xaa] sm:$0xff] }
 0x196   :  { %9772 = vmatmul.mubr.msk.f32.gmra.mrb[90].mxu0 %vm745_vm2, %v917_v57  ;;  %v2189_v57 = vld [vmem:[#allocation2 + $0xb2] sm:$0xff] }
 0x197   :  { %10063 = vmatmul.mubr.msk.f32.gmra.mrb[56].mxu1 %vm745_vm2, %v11861_v20  ;;  %9774 = vmatprep.mubr.msk.f32.mxu0 %vm745_vm2, %v918_v59  ;;  %v921_v20 = vld [vmem:[#allocation2 + $0x170] sm:$0xff]  ;;  %v2190_v59 = vld [vmem:[#allocation2 + $0xc2] sm:$0xff] }
 0x198   :  { %10065 = vmatprep.mubr.msk.f32.mxu1 %vm745_vm2, %v11867_v28  ;;  %v12304_v28 = vld [vmem:[#allocation2 + $0x181] sm:$0xff] }
 0x19a   :  { %9775 = vmatmul.mubr.msk.f32.gmra.mrb[92].mxu0 %vm745_vm2, %v919_v3  ;;  %v2191_v3 = vld [vmem:[#allocation2 + $0xca] sm:$0xff] }
 0x19b   :  { %10066 = vmatmul.mubr.msk.f32.gmra.mrb[58].mxu1 %vm745_vm2, %v11873_v31  ;;  %9777 = vmatprep.mubr.msk.f32.mxu0 %vm745_vm2, %v920_v8  ;;  %v923_v31 = vld [vmem:[#allocation2 + $0x1b8] sm:$0xff] }
 0x19c   :  { %10068 = vmatprep.mubr.msk.f32.mxu1 %vm745_vm2, %v11879_v42  ;;  %v13684_v42 = vld [vmem:[#allocation6_spill] sm:$0xff] }
 0x19d   :  { %v2192_v8 = vld [vmem:[#allocation2 + $0xda] sm:$0xff] }
 0x19e   :  { %9778 = vmatmul.mubr.msk.f32.gmra.mrb[94].mxu0 %vm745_vm2, %v921_v20  ;;  %v2194_v20 = vld [vmem:[#allocation2 + $0xf2] sm:$0xff] }
 0x19f   :  { %10069 = vmatmul.mubr.msk.f32.gmra.mrb[60].mxu1 %vm745_vm2, %v11885_v47  ;;  %9780 = vmatprep.mubr.msk.f32.mxu0 %vm745_vm2, %v922_v16  ;;  %v13685_v47 = vld [vmem:[#allocation8_spill] sm:$0xff]  ;;  %v2193_v16 = vld [vmem:[#allocation2 + $0xe2] sm:$0xff] }
 0x1a0   :  { %10071 = vmatprep.mubr.msk.f32.mxu1 %vm745_vm2, %v12304_v28 }
 0x1a2   :  { %9781 = vmatmul.mubr.msk.f32.gmra.mrb[96].mxu0 %vm745_vm2, %v923_v31  ;;  %v2195_v31 = vld [vmem:[#allocation2 + $0xfa] sm:$0xff] }
 0x1a3   :  { %10072 = vmatmul.mubr.msk.f32.gmra.mrb[62].mxu1 %vm745_vm2, %v12309_v63  ;;  %9783 = vmatprep.mubr.msk.f32.mxu0 %vm745_vm2, %v11899_v12  ;;  %v13687_v12 = vld [vmem:[#allocation9_spill] sm:$0xff] }
 0x1a4   :  { %10074 = vmatprep.mubr.msk.f32.mxu1 %vm745_vm2, %v11897_v10  ;;  %v13686_v10 = vld [vmem:[#allocation7_spill] sm:$0xff] }
 0x1a6   :  { %9784 = vmatmul.mubr.msk.f32.gmra.mrb[98].mxu0 %vm745_vm2, %v11901_v13  ;;  %v13688_v13 = vld [vmem:[#allocation10_spill] sm:$0xff] }
 0x1a7   :  { %10075 = vmatmul.mubr.msk.f32.gmra.mrb[0].mxu1 %vm745_vm2, %v11909_v15  ;;  %9786 = vmatprep.mubr.msk.f32.mxu0 %vm745_vm2, %v11925_v33  ;;  %v13689_v15 = vld [vmem:[#allocation12_spill] sm:$0xff]  ;;  %v13691_v33 = vld [vmem:[#allocation13_spill] sm:$0xff] }
 0x1a8   :  { %10077 = vmatprep.mubr.msk.f32.mxu1 %vm745_vm2, %v11923_v29  ;;  %v13690_v29 = vld [vmem:[#allocation11_spill] sm:$0xff] }
 0x1aa   :  { %9787 = vmatmul.mubr.msk.f32.gmra.mrb[100].mxu0 %vm745_vm2, %v11927_v34  ;;  %v13692_v34 = vld [vmem:[#allocation14_spill] sm:$0xff] }
 0x1ab   :  { %10078 = vmatmul.mubr.msk.f32.gmra.mrb[2].mxu1 %vm745_vm2, %v11936_v6  ;;  %9789 = vmatprep.mubr.msk.f32.mxu0 %vm745_vm2, %v11946_v52  ;;  %v13693_v6 = vld [vmem:[#allocation16_spill] sm:$0xff]  ;;  %v13695_v52 = vld [vmem:[#allocation17_spill] sm:$0xff] }
 0x1ac   :  { %10080 = vmatprep.mubr.msk.f32.mxu1 %vm745_vm2, %v11944_v51  ;;  %v13694_v51 = vld [vmem:[#allocation15_spill] sm:$0xff] }
 0x1ae   :  { %9790 = vmatmul.mubr.msk.f32.gmra.mrb[102].mxu0 %vm745_vm2, %v11948_v53  ;;  %v13696_v53 = vld [vmem:[#allocation18_spill] sm:$0xff] }
 0x1af   :  { %10081 = vmatmul.mubr.msk.f32.gmra.mrb[4].mxu1 %vm745_vm2, %v11956_v58  ;;  %9792 = vmatprep.mubr.msk.f32.mxu0 %vm745_vm2, %v11966_v14  ;;  %v13697_v58 = vld [vmem:[#allocation20_spill] sm:$0xff]  ;;  %v13699_v14 = vld [vmem:[#allocation21_spill] sm:$0xff] }
 0x1b0   :  { %10083 = vmatprep.mubr.msk.f32.mxu1 %vm745_vm2, %v11964_v4  ;;  %v13698_v4 = vld [vmem:[#allocation19_spill] sm:$0xff] }
 0x1b2   :  { %9793 = vmatmul.mubr.msk.f32.gmra.mrb[104].mxu0 %vm745_vm2, %v11968_v21  ;;  %v13700_v21 = vld [vmem:[#allocation22_spill] sm:$0xff] }
 0x1b3   :  { %10084 = vmatmul.mubr.msk.f32.gmra.mrb[6].mxu1 %vm745_vm2, %v11976_v23  ;;  %9795 = vmatprep.mubr.msk.f32.mxu0 %vm745_vm2, %v11986_v44  ;;  %v13701_v23 = vld [vmem:[#allocation24_spill] sm:$0xff]  ;;  %v13703_v44 = vld [vmem:[#allocation25_spill] sm:$0xff] }
 0x1b4   :  { %10086 = vmatprep.mubr.msk.f32.mxu1 %vm745_vm2, %v11984_v43  ;;  %v13702_v43 = vld [vmem:[#allocation23_spill] sm:$0xff] }
 0x1b6   :  { %9796 = vmatmul.mubr.msk.f32.gmra.mrb[106].mxu0 %vm745_vm2, %v11988_v50  ;;  %v13704_v50 = vld [vmem:[#allocation26_spill] sm:$0xff] }
 0x1b7   :  { %10087 = vmatmul.mubr.msk.f32.gmra.mrb[8].mxu1 %vm745_vm2, %v13684_v42  ;;  %9798 = vmatprep.mubr.msk.f32.mxu0 %vm745_vm2, %v13685_v47  ;;  %v2196_v42 = vld [vmem:[#allocation2 + $0x10a] sm:$0xff]  ;;  %v2197_v47 = vld [vmem:[#allocation2 + $0x112] sm:$0xff] }
 0x1b8   :  { %10089 = vmatprep.mubr.msk.f32.mxu1 %vm745_vm2, %v13686_v10  ;;  %v2198_v10 = vld [vmem:[#allocation2 + $0x122] sm:$0xff] }
 0x1ba   :  { %9799 = vmatmul.mubr.msk.f32.gmra.mrb[108].mxu0 %vm745_vm2, %v13687_v12  ;;  %v2199_v12 = vld [vmem:[#allocation2 + $0x12a] sm:$0xff] }
 0x1bb   :  { %10090 = vmatmul.mubr.msk.f32.gmra.mrb[10].mxu1 %vm745_vm2, %v13688_v13  ;;  %9801 = vmatprep.mubr.msk.f32.mxu0 %vm745_vm2, %v13689_v15  ;;  %v2200_v13 = vld [vmem:[#allocation2 + $0x13a] sm:$0xff]  ;;  %v2201_v15 = vld [vmem:[#allocation2 + $0x142] sm:$0xff] }
 0x1bc   :  { %10092 = vmatprep.mubr.msk.f32.mxu1 %vm745_vm2, %v13690_v29  ;;  %v2202_v29 = vld [vmem:[#allocation2 + $0x152] sm:$0xff] }
 0x1be   :  { %9802 = vmatmul.mubr.msk.f32.gmra.mrb[110].mxu0 %vm745_vm2, %v13691_v33  ;;  %v2203_v33 = vld [vmem:[#allocation2 + $0x15a] sm:$0xff] }
 0x1bf   :  { %10093 = vmatmul.mubr.msk.f32.gmra.mrb[12].mxu1 %vm745_vm2, %v13692_v34  ;;  %9804 = vmatprep.mubr.msk.f32.mxu0 %vm745_vm2, %v13693_v6  ;;  %v2204_v34 = vld [vmem:[#allocation2 + $0x16a] sm:$0xff]  ;;  %v2206_v6 = vld [vmem:[#allocation2 + $0x1b2] sm:$0xff] }
 0x1c0   :  { %10095 = vmatprep.mubr.msk.f32.mxu1 %vm745_vm2, %v13694_v51  ;;  %v2205_v51 = vld [vmem:[#allocation2 + $0x172] sm:$0xff] }
 0x1c2   :  { %9805 = vmatmul.mubr.msk.f32.gmra.mrb[112].mxu0 %vm745_vm2, %v13695_v52  ;;  %v4323_v52 = vld [vmem:[#allocation2 + $0x182] sm:$0xff] }
 0x1c3   :  { %10096 = vmatmul.mubr.msk.f32.gmra.mrb[14].mxu1 %vm745_vm2, %v13696_v53  ;;  %9807 = vmatprep.mubr.msk.f32.mxu0 %vm745_vm2, %v13697_v58  ;;  %v2207_v53 = vld [vmem:[#allocation2 + $0x1ba] sm:$0xff] }
 0x1c4   :  { %10098 = vmatprep.mubr.msk.f32.mxu1 %vm745_vm2, %v13698_v4  ;;  %v12513_v58 = vld [vmem:[%s13609_s3] sm:$0xff]  ;;  %v4324_v4 = vld [vmem:[#allocation2 + $0x18a] sm:$0xff] }
 0x1c6   :  { %9808 = vmatmul.mubr.msk.f32.gmra.mrb[114].mxu0 %vm745_vm2, %v13699_v14  ;;  %v2208_v14 = vld [vmem:[#allocation2 + $0x1ca] sm:$0xff] }
 0x1c7   :  { %10099 = vmatmul.mubr.msk.f32.gmra.mrb[16].mxu1 %vm745_vm2, %v13700_v21  ;;  %9810 = vmatprep.mubr.msk.f32.mxu0 %vm745_vm2, %v13701_v23  ;;  %v2209_v21 = vld [vmem:[#allocation2 + $0x1d2] sm:$0xff]  ;;  %v2210_v23 = vld [vmem:[#allocation2 + $0x1e2] sm:$0xff] }
 0x1c8   :  { %10101 = vmatprep.mubr.msk.f32.mxu1 %vm745_vm2, %v13702_v43  ;;  %v2211_v43 = vld [vmem:[#allocation2 + $0x1ea] sm:$0xff] }
 0x1ca   :  { %9811 = vmatmul.mubr.msk.f32.gmra.mrb[116].mxu0 %vm745_vm2, %v13703_v44  ;;  %v2212_v44 = vld [vmem:[#allocation2 + $0x1fa] sm:$0xff] }
 0x1cb   :  { %10102 = vmatmul.mubr.msk.f32.gmra.mrb[18].mxu1 %vm745_vm2, %v13704_v50  ;;  %9813 = vmatprep.mubr.msk.f32.mxu0 %vm745_vm2, %v13705_v22  ;;  %v2213_v50 = vld [vmem:[#allocation2 + $0x202] sm:$0xff]  ;;  %v2214_v22 = vld [vmem:[#allocation2 + $0x212] sm:$0xff] }
 0x1cc   :  { %10104 = vmatprep.mubr.msk.f32.mxu1 %vm745_vm2, %v13706_v2  ;;  %v2215_v2 = vld [vmem:[#allocation2 + $0x21a] sm:$0xff] }
 0x1ce   :  { %9814 = vmatmul.mubr.msk.f32.gmra.mrb[118].mxu0 %vm745_vm2, %v13707_v1  ;;  %v2216_v1 = vld [vmem:[#allocation2 + $0x22a] sm:$0xff] }
 0x1cf   :  { %10105 = vmatmul.mubr.msk.f32.gmra.mrb[20].mxu1 %vm745_vm2, %v13708_v39  ;;  %9816 = vmatprep.mubr.msk.f32.mxu0 %vm745_vm2, %v13709_v30  ;;  %v2217_v39 = vld [vmem:[#allocation2 + $0x232] sm:$0xff]  ;;  %v2218_v30 = vld [vmem:[#allocation2 + $0x242] sm:$0xff] }
 0x1d0   :  { %10107 = vmatprep.mubr.msk.f32.mxu1 %vm745_vm2, %v13710_v5  ;;  %v2219_v5 = vld [vmem:[#allocation2 + $0x24a] sm:$0xff] }
 0x1d2   :  { %9817 = vmatmul.mubr.msk.f32.gmra.mrb[120].mxu0 %vm745_vm2, %v12128_v36  ;;  %v13714_v36 = vld [vmem:[#allocation36_spill] sm:$0xff] }
 0x1d3   :  { %10108 = vmatmul.mubr.msk.f32.gmra.mrb[22].mxu1 %vm745_vm2, %v12136_v55  ;;  %9819 = vmatprep.mubr.msk.f32.mxu0 %vm745_vm2, %v12146_v60  ;;  %v13715_v55 = vld [vmem:[#allocation37_spill] sm:$0xff]  ;;  %v13716_v60 = vld [vmem:[#allocation38_spill] sm:$0xff] }
 0x1d4   :  { %10110 = vmatprep.mubr.msk.f32.mxu1 %vm745_vm2, %v12144_v24  ;;  %v2174_v24 = vld [vmem:[#allocation2 + $0x2] sm:$0xff] }
 0x1d6   :  { %9820 = vmatmul.mubr.msk.f32.gmra.mrb[122].mxu0 %vm745_vm2, %v12148_v26  ;;  %v13717_v26 = vld [vmem:[#allocation39_spill] sm:$0xff] }
 0x1d7   :  { %10111 = vmatmul.mubr.msk.f32.gmra.mrb[24].mxu1 %vm745_vm2, %v13711_v32  ;;  %9822 = vmatprep.mubr.msk.f32.mxu0 %vm745_vm2, %v13712_v38  ;;  %v2220_v32 = vld [vmem:[#allocation2 + $0x25a] sm:$0xff]  ;;  %v2221_v38 = vld [vmem:[#allocation2 + $0x262] sm:$0xff] }
 0x1d8   :  { %10113 = vmatprep.mubr.msk.f32.mxu1 %vm745_vm2, %v13713_v18  ;;  %v2222_v18 = vld [vmem:[#allocation2 + $0x272] sm:$0xff] }
 0x1da   :  { %9823 = vmatmul.mubr.msk.f32.gmra.mrb[124].mxu0 %vm745_vm2, %v13714_v36  ;;  %v2223_v36 = vld [vmem:[#allocation2 + $0x27a] sm:$0xff] }
 0x1db   :  { %10114 = vmatmul.mubr.msk.f32.gmra.mrb[26].mxu1 %vm745_vm2, %v13715_v55  ;;  %9825 = vmatprep.mubr.msk.f32.mxu0 %vm745_vm2, %v12182_v41  ;;  %v2176_v41 = vld [vmem:[#allocation2 + $0x1a] sm:$0xff]  ;;  %v2224_v55 = vld [vmem:[#allocation2 + $0x28a] sm:$0xff] }
 0x1dc   :  { %10116 = vmatprep.mubr.msk.f32.mxu1 %vm745_vm2, %v13716_v60  ;;  %v2225_v60 = vld [vmem:[#allocation2 + $0x292] sm:$0xff] }
 0x1de   :  { %9826 = vmatmul.mubr.msk.f32.gmra.mrb[126].mxu0 %vm745_vm2, %v13717_v26  ;;  %v2227_v26 = vld [vmem:[#allocation2 + $0x2aa] sm:$0xff] }
 0x1df   :  { %10117 = vmatmul.mubr.msk.f32.gmra.mrb[28].mxu1 %vm745_vm2, %v13718_v40  ;;  %9830 = vmatprep.mubr.msk.f32.mxu0 %vm745_vm2, %v2174_v24  ;;  %v2226_v24 = vld [vmem:[#allocation2 + $0x2a2] sm:$0xff]  ;;  %v2228_v40 = vld [vmem:[#allocation2 + $0x2ba] sm:$0xff] }
 0x1e0   :  { %10119 = vmatprep.mubr.msk.f32.mxu1 %vm745_vm2, %v3648_v46  ;;  %v2229_v46 = vld [vmem:[#allocation2 + $0x2c2] sm:$0xff] }
 0x1e2   :  { %9831 = vmatmul.mubr.msk.f32.vlgmr.msra.gmra.mrb[64].mxu0 %vm745_vm2, %v2175_v48  ;;  %v2230_v48 = vld [vmem:[#allocation2 + $0x2d2] sm:$0xff] }
 0x1e3   :  { %10120 = vmatmul.mubr.msk.f32.gmra.mrb[30].mxu1 %vm745_vm2, %v3649_v54  ;;  %9833 = vmatprep.mubr.msk.f32.mxu0 %vm745_vm2, %v2176_v41  ;;  %v2231_v54 = vld [vmem:[#allocation2 + $0x2da] sm:$0xff] }
 0x1e4   :  { %10124 = vmatprep.mubr.msk.f32.mxu1 %vm745_vm2, %v2176_v41  ;;  %9927 = vmatpush3.msra.mxu0 %v11131_v56  ;;  %v2232_v41 = vld [vmem:[#allocation2 + $0x2ea] sm:$0xff]  ;;  %v2233_v56 = vld [vmem:[#allocation2 + $0x2f2] sm:$0xff] }
 0x1e5   :  { %10514 = vmatprep.subr.mxu0 %v12513_v58 }
 0x1e6   :  { %9834 = vmatmul.mubr.msk.f32.gmra.mrb[66].mxu0 %vm745_vm2, %v2177_v62 }
 0x1e7   :  { %10125 = vmatmul.mubr.msk.f32.vlgmr.msra.gmra.mrb[32].mxu1 %vm745_vm2, %v2177_v62  ;;  %9836 = vmatprep.mubr.msk.f32.mxu0 %vm745_vm2, %v2178_v9  ;;  %v2234_v62 = vld [vmem:[#allocation2 + $0x302] sm:$0xff] }
 0x1e8   :  { %10221 = vmatpush3.msra.mxu1 %v12209_v61  ;;  %10127 = vmatprep.mubr.msk.f32.mxu1 %vm745_vm2, %v2178_v9  ;;  %v2182_v61 = vld [vmem:[#allocation2 + $0x62] sm:$0xff]  ;;  %v2235_v9 = vld [vmem:[#allocation2 + $0x30a] sm:$0xff] }
 0x1e9   :  { %10318 = vmatprep.subr.mxu1 %v12446_v0 }
 0x1ea   :  { %9837 = vmatmul.mubr.msk.f32.gmra.mrb[68].mxu0 %vm745_vm2, %v2179_v11 }
 0x1eb   :  { %10128 = vmatmul.mubr.msk.f32.gmra.mrb[34].mxu1 %vm745_vm2, %v2179_v11  ;;  %9839 = vmatprep.mubr.msk.f32.mxu0 %vm745_vm2, %v2180_v17  ;;  %v2236_v11 = vld [vmem:[#allocation2 + $0x31a] sm:$0xff] }
 0x1ec   :  { %10130 = vmatprep.mubr.msk.f32.mxu1 %vm745_vm2, %v2180_v17  ;;  %v2237_v17 = vld [vmem:[#allocation2 + $0x322] sm:$0xff] }
 0x1ee   :  { %9840 = vmatmul.mubr.msk.f32.gmra.mrb[70].mxu0 %vm745_vm2, %v2181_v19 }
 0x1ef   :  { %10131 = vmatmul.mubr.msk.f32.gmra.mrb[36].mxu1 %vm745_vm2, %v2181_v19  ;;  %9842 = vmatprep.mubr.msk.f32.mxu0 %vm745_vm2, %v2182_v61  ;;  %v2880_v19 = vld [vmem:[#allocation2 + $0x18] sm:$0xff] }
 0x1f0   :  { %10133 = vmatprep.mubr.msk.f32.mxu1 %vm745_vm2, %v2182_v61  ;;  %v4355_v61 = vld [vmem:[#allocation2 + $0x332] sm:$0xff] }
 0x1f2   :  { %9843 = vmatmul.mubr.msk.f32.gmra.mrb[72].mxu0 %vm745_vm2, %v2183_v25 }
 0x1f3   :  { %10134 = vmatmul.mubr.msk.f32.gmra.mrb[38].mxu1 %vm745_vm2, %v2183_v25  ;;  %9845 = vmatprep.mubr.msk.f32.mxu0 %vm745_vm2, %v2184_v27  ;;  %v2881_v25 = vld [vmem:[#allocation2 + $0x20] sm:$0xff] }
 0x1f4   :  { %10136 = vmatprep.mubr.msk.f32.mxu1 %vm745_vm2, %v2184_v27  ;;  %v4356_v27 = vld [vmem:[#allocation2 + $0x33a] sm:$0xff] }
 0x1f6   :  { %9846 = vmatmul.mubr.msk.f32.gmra.mrb[74].mxu0 %vm745_vm2, %v2185_v35 }
 0x1f7   :  { %10137 = vmatmul.mubr.msk.f32.gmra.mrb[40].mxu1 %vm745_vm2, %v2185_v35  ;;  %9848 = vmatprep.mubr.msk.f32.mxu0 %vm745_vm2, %v2186_v37  ;;  %v5000_v35 = vld [vmem:[#allocation2 + $0x30] sm:$0xff] }
 0x1f8   :  { %10139 = vmatprep.mubr.msk.f32.mxu1 %vm745_vm2, %v2186_v37  ;;  %v2883_v37 = vld [vmem:[#allocation2 + $0x38] sm:$0xff] }
 0x1fa   :  { %9849 = vmatmul.mubr.msk.f32.gmra.mrb[76].mxu0 %vm745_vm2, %v2187_v45 }
 0x1fb   :  { %10140 = vmatmul.mubr.msk.f32.gmra.mrb[42].mxu1 %vm745_vm2, %v2187_v45  ;;  %9851 = vmatprep.mubr.msk.f32.mxu0 %vm745_vm2, %v2188_v49  ;;  %v12589_v45 = vld [vmem:[%s13611_s5 + $0x40] sm:$0xff] }
 0x1fc   :  { %10142 = vmatprep.mubr.msk.f32.mxu1 %vm745_vm2, %v2188_v49  ;;  %v2884_v49 = vld [vmem:[#allocation2 + $0x48] sm:$0xff] }
 0x1fe   :  { %9852 = vmatmul.mubr.msk.f32.gmra.mrb[78].mxu0 %vm745_vm2, %v2189_v57 }
 0x1ff   :  { %10143 = vmatmul.mubr.msk.f32.gmra.mrb[44].mxu1 %vm745_vm2, %v2189_v57  ;;  %9854 = vmatprep.mubr.msk.f32.mxu0 %vm745_vm2, %v2190_v59  ;;  %v2886_v57 = vld [vmem:[#allocation2 + $0x60] sm:$0xff] }
 0x200   :  { %10145 = vmatprep.mubr.msk.f32.mxu1 %vm745_vm2, %v2190_v59  ;;  %v2887_v59 = vld [vmem:[#allocation2 + $0x68] sm:$0xff] }
 0x202   :  { %9855 = vmatmul.mubr.msk.f32.gmra.mrb[80].mxu0 %vm745_vm2, %v2191_v3 }
 0x203   :  { %10146 = vmatmul.mubr.msk.f32.gmra.mrb[46].mxu1 %vm745_vm2, %v2191_v3  ;;  %9857 = vmatprep.mubr.msk.f32.mxu0 %vm745_vm2, %v2192_v8  ;;  %v2889_v3 = vld [vmem:[#allocation2 + $0x80] sm:$0xff] }
 0x204   :  { %10148 = vmatprep.mubr.msk.f32.mxu1 %vm745_vm2, %v2192_v8  ;;  %v2890_v8 = vld [vmem:[#allocation2 + $0x90] sm:$0xff] }
 0x206   :  { %9858 = vmatmul.mubr.msk.f32.gmra.mrb[82].mxu0 %vm745_vm2, %v2193_v16 }
 0x207   :  { %10149 = vmatmul.mubr.msk.f32.gmra.mrb[48].mxu1 %vm745_vm2, %v2193_v16  ;;  %9860 = vmatprep.mubr.msk.f32.mxu0 %vm745_vm2, %v2194_v20  ;;  %v2891_v16 = vld [vmem:[#allocation2 + $0x98] sm:$0xff] }
 0x208   :  { %10151 = vmatprep.mubr.msk.f32.mxu1 %vm745_vm2, %v2194_v20  ;;  %v2892_v20 = vld [vmem:[#allocation2 + $0xa8] sm:$0xff] }
 0x20a   :  { %9861 = vmatmul.mubr.msk.f32.gmra.mrb[84].mxu0 %vm745_vm2, %v2195_v31 }
 0x20b   :  { %10152 = vmatmul.mubr.msk.f32.gmra.mrb[50].mxu1 %vm745_vm2, %v2195_v31  ;;  %9863 = vmatprep.mubr.msk.f32.mxu0 %vm745_vm2, %v2196_v42  ;;  %v2893_v31 = vld [vmem:[#allocation2 + $0xb0] sm:$0xff] }
 0x20c   :  { %10154 = vmatprep.mubr.msk.f32.mxu1 %vm745_vm2, %v2196_v42  ;;  %v2894_v42 = vld [vmem:[#allocation2 + $0xc0] sm:$0xff] }
 0x20e   :  { %9864 = vmatmul.mubr.msk.f32.gmra.mrb[86].mxu0 %vm745_vm2, %v2197_v47 }
 0x20f   :  { %10155 = vmatmul.mubr.msk.f32.gmra.mrb[52].mxu1 %vm745_vm2, %v2197_v47  ;;  %9866 = vmatprep.mubr.msk.f32.mxu0 %vm745_vm2, %v2198_v10  ;;  %v2895_v47 = vld [vmem:[#allocation2 + $0xc8] sm:$0xff] }
 0x210   :  { %10157 = vmatprep.mubr.msk.f32.mxu1 %vm745_vm2, %v2198_v10  ;;  %v2896_v10 = vld [vmem:[#allocation2 + $0xd8] sm:$0xff] }
 0x212   :  { %9867 = vmatmul.mubr.msk.f32.gmra.mrb[88].mxu0 %vm745_vm2, %v2199_v12 }
 0x213   :  { %10158 = vmatmul.mubr.msk.f32.gmra.mrb[54].mxu1 %vm745_vm2, %v2199_v12  ;;  %9869 = vmatprep.mubr.msk.f32.mxu0 %vm745_vm2, %v2200_v13  ;;  %v2897_v12 = vld [vmem:[#allocation2 + $0xe0] sm:$0xff] }
 0x214   :  { %10160 = vmatprep.mubr.msk.f32.mxu1 %vm745_vm2, %v2200_v13  ;;  %v2898_v13 = vld [vmem:[#allocation2 + $0xf0] sm:$0xff] }
 0x216   :  { %9870 = vmatmul.mubr.msk.f32.gmra.mrb[90].mxu0 %vm745_vm2, %v2201_v15 }
 0x217   :  { %10161 = vmatmul.mubr.msk.f32.gmra.mrb[56].mxu1 %vm745_vm2, %v2201_v15  ;;  %9872 = vmatprep.mubr.msk.f32.mxu0 %vm745_vm2, %v2202_v29  ;;  %v2899_v15 = vld [vmem:[#allocation2 + $0xf8] sm:$0xff] }
 0x218   :  { %10163 = vmatprep.mubr.msk.f32.mxu1 %vm745_vm2, %v2202_v29  ;;  %v2900_v29 = vld [vmem:[#allocation2 + $0x108] sm:$0xff] }
 0x21a   :  { %9873 = vmatmul.mubr.msk.f32.gmra.mrb[92].mxu0 %vm745_vm2, %v2203_v33 }
 0x21b   :  { %10164 = vmatmul.mubr.msk.f32.gmra.mrb[58].mxu1 %vm745_vm2, %v2203_v33  ;;  %9875 = vmatprep.mubr.msk.f32.mxu0 %vm745_vm2, %v2204_v34  ;;  %v2901_v33 = vld [vmem:[#allocation2 + $0x110] sm:$0xff] }
 0x21c   :  { %10166 = vmatprep.mubr.msk.f32.mxu1 %vm745_vm2, %v2204_v34  ;;  %v2902_v34 = vld [vmem:[#allocation2 + $0x120] sm:$0xff] }
 0x21e   :  { %9876 = vmatmul.mubr.msk.f32.gmra.mrb[94].mxu0 %vm745_vm2, %v2205_v51 }
 0x21f   :  { %10167 = vmatmul.mubr.msk.f32.gmra.mrb[60].mxu1 %vm745_vm2, %v2205_v51  ;;  %9878 = vmatprep.mubr.msk.f32.mxu0 %vm745_vm2, %v2206_v6  ;;  %v2903_v6 = vld [vmem:[#allocation2 + $0x128] sm:$0xff]  ;;  %v2904_v51 = vld [vmem:[#allocation2 + $0x138] sm:$0xff] }
 0x220   :  { %10169 = vmatprep.mubr.msk.f32.mxu1 %vm745_vm2, %v4323_v52  ;;  %v2905_v52 = vld [vmem:[#allocation2 + $0x140] sm:$0xff] }
 0x222   :  { %9879 = vmatmul.mubr.msk.f32.gmra.mrb[96].mxu0 %vm745_vm2, %v2207_v53  ;;  %v2906_v53 = vld [vmem:[#allocation2 + $0x150] sm:$0xff] }
 0x223   :  { %10170 = vmatmul.mubr.msk.f32.gmra.mrb[62].mxu1 %vm745_vm2, %v4324_v4  ;;  %9881 = vmatprep.mubr.msk.f32.mxu0 %vm745_vm2, %v2208_v14  ;;  %v2908_v4 = vld [vmem:[#allocation2 + $0x168] sm:$0xff] }
 0x224   :  { %10172 = vmatprep.mubr.msk.f32.mxu1 %vm745_vm2, %v2208_v14  ;;  %v2909_v14 = vld [vmem:[#allocation2 + $0x170] sm:$0xff] }
 0x226   :  { %9882 = vmatmul.mubr.msk.f32.gmra.mrb[98].mxu0 %vm745_vm2, %v2209_v21 }
 0x227   :  { %10173 = vmatmul.mubr.msk.f32.gmra.mrb[0].mxu1 %vm745_vm2, %v2209_v21  ;;  %9884 = vmatprep.mubr.msk.f32.mxu0 %vm745_vm2, %v2210_v23  ;;  %v2910_v21 = vld [vmem:[#allocation2 + $0x180] sm:$0xff] }
 0x228   :  { %10175 = vmatprep.mubr.msk.f32.mxu1 %vm745_vm2, %v2210_v23  ;;  %v5030_v23 = vld [vmem:[#allocation2 + $0x198] sm:$0xff] }
 0x22a   :  { %9885 = vmatmul.mubr.msk.f32.gmra.mrb[100].mxu0 %vm745_vm2, %v2211_v43 }
 0x22b   :  { %10176 = vmatmul.mubr.msk.f32.gmra.mrb[2].mxu1 %vm745_vm2, %v2211_v43  ;;  %9887 = vmatprep.mubr.msk.f32.mxu0 %vm745_vm2, %v2212_v44  ;;  %v2911_v43 = vld [vmem:[#allocation2 + $0x188] sm:$0xff] }
 0x22c   :  { %10178 = vmatprep.mubr.msk.f32.mxu1 %vm745_vm2, %v2212_v44  ;;  %v11132_v44 = vld [vmem:[#allocation2 + $0x19] sm:$0xff] }
 0x22e   :  { %9888 = vmatmul.mubr.msk.f32.gmra.mrb[102].mxu0 %vm745_vm2, %v2213_v50 }
 0x22f   :  { %10179 = vmatmul.mubr.msk.f32.gmra.mrb[4].mxu1 %vm745_vm2, %v2213_v50  ;;  %9890 = vmatprep.mubr.msk.f32.mxu0 %vm745_vm2, %v2214_v22  ;;  %v5031_v50 = vld [vmem:[#allocation2 + $0x1a0] sm:$0xff] }
 0x230   :  { %10181 = vmatprep.mubr.msk.f32.mxu1 %vm745_vm2, %v2214_v22  ;;  %v11133_v22 = vld [vmem:[#allocation2 + $0x21] sm:$0xff] }
 0x232   :  { %9891 = vmatmul.mubr.msk.f32.gmra.mrb[104].mxu0 %vm745_vm2, %v2215_v2 }
 0x233   :  { %10182 = vmatmul.mubr.msk.f32.gmra.mrb[6].mxu1 %vm745_vm2, %v2215_v2  ;;  %9893 = vmatprep.mubr.msk.f32.mxu0 %vm745_vm2, %v2216_v1  ;;  %v5032_v2 = vld [vmem:[#allocation2 + $0x1e0] sm:$0xff] }
 0x234   :  { %10184 = vmatprep.mubr.msk.f32.mxu1 %vm745_vm2, %v2216_v1  ;;  %v11134_v1 = vld [vmem:[#allocation2 + $0x31] sm:$0xff] }
 0x236   :  { %9894 = vmatmul.mubr.msk.f32.gmra.mrb[106].mxu0 %vm745_vm2, %v2217_v39 }
 0x237   :  { %10185 = vmatmul.mubr.msk.f32.gmra.mrb[8].mxu1 %vm745_vm2, %v2217_v39  ;;  %9896 = vmatprep.mubr.msk.f32.mxu0 %vm745_vm2, %v2218_v30  ;;  %v5033_v39 = vld [vmem:[#allocation2 + $0x1e8] sm:$0xff] }
 0x238   :  { %10187 = vmatprep.mubr.msk.f32.mxu1 %vm745_vm2, %v2218_v30  ;;  %v11135_v30 = vld [vmem:[#allocation2 + $0x39] sm:$0xff] }
 0x23a   :  { %9897 = vmatmul.mubr.msk.f32.gmra.mrb[108].mxu0 %vm745_vm2, %v2219_v5 }
 0x23b   :  { %10188 = vmatmul.mubr.msk.f32.gmra.mrb[10].mxu1 %vm745_vm2, %v2219_v5  ;;  %9899 = vmatprep.mubr.msk.f32.mxu0 %vm745_vm2, %v2220_v32  ;;  %v5034_v5 = vld [vmem:[#allocation2 + $0x1f8] sm:$0xff] }
 0x23c   :  { %10190 = vmatprep.mubr.msk.f32.mxu1 %vm745_vm2, %v2220_v32  ;;  %v11136_v32 = vld [vmem:[#allocation2 + $0x49] sm:$0xff] }
 0x23e   :  { %9900 = vmatmul.mubr.msk.f32.gmra.mrb[110].mxu0 %vm745_vm2, %v2221_v38 }
 0x23f   :  { %10191 = vmatmul.mubr.msk.f32.gmra.mrb[12].mxu1 %vm745_vm2, %v2221_v38  ;;  %9902 = vmatprep.mubr.msk.f32.mxu0 %vm745_vm2, %v2222_v18  ;;  %v5035_v38 = vld [vmem:[#allocation2 + $0x200] sm:$0xff] }
 0x240   :  { %10193 = vmatprep.mubr.msk.f32.mxu1 %vm745_vm2, %v2222_v18  ;;  %v11137_v18 = vld [vmem:[#allocation2 + $0x51] sm:$0xff] }
 0x242   :  { %9903 = vmatmul.mubr.msk.f32.gmra.mrb[112].mxu0 %vm745_vm2, %v2223_v36 }
 0x243   :  { %10194 = vmatmul.mubr.msk.f32.gmra.mrb[14].mxu1 %vm745_vm2, %v2223_v36  ;;  %9905 = vmatprep.mubr.msk.f32.mxu0 %vm745_vm2, %v2224_v55  ;;  %v5036_v36 = vld [vmem:[#allocation2 + $0x210] sm:$0xff] }
 0x244   :  { %10196 = vmatprep.mubr.msk.f32.mxu1 %vm745_vm2, %v2224_v55  ;;  %v11138_v55 = vld [vmem:[#allocation2 + $0x61] sm:$0xff] }
 0x246   :  { %9906 = vmatmul.mubr.msk.f32.gmra.mrb[114].mxu0 %vm745_vm2, %v2225_v60 }
 0x247   :  { %10197 = vmatmul.mubr.msk.f32.gmra.mrb[16].mxu1 %vm745_vm2, %v2225_v60  ;;  %9908 = vmatprep.mubr.msk.f32.mxu0 %vm745_vm2, %v2226_v24  ;;  %v5037_v60 = vld [vmem:[#allocation2 + $0x218] sm:$0xff] }
 0x248   :  { %10199 = vmatprep.mubr.msk.f32.mxu1 %vm745_vm2, %v2226_v24  ;;  %v11139_v24 = vld [vmem:[#allocation2 + $0x69] sm:$0xff] }
 0x24a   :  { %9909 = vmatmul.mubr.msk.f32.gmra.mrb[116].mxu0 %vm745_vm2, %v2227_v26 }
 0x24b   :  { %10200 = vmatmul.mubr.msk.f32.gmra.mrb[18].mxu1 %vm745_vm2, %v2227_v26  ;;  %9911 = vmatprep.mubr.msk.f32.mxu0 %vm745_vm2, %v2228_v40  ;;  %v5038_v26 = vld [vmem:[#allocation2 + $0x228] sm:$0xff] }
 0x24c   :  { %10202 = vmatprep.mubr.msk.f32.mxu1 %vm745_vm2, %v2228_v40  ;;  %v11140_v40 = vld [vmem:[#allocation2 + $0x79] sm:$0xff] }
 0x24e   :  { %9912 = vmatmul.mubr.msk.f32.gmra.mrb[118].mxu0 %vm745_vm2, %v2229_v46 }
 0x24f   :  { %10203 = vmatmul.mubr.msk.f32.gmra.mrb[20].mxu1 %vm745_vm2, %v2229_v46  ;;  %9914 = vmatprep.mubr.msk.f32.mxu0 %vm745_vm2, %v2230_v48  ;;  %v5039_v46 = vld [vmem:[#allocation2 + $0x230] sm:$0xff] }
 0x250   :  { %10205 = vmatprep.mubr.msk.f32.mxu1 %vm745_vm2, %v2230_v48  ;;  %v11141_v48 = vld [vmem:[#allocation2 + $0x81] sm:$0xff] }
 0x252   :  { %9915 = vmatmul.mubr.msk.f32.gmra.mrb[120].mxu0 %vm745_vm2, %v2231_v54 }
 0x253   :  { %10206 = vmatmul.mubr.msk.f32.gmra.mrb[22].mxu1 %vm745_vm2, %v2231_v54  ;;  %9917 = vmatprep.mubr.msk.f32.mxu0 %vm745_vm2, %v2232_v41  ;;  %v5040_v54 = vld [vmem:[#allocation2 + $0x240] sm:$0xff] }
 0x254   :  { %10208 = vmatprep.mubr.msk.f32.mxu1 %vm745_vm2, %v2232_v41  ;;  %v11142_v41 = vld [vmem:[#allocation2 + $0x91] sm:$0xff] }
 0x256   :  { %9918 = vmatmul.mubr.msk.f32.gmra.mrb[122].mxu0 %vm745_vm2, %v2233_v56 }
 0x257   :  { %10209 = vmatmul.mubr.msk.f32.gmra.mrb[24].mxu1 %vm745_vm2, %v2233_v56  ;;  %9920 = vmatprep.mubr.msk.f32.mxu0 %vm745_vm2, %v2234_v62  ;;  %v5041_v56 = vld [vmem:[#allocation2 + $0x248] sm:$0xff] }
 0x258   :  { %10211 = vmatprep.mubr.msk.f32.mxu1 %vm745_vm2, %v2234_v62  ;;  %v11143_v62 = vld [vmem:[#allocation2 + $0x99] sm:$0xff] }
 0x25a   :  { %9921 = vmatmul.mubr.msk.f32.gmra.mrb[124].mxu0 %vm745_vm2, %v2235_v9 }
 0x25b   :  { %10212 = vmatmul.mubr.msk.f32.gmra.mrb[26].mxu1 %vm745_vm2, %v2235_v9  ;;  %9923 = vmatprep.mubr.msk.f32.mxu0 %vm745_vm2, %v2236_v11  ;;  %v5042_v9 = vld [vmem:[#allocation2 + $0x258] sm:$0xff] }
 0x25c   :  { %10214 = vmatprep.mubr.msk.f32.mxu1 %vm745_vm2, %v2236_v11  ;;  %v11144_v11 = vld [vmem:[#allocation2 + $0xa9] sm:$0xff] }
 0x25e   :  { %9924 = vmatmul.mubr.msk.f32.gmra.mrb[126].mxu0 %vm745_vm2, %v2237_v17 }
 0x25f   :  { %10215 = vmatmul.mubr.msk.f32.gmra.mrb[28].mxu1 %vm745_vm2, %v2237_v17  ;;  %9928 = vmatprep.mubr.msk.f32.mxu0 %vm745_vm2, %v2880_v19  ;;  %v5043_v17 = vld [vmem:[#allocation2 + $0x260] sm:$0xff]  ;;  %v11145_v19 = vld [vmem:[#allocation2 + $0xb1] sm:$0xff] }
 0x260   :  { %10217 = vmatprep.mubr.msk.f32.mxu1 %vm745_vm2, %v4355_v61  ;;  %v5044_v61 = vld [vmem:[#allocation2 + $0x270] sm:$0xff] }
 0x262   :  { %9929 = vmatmul.mubr.msk.f32.vlgmr.msra.gmra.mrb[64].mxu0 %vm745_vm2, %v2881_v25  ;;  %v11146_v25 = vld [vmem:[#allocation2 + $0xc1] sm:$0xff] }
 0x263   :  { %10218 = vmatmul.mubr.msk.f32.gmra.mrb[30].mxu1 %vm745_vm2, %v4356_v27  ;;  %9931 = vmatprep.mubr.msk.f32.mxu0 %vm745_vm2, %v12215_v7  ;;  %v2885_v7 = vld [vmem:[#allocation2 + $0x50] sm:$0xff]  ;;  %v5045_v27 = vld [vmem:[#allocation2 + $0x278] sm:$0xff] }
 0x264   :  { %10222 = vmatprep.mubr.msk.f32.mxu1 %vm745_vm2, %v5000_v35  ;;  %10515 = vmatpush3.msra.mxu0 %v12513_v58  ;;  %v2907_v58 = vld [vmem:[#allocation2 + $0x158] sm:$0xff]  ;;  %v11147_v35 = vld [vmem:[#allocation2 + $0xc9] sm:$0xff] }
 0x266   :  { %9932 = vmatmul.mubr.msk.f32.gmra.mrb[66].mxu0 %vm745_vm2, %v2883_v37 }
 0x267   :  { %10223 = vmatmul.mubr.msk.f32.vlgmr.msra.gmra.mrb[32].mxu1 %vm745_vm2, %v2883_v37  ;;  %9934 = vmatprep.mubr.msk.f32.mxu0 %vm745_vm2, %v2884_v49  ;;  %v5046_v37 = vld [vmem:[#allocation2 + $0x288] sm:$0xff] }
 0x268   :  { %10319 = vmatpush3.msra.mxu1 %v12446_v0  ;;  %10225 = vmatprep.mubr.msk.f32.mxu1 %vm745_vm2, %v2884_v49  ;;  %v2888_v0 = vld [vmem:[#allocation2 + $0x78] sm:$0xff] }
 0x269   :  { %10416 = vmatprep.subr.mxu1 %v12589_v45  ;;  %v11148_v49 = vld [vmem:[#allocation2 + $0xd9] sm:$0xff] }
 0x26a   :  { %9935 = vmatmul.mubr.msk.f32.gmra.mrb[68].mxu0 %vm745_vm2, %v2885_v7 }
 0x26b   :  { %10226 = vmatmul.mubr.msk.f32.gmra.mrb[34].mxu1 %vm745_vm2, %v2885_v7  ;;  %9937 = vmatprep.mubr.msk.f32.mxu0 %vm745_vm2, %v2886_v57  ;;  %v5047_v7 = vld [vmem:[#allocation2 + $0x290] sm:$0xff] }
 0x26c   :  { %10228 = vmatprep.mubr.msk.f32.mxu1 %vm745_vm2, %v2886_v57  ;;  %v11149_v57 = vld [vmem:[#allocation2 + $0xe1] sm:$0xff] }
 0x26e   :  { %9938 = vmatmul.mubr.msk.f32.gmra.mrb[70].mxu0 %vm745_vm2, %v2887_v59 }
 0x26f   :  { %10229 = vmatmul.mubr.msk.f32.gmra.mrb[36].mxu1 %vm745_vm2, %v2887_v59  ;;  %9940 = vmatprep.mubr.msk.f32.mxu0 %vm745_vm2, %v2888_v0  ;;  %v5048_v59 = vld [vmem:[#allocation2 + $0x2a0] sm:$0xff] }
 0x270   :  { %10231 = vmatprep.mubr.msk.f32.mxu1 %vm745_vm2, %v2888_v0  ;;  %v11150_v0 = vld [vmem:[#allocation2 + $0xf1] sm:$0xff] }
 0x272   :  { %9941 = vmatmul.mubr.msk.f32.gmra.mrb[72].mxu0 %vm745_vm2, %v2889_v3 }
 0x273   :  { %10232 = vmatmul.mubr.msk.f32.gmra.mrb[38].mxu1 %vm745_vm2, %v2889_v3  ;;  %9943 = vmatprep.mubr.msk.f32.mxu0 %vm745_vm2, %v2890_v8  ;;  %v5049_v3 = vld [vmem:[#allocation2 + $0x2a8] sm:$0xff] }
 0x274   :  { %10234 = vmatprep.mubr.msk.f32.mxu1 %vm745_vm2, %v2890_v8  ;;  %v11151_v8 = vld [vmem:[#allocation2 + $0xf9] sm:$0xff] }
 0x276   :  { %9944 = vmatmul.mubr.msk.f32.gmra.mrb[74].mxu0 %vm745_vm2, %v2891_v16 }
 0x277   :  { %10235 = vmatmul.mubr.msk.f32.gmra.mrb[40].mxu1 %vm745_vm2, %v2891_v16  ;;  %9946 = vmatprep.mubr.msk.f32.mxu0 %vm745_vm2, %v2892_v20  ;;  %v5050_v16 = vld [vmem:[#allocation2 + $0x2b8] sm:$0xff] }
 0x278   :  { %10237 = vmatprep.mubr.msk.f32.mxu1 %vm745_vm2, %v2892_v20  ;;  %v11152_v20 = vld [vmem:[#allocation2 + $0x109] sm:$0xff] }
 0x27a   :  { %9947 = vmatmul.mubr.msk.f32.gmra.mrb[76].mxu0 %vm745_vm2, %v2893_v31 }
 0x27b   :  { %10238 = vmatmul.mubr.msk.f32.gmra.mrb[42].mxu1 %vm745_vm2, %v2893_v31  ;;  %9949 = vmatprep.mubr.msk.f32.mxu0 %vm745_vm2, %v2894_v42  ;;  %v5051_v31 = vld [vmem:[#allocation2 + $0x2c0] sm:$0xff] }
 0x27c   :  { %10240 = vmatprep.mubr.msk.f32.mxu1 %vm745_vm2, %v2894_v42  ;;  %v11153_v42 = vld [vmem:[#allocation2 + $0x111] sm:$0xff] }
 0x27e   :  { %9950 = vmatmul.mubr.msk.f32.gmra.mrb[78].mxu0 %vm745_vm2, %v2895_v47 }
 0x27f   :  { %10241 = vmatmul.mubr.msk.f32.gmra.mrb[44].mxu1 %vm745_vm2, %v2895_v47  ;;  %9952 = vmatprep.mubr.msk.f32.mxu0 %vm745_vm2, %v2896_v10  ;;  %v5052_v47 = vld [vmem:[#allocation2 + $0x2d0] sm:$0xff] }
 0x280   :  { %10243 = vmatprep.mubr.msk.f32.mxu1 %vm745_vm2, %v2896_v10  ;;  %v11154_v10 = vld [vmem:[#allocation2 + $0x121] sm:$0xff] }
 0x282   :  { %9953 = vmatmul.mubr.msk.f32.gmra.mrb[80].mxu0 %vm745_vm2, %v2897_v12 }
 0x283   :  { %10244 = vmatmul.mubr.msk.f32.gmra.mrb[46].mxu1 %vm745_vm2, %v2897_v12  ;;  %9955 = vmatprep.mubr.msk.f32.mxu0 %vm745_vm2, %v2898_v13  ;;  %v5053_v12 = vld [vmem:[#allocation2 + $0x2d8] sm:$0xff] }
 0x284   :  { %10246 = vmatprep.mubr.msk.f32.mxu1 %vm745_vm2, %v2898_v13  ;;  %v11155_v13 = vld [vmem:[#allocation2 + $0x129] sm:$0xff] }
 0x286   :  { %9956 = vmatmul.mubr.msk.f32.gmra.mrb[82].mxu0 %vm745_vm2, %v2899_v15 }
 0x287   :  { %10247 = vmatmul.mubr.msk.f32.gmra.mrb[48].mxu1 %vm745_vm2, %v2899_v15  ;;  %9958 = vmatprep.mubr.msk.f32.mxu0 %vm745_vm2, %v2900_v29  ;;  %v5054_v15 = vld [vmem:[#allocation2 + $0x2e8] sm:$0xff] }
 0x288   :  { %10249 = vmatprep.mubr.msk.f32.mxu1 %vm745_vm2, %v2900_v29  ;;  %v11156_v29 = vld [vmem:[#allocation2 + $0x139] sm:$0xff] }
 0x28a   :  { %9959 = vmatmul.mubr.msk.f32.gmra.mrb[84].mxu0 %vm745_vm2, %v2901_v33 }
 0x28b   :  { %10250 = vmatmul.mubr.msk.f32.gmra.mrb[50].mxu1 %vm745_vm2, %v2901_v33  ;;  %9961 = vmatprep.mubr.msk.f32.mxu0 %vm745_vm2, %v2902_v34  ;;  %v5055_v33 = vld [vmem:[#allocation2 + $0x2f0] sm:$0xff] }
 0x28c   :  { %10252 = vmatprep.mubr.msk.f32.mxu1 %vm745_vm2, %v2902_v34  ;;  %v11157_v34 = vld [vmem:[#allocation2 + $0x141] sm:$0xff] }
 0x28e   :  { %9962 = vmatmul.mubr.msk.f32.gmra.mrb[86].mxu0 %vm745_vm2, %v2903_v6 }
 0x28f   :  { %10253 = vmatmul.mubr.msk.f32.gmra.mrb[52].mxu1 %vm745_vm2, %v2903_v6  ;;  %9964 = vmatprep.mubr.msk.f32.mxu0 %vm745_vm2, %v2904_v51  ;;  %v5056_v6 = vld [vmem:[#allocation2 + $0x300] sm:$0xff] }
 0x290   :  { %10255 = vmatprep.mubr.msk.f32.mxu1 %vm745_vm2, %v2904_v51  ;;  %v11158_v51 = vld [vmem:[#allocation2 + $0x151] sm:$0xff] }
 0x292   :  { %9965 = vmatmul.mubr.msk.f32.gmra.mrb[88].mxu0 %vm745_vm2, %v2905_v52 }
 0x293   :  { %10256 = vmatmul.mubr.msk.f32.gmra.mrb[54].mxu1 %vm745_vm2, %v2905_v52  ;;  %9967 = vmatprep.mubr.msk.f32.mxu0 %vm745_vm2, %v2906_v53  ;;  %v5057_v52 = vld [vmem:[#allocation2 + $0x308] sm:$0xff] }
 0x294   :  { %10258 = vmatprep.mubr.msk.f32.mxu1 %vm745_vm2, %v2906_v53  ;;  %v11159_v53 = vld [vmem:[#allocation2 + $0x159] sm:$0xff] }
 0x296   :  { %9968 = vmatmul.mubr.msk.f32.gmra.mrb[90].mxu0 %vm745_vm2, %v2907_v58 }
 0x297   :  { %10259 = vmatmul.mubr.msk.f32.gmra.mrb[56].mxu1 %vm745_vm2, %v2907_v58  ;;  %9970 = vmatprep.mubr.msk.f32.mxu0 %vm745_vm2, %v2908_v4  ;;  %v5058_v58 = vld [vmem:[#allocation2 + $0x318] sm:$0xff] }
 0x298   :  { %10261 = vmatprep.mubr.msk.f32.mxu1 %vm745_vm2, %v2908_v4  ;;  %v11160_v4 = vld [vmem:[#allocation2 + $0x169] sm:$0xff] }
 0x29a   :  { %9971 = vmatmul.mubr.msk.f32.gmra.mrb[92].mxu0 %vm745_vm2, %v2909_v14 }
 0x29b   :  { %10262 = vmatmul.mubr.msk.f32.gmra.mrb[58].mxu1 %vm745_vm2, %v2909_v14  ;;  %9973 = vmatprep.mubr.msk.f32.mxu0 %vm745_vm2, %v2910_v21  ;;  %v5059_v14 = vld [vmem:[#allocation2 + $0x320] sm:$0xff] }
 0x29c   :  { %10264 = vmatprep.mubr.msk.f32.mxu1 %vm745_vm2, %v2910_v21  ;;  %v11161_v21 = vld [vmem:[#allocation2 + $0x171] sm:$0xff] }
 0x29e   :  { %9974 = vmatmul.mubr.msk.f32.gmra.mrb[94].mxu0 %vm745_vm2, %v2911_v43 }
 0x29f   :  { %10265 = vmatmul.mubr.msk.f32.gmra.mrb[60].mxu1 %vm745_vm2, %v2911_v43  ;;  %10516 = vmatprep.mubr.msk.f32.mxu0 %vm745_vm2, %v11132_v44  ;;  %v5062_v43 = vld [vmem:[#allocation2 + $0x348] sm:$0xff]  ;;  %v5061_v44 = vld [vmem:[#allocation2 + $0x338] sm:$0xff] }
 0x2a0   :  { %10267 = vmatprep.mubr.msk.f32.mxu1 %vm745_vm2, %v5030_v23  ;;  %v5060_v23 = vld [vmem:[#allocation2 + $0x330] sm:$0xff] }
 0x2a2   :  { %10517 = vmatmul.mubr.msk.f32.vlgmr.msra.gmra.mrb[128].mxu0 %vm745_vm2, %v11133_v22  ;;  %v5063_v22 = vld [vmem:[#allocation2 + $0x350] sm:$0xff] }
 0x2a3   :  { %10268 = vmatmul.mubr.msk.f32.gmra.mrb[62].mxu1 %vm745_vm2, %v5031_v50  ;;  %10519 = vmatprep.mubr.msk.f32.mxu0 %vm745_vm2, %v11134_v1  ;;  %v11162_v50 = vld [vmem:[#allocation2 + $0x1c9] sm:$0xff]  ;;  %v5706_v1 = vld [vmem:[#allocation2 + $0x31] sm:$0xff] }
 0x2a4   :  { %10270 = vmatprep.mubr.msk.f32.mxu1 %vm745_vm2, %v5032_v2  ;;  %v11163_v2 = vld [vmem:[#allocation2 + $0x1d1] sm:$0xff] }
 0x2a6   :  { %10520 = vmatmul.mubr.msk.f32.gmra.mrb[130].mxu0 %vm745_vm2, %v11135_v30  ;;  %v5708_v30 = vld [vmem:[#allocation2 + $0x49] sm:$0xff] }
 0x2a7   :  { %10271 = vmatmul.mubr.msk.f32.gmra.mrb[0].mxu1 %vm745_vm2, %v5033_v39  ;;  %10522 = vmatprep.mubr.msk.f32.mxu0 %vm745_vm2, %v11136_v32  ;;  %v5707_v39 = vld [vmem:[#allocation2 + $0x39] sm:$0xff]  ;;  %v5709_v32 = vld [vmem:[#allocation2 + $0x51] sm:$0xff] }
 0x2a8   :  { %10273 = vmatprep.mubr.msk.f32.mxu1 %vm745_vm2, %v5034_v5  ;;  %v11166_v5 = vld [vmem:[#allocation2 + $0x1f9] sm:$0xff] }
 0x2aa   :  { %10523 = vmatmul.mubr.msk.f32.gmra.mrb[132].mxu0 %vm745_vm2, %v11137_v18  ;;  %v5710_v18 = vld [vmem:[#allocation2 + $0x61] sm:$0xff] }
 0x2ab   :  { %10274 = vmatmul.mubr.msk.f32.gmra.mrb[2].mxu1 %vm745_vm2, %v5035_v38  ;;  %10525 = vmatprep.mubr.msk.f32.mxu0 %vm745_vm2, %v11138_v55  ;;  %v11167_v38 = vld [vmem:[#allocation2 + $0x201] sm:$0xff]  ;;  %v5711_v55 = vld [vmem:[#allocation2 + $0x69] sm:$0xff] }
 0x2ac   :  { %10276 = vmatprep.mubr.msk.f32.mxu1 %vm745_vm2, %v5036_v36  ;;  %v11168_v36 = vld [vmem:[#allocation2 + $0x211] sm:$0xff] }
 0x2ae   :  { %10526 = vmatmul.mubr.msk.f32.gmra.mrb[134].mxu0 %vm745_vm2, %v11139_v24  ;;  %v11170_v24 = vld [vmem:[#allocation2 + $0x229] sm:$0xff] }
 0x2af   :  { %10277 = vmatmul.mubr.msk.f32.gmra.mrb[4].mxu1 %vm745_vm2, %v5037_v60  ;;  %10528 = vmatprep.mubr.msk.f32.mxu0 %vm745_vm2, %v11140_v40  ;;  %v5712_v60 = vld [vmem:[#allocation2 + $0x79] sm:$0xff]  ;;  %v11171_v40 = vld [vmem:[#allocation2 + $0x231] sm:$0xff] }
 0x2b0   :  { %10279 = vmatprep.mubr.msk.f32.mxu1 %vm745_vm2, %v5038_v26  ;;  %v5713_v26 = vld [vmem:[#allocation2 + $0x81] sm:$0xff] }
 0x2b2   :  { %10529 = vmatmul.mubr.msk.f32.gmra.mrb[136].mxu0 %vm745_vm2, %v11141_v48  ;;  %v11172_v48 = vld [vmem:[#allocation2 + $0x241] sm:$0xff] }
 0x2b3   :  { %10280 = vmatmul.mubr.msk.f32.gmra.mrb[6].mxu1 %vm745_vm2, %v5039_v46  ;;  %10531 = vmatprep.mubr.msk.f32.mxu0 %vm745_vm2, %v11142_v41  ;;  %v5714_v46 = vld [vmem:[#allocation2 + $0x91] sm:$0xff] }
 0x2b4   :  { %10282 = vmatprep.mubr.msk.f32.mxu1 %vm745_vm2, %v5040_v54  ;;  %v5715_v54 = vld [vmem:[#allocation2 + $0x99] sm:$0xff] }
 0x2b6   :  { %10532 = vmatmul.mubr.msk.f32.gmra.mrb[138].mxu0 %vm745_vm2, %v11143_v62  ;;  %v5716_v62 = vld [vmem:[#allocation2 + $0xa9] sm:$0xff] }
 0x2b7   :  { %10283 = vmatmul.mubr.msk.f32.gmra.mrb[8].mxu1 %vm745_vm2, %v5041_v56  ;;  %10534 = vmatprep.mubr.msk.f32.mxu0 %vm745_vm2, %v11144_v11  ;;  %v11173_v56 = vld [vmem:[#allocation2 + $0x249] sm:$0xff]  ;;  %v11174_v11 = vld [vmem:[#allocation2 + $0x259] sm:$0xff] }
 0x2b8   :  { %10285 = vmatprep.mubr.msk.f32.mxu1 %vm745_vm2, %v5042_v9 }
 0x2ba   :  { %10535 = vmatmul.mubr.msk.f32.gmra.mrb[140].mxu0 %vm745_vm2, %v11145_v19  ;;  %v5717_v19 = vld [vmem:[#allocation2 + $0xb1] sm:$0xff] }
 0x2bb   :  { %10286 = vmatmul.mubr.msk.f32.gmra.mrb[10].mxu1 %vm745_vm2, %v5043_v17  ;;  %10537 = vmatprep.mubr.msk.f32.mxu0 %vm745_vm2, %v11146_v25  ;;  %v11175_v25 = vld [vmem:[#allocation2 + $0x261] sm:$0xff] }
 0x2bc   :  { %10288 = vmatprep.mubr.msk.f32.mxu1 %vm745_vm2, %v5044_v61 }
 0x2be   :  { %10538 = vmatmul.mubr.msk.f32.gmra.mrb[142].mxu0 %vm745_vm2, %v11147_v35  ;;  %v11176_v35 = vld [vmem:[#allocation2 + $0x271] sm:$0xff] }
 0x2bf   :  { %10289 = vmatmul.mubr.msk.f32.gmra.mrb[12].mxu1 %vm745_vm2, %v5045_v27  ;;  %10540 = vmatprep.mubr.msk.f32.mxu0 %vm745_vm2, %v11148_v49  ;;  %v5718_v27 = vld [vmem:[#allocation2 + $0xc1] sm:$0xff]  ;;  %v5719_v49 = vld [vmem:[#allocation2 + $0xc9] sm:$0xff] }
 0x2c0   :  { %10291 = vmatprep.mubr.msk.f32.mxu1 %vm745_vm2, %v5046_v37 }
 0x2c2   :  { %10541 = vmatmul.mubr.msk.f32.gmra.mrb[144].mxu0 %vm745_vm2, %v11149_v57  ;;  %v11177_v57 = vld [vmem:[#allocation2 + $0x279] sm:$0xff] }
 0x2c3   :  { %10292 = vmatmul.mubr.msk.f32.gmra.mrb[14].mxu1 %vm745_vm2, %v5047_v7  ;;  %10543 = vmatprep.mubr.msk.f32.mxu0 %vm745_vm2, %v11150_v0  ;;  %v11178_v0 = vld [vmem:[#allocation2 + $0x289] sm:$0xff] }
 0x2c4   :  { %10294 = vmatprep.mubr.msk.f32.mxu1 %vm745_vm2, %v5048_v59  ;;  %v5720_v59 = vld [vmem:[#allocation2 + $0xd9] sm:$0xff] }
 0x2c6   :  { %10544 = vmatmul.mubr.msk.f32.gmra.mrb[146].mxu0 %vm745_vm2, %v11151_v8  ;;  %v5721_v8 = vld [vmem:[#allocation2 + $0xe1] sm:$0xff] }
 0x2c7   :  { %10295 = vmatmul.mubr.msk.f32.gmra.mrb[16].mxu1 %vm745_vm2, %v5049_v3  ;;  %10546 = vmatprep.mubr.msk.f32.mxu0 %vm745_vm2, %v11152_v20  ;;  %v11179_v20 = vld [vmem:[#allocation2 + $0x291] sm:$0xff] }
 0x2c8   :  { %10297 = vmatprep.mubr.msk.f32.mxu1 %vm745_vm2, %v5050_v16 }
 0x2ca   :  { %10547 = vmatmul.mubr.msk.f32.gmra.mrb[148].mxu0 %vm745_vm2, %v11153_v42  ;;  %v11180_v42 = vld [vmem:[#allocation2 + $0x2a1] sm:$0xff] }
 0x2cb   :  { %10298 = vmatmul.mubr.msk.f32.gmra.mrb[18].mxu1 %vm745_vm2, %v5051_v31  ;;  %10549 = vmatprep.mubr.msk.f32.mxu0 %vm745_vm2, %v11154_v10  ;;  %v5722_v31 = vld [vmem:[#allocation2 + $0xf1] sm:$0xff]  ;;  %v5723_v10 = vld [vmem:[#allocation2 + $0xf9] sm:$0xff] }
 0x2cc   :  { %10300 = vmatprep.mubr.msk.f32.mxu1 %vm745_vm2, %v5052_v47 }
 0x2ce   :  { %10550 = vmatmul.mubr.msk.f32.gmra.mrb[150].mxu0 %vm745_vm2, %v11155_v13  ;;  %v11181_v13 = vld [vmem:[#allocation2 + $0x2a9] sm:$0xff] }
 0x2cf   :  { %10301 = vmatmul.mubr.msk.f32.gmra.mrb[20].mxu1 %vm745_vm2, %v5053_v12  ;;  %10552 = vmatprep.mubr.msk.f32.mxu0 %vm745_vm2, %v11156_v29  ;;  %v11182_v29 = vld [vmem:[#allocation2 + $0x2b9] sm:$0xff] }
 0x2d0   :  { %10303 = vmatprep.mubr.msk.f32.mxu1 %vm745_vm2, %v5054_v15  ;;  %v5724_v15 = vld [vmem:[#allocation2 + $0x109] sm:$0xff] }
 0x2d2   :  { %10553 = vmatmul.mubr.msk.f32.gmra.mrb[152].mxu0 %vm745_vm2, %v11157_v34  ;;  %v5725_v34 = vld [vmem:[#allocation2 + $0x111] sm:$0xff] }
 0x2d3   :  { %10304 = vmatmul.mubr.msk.f32.gmra.mrb[22].mxu1 %vm745_vm2, %v5055_v33  ;;  %10555 = vmatprep.mubr.msk.f32.mxu0 %vm745_vm2, %v11158_v51  ;;  %v11183_v51 = vld [vmem:[#allocation2 + $0x2c1] sm:$0xff] }
 0x2d4   :  { %10306 = vmatprep.mubr.msk.f32.mxu1 %vm745_vm2, %v5056_v6 }
 0x2d6   :  { %10556 = vmatmul.mubr.msk.f32.gmra.mrb[154].mxu0 %vm745_vm2, %v11159_v53  ;;  %v11184_v53 = vld [vmem:[#allocation2 + $0x2d1] sm:$0xff] }
 0x2d7   :  { %10307 = vmatmul.mubr.msk.f32.gmra.mrb[24].mxu1 %vm745_vm2, %v5057_v52  ;;  %10558 = vmatprep.mubr.msk.f32.mxu0 %vm745_vm2, %v11160_v4  ;;  %v5726_v52 = vld [vmem:[#allocation2 + $0x121] sm:$0xff]  ;;  %v5727_v4 = vld [vmem:[#allocation2 + $0x129] sm:$0xff] }
 0x2d8   :  { %10309 = vmatprep.mubr.msk.f32.mxu1 %vm745_vm2, %v5058_v58 }
 0x2da   :  { %10559 = vmatmul.mubr.msk.f32.gmra.mrb[156].mxu0 %vm745_vm2, %v11161_v21  ;;  %v11185_v21 = vld [vmem:[#allocation2 + $0x2d9] sm:$0xff] }
 0x2db   :  { %10310 = vmatmul.mubr.msk.f32.gmra.mrb[26].mxu1 %vm745_vm2, %v5059_v14  ;;  %10561 = vmatprep.mubr.msk.f32.mxu0 %vm745_vm2, %v12304_v28  ;;  %v11164_v28 = vld [vmem:[#allocation2 + $0x1e1] sm:$0xff] }
 0x2dc   :  { %10312 = vmatprep.mubr.msk.f32.mxu1 %vm745_vm2, %v5060_v23  ;;  %v5728_v23 = vld [vmem:[#allocation2 + $0x139] sm:$0xff] }
 0x2de   :  { %10562 = vmatmul.mubr.msk.f32.gmra.mrb[158].mxu0 %vm745_vm2, %v12309_v63  ;;  %v11165_v63 = vld [vmem:[#allocation2 + $0x1e9] sm:$0xff] }
 0x2df   :  { %10313 = vmatmul.mubr.msk.f32.gmra.mrb[28].mxu1 %vm745_vm2, %v5061_v44  ;;  %10564 = vmatprep.mubr.msk.f32.mxu0 %vm745_vm2, %v11162_v50  ;;  %v5729_v50 = vld [vmem:[#allocation2 + $0x141] sm:$0xff] }
 0x2e0   :  { %10315 = vmatprep.mubr.msk.f32.mxu1 %vm745_vm2, %v5062_v43  ;;  %v11186_v43 = vld [vmem:[#allocation2 + $0x2e9] sm:$0xff] }
 0x2e2   :  { %10565 = vmatmul.mubr.msk.f32.gmra.mrb[160].mxu0 %vm745_vm2, %v11163_v2  ;;  %v11187_v2 = vld [vmem:[#allocation2 + $0x2f1] sm:$0xff] }
 0x2e3   :  { %10316 = vmatmul.mubr.msk.f32.gmra.mrb[30].mxu1 %vm745_vm2, %v5063_v22  ;;  %10567 = vmatprep.mubr.msk.f32.mxu0 %vm745_vm2, %v11164_v28  ;;  %v11188_v28 = vld [vmem:[#allocation2 + $0x301] sm:$0xff] }
 0x2e4   :  { %10320 = vmatprep.mubr.msk.f32.mxu1 %vm745_vm2, %v5706_v1  ;;  %v5730_v1 = vld [vmem:[#allocation2 + $0x151] sm:$0xff] }
 0x2e6   :  { %10568 = vmatmul.mubr.msk.f32.gmra.mrb[162].mxu0 %vm745_vm2, %v11165_v63  ;;  %v5731_v63 = vld [vmem:[#allocation2 + $0x159] sm:$0xff] }
 0x2e7   :  { %10321 = vmatmul.mubr.msk.f32.vlgmr.msra.gmra.mrb[32].mxu1 %vm745_vm2, %v5707_v39  ;;  %10570 = vmatprep.mubr.msk.f32.mxu0 %vm745_vm2, %v11166_v5  ;;  %v11189_v5 = vld [vmem:[#allocation2 + $0x309] sm:$0xff] }
 0x2e8   :  { %10417 = vmatpush3.msra.mxu1 %v12589_v45  ;;  %10323 = vmatprep.mubr.msk.f32.mxu1 %vm745_vm2, %v5708_v30  ;;  %v11169_v45 = vld [vmem:[#allocation2 + $0x219] sm:$0xff] }
 0x2ea   :  { %10571 = vmatmul.mubr.msk.f32.gmra.mrb[164].mxu0 %vm745_vm2, %v11167_v38  ;;  %v11190_v38 = vld [vmem:[#allocation2 + $0x319] sm:$0xff] }
 0x2eb   :  { %10324 = vmatmul.mubr.msk.f32.gmra.mrb[34].mxu1 %vm745_vm2, %v5709_v32  ;;  %10573 = vmatprep.mubr.msk.f32.mxu0 %vm745_vm2, %v11168_v36  ;;  %v5732_v32 = vld [vmem:[#allocation2 + $0x169] sm:$0xff]  ;;  %v5733_v36 = vld [vmem:[#allocation2 + $0x171] sm:$0xff] }
 0x2ec   :  { %10326 = vmatprep.mubr.msk.f32.mxu1 %vm745_vm2, %v5710_v18 }
 0x2ee   :  { %10574 = vmatmul.mubr.msk.f32.gmra.mrb[166].mxu0 %vm745_vm2, %v11169_v45  ;;  %v11191_v45 = vld [vmem:[#allocation2 + $0x321] sm:$0xff] }
 0x2ef   :  { %10327 = vmatmul.mubr.msk.f32.gmra.mrb[36].mxu1 %vm745_vm2, %v5711_v55  ;;  %10576 = vmatprep.mubr.msk.f32.mxu0 %vm745_vm2, %v11170_v24  ;;  %v11192_v24 = vld [vmem:[#allocation2 + $0x331] sm:$0xff] }
 0x2f0   :  { %10329 = vmatprep.mubr.msk.f32.mxu1 %vm745_vm2, %v5712_v60  ;;  %v5734_v60 = vld [vmem:[#allocation2 + $0x181] sm:$0xff] }
 0x2f2   :  { %10577 = vmatmul.mubr.msk.f32.gmra.mrb[168].mxu0 %vm745_vm2, %v11171_v40 }
 0x2f3   :  { %10330 = vmatmul.mubr.msk.f32.gmra.mrb[38].mxu1 %vm745_vm2, %v5713_v26  ;;  %10579 = vmatprep.mubr.msk.f32.mxu0 %vm745_vm2, %v11172_v48  ;;  %v5736_v26 = vld [vmem:[#allocation2 + $0x199] sm:$0xff] }
 0x2f4   :  { %10332 = vmatprep.mubr.msk.f32.mxu1 %vm745_vm2, %v5714_v46  ;;  %v5735_v46 = vld [vmem:[#allocation2 + $0x189] sm:$0xff] }
 0x2f5   :  { %v12740_v41 = vpop.f32.mrb[96].mxu0 }
 0x2f6   :  { %10580 = vmatmul.mubr.msk.f32.gmra.mrb[170].mxu0 %vm745_vm2, %v11173_v56  ;;  %v12744_v9 = vpop.f32.mrb[97].mxu0  ;;  %v5737_v56 = vld [vmem:[#allocation2 + $0x1a1] sm:$0xff] }
 0x2f7   :  { %10333 = vmatmul.mubr.msk.f32.gmra.mrb[40].mxu1 %vm745_vm2, %v5715_v54  ;;  %10582 = vmatprep.mubr.msk.f32.mxu0 %vm745_vm2, %v11174_v11  ;;  %v11193_v54 = vld [vmem:[#allocation2 + $0x339] sm:$0xff] }
 0x2f8   :  { %10335 = vmatprep.mubr.msk.f32.mxu1 %vm745_vm2, %v5716_v62 }
 0x2f9   :  { %v12748_v17 = vpop.f32.mrb[98].mxu0 }
 0x2fa   :  { %v12750_v61 = vpop.f32.mrb[99].mxu0  ;;  %10583 = vmatmul.mubr.msk.f32.gmra.mrb[172].mxu0 %vm745_vm2, %v11175_v25 }
 0x2fb   :  { %10336 = vmatmul.mubr.msk.f32.gmra.mrb[42].mxu1 %vm745_vm2, %v5717_v19  ;;  %10585 = vmatprep.mubr.msk.f32.mxu0 %vm745_vm2, %v11176_v35  ;;  %v5738_v19 = vld [vmem:[#allocation2 + $0x1e1] sm:$0xff] }
 0x2fc   :  { %10338 = vmatprep.mubr.msk.f32.mxu1 %vm745_vm2, %v5718_v27  ;;  %v5739_v27 = vld [vmem:[#allocation2 + $0x1e9] sm:$0xff] }
 0x2fd   :  { %v12756_v37 = vpop.f32.mrb[100].mxu0 }
 0x2fe   :  { %v12758_v7 = vpop.f32.mrb[101].mxu0  ;;  %10586 = vmatmul.mubr.msk.f32.gmra.mrb[174].mxu0 %vm745_vm2, %v11177_v57 }
 0x2ff   :  { %10339 = vmatmul.mubr.msk.f32.gmra.mrb[44].mxu1 %vm745_vm2, %v5719_v49  ;;  %10588 = vmatprep.mubr.msk.f32.mxu0 %vm745_vm2, %v11178_v0  ;;  %v5740_v49 = vld [vmem:[#allocation2 + $0x1f9] sm:$0xff] }
 0x300   :  { %10341 = vmatprep.mubr.msk.f32.mxu1 %vm745_vm2, %v5720_v59  ;;  %v5741_v59 = vld [vmem:[#allocation2 + $0x201] sm:$0xff] }
 0x301   :  { %v12764_v3 = vpop.f32.mrb[102].mxu0 }
 0x302   :  { %v12766_v16 = vpop.f32.mrb[103].mxu0  ;;  %10589 = vmatmul.mubr.msk.f32.gmra.mrb[176].mxu0 %vm745_vm2, %v11179_v20 }
 0x303   :  { %10342 = vmatmul.mubr.msk.f32.gmra.mrb[46].mxu1 %vm745_vm2, %v5721_v8  ;;  %10591 = vmatprep.mubr.msk.f32.mxu0 %vm745_vm2, %v11180_v42  ;;  %v5742_v8 = vld [vmem:[#allocation2 + $0x211] sm:$0xff] }
 0x304   :  { %10344 = vmatprep.mubr.msk.f32.mxu1 %vm745_vm2, %v5722_v31  ;;  %v5743_v31 = vld [vmem:[#allocation2 + $0x219] sm:$0xff] }
 0x305   :  { %v12772_v47 = vpop.f32.mrb[104].mxu0 }
 0x306   :  { %v12774_v12 = vpop.f32.mrb[105].mxu0  ;;  %10592 = vmatmul.mubr.msk.f32.gmra.mrb[178].mxu0 %vm745_vm2, %v11181_v13 }
 0x307   :  { %10345 = vmatmul.mubr.msk.f32.gmra.mrb[48].mxu1 %vm745_vm2, %v5723_v10  ;;  %10594 = vmatprep.mubr.msk.f32.mxu0 %vm745_vm2, %v11182_v29  ;;  %v5744_v10 = vld [vmem:[#allocation2 + $0x229] sm:$0xff] }
 0x308   :  { %10347 = vmatprep.mubr.msk.f32.mxu1 %vm745_vm2, %v5724_v15  ;;  %v5745_v15 = vld [vmem:[#allocation2 + $0x231] sm:$0xff] }
 0x309   :  { %v12780_v33 = vpop.f32.mrb[106].mxu0 }
 0x30a   :  { %v12782_v6 = vpop.f32.mrb[107].mxu0  ;;  %10595 = vmatmul.mubr.msk.f32.gmra.mrb[180].mxu0 %vm745_vm2, %v11183_v51 }
 0x30b   :  { %10348 = vmatmul.mubr.msk.f32.gmra.mrb[50].mxu1 %vm745_vm2, %v5725_v34  ;;  %10597 = vmatprep.mubr.msk.f32.mxu0 %vm745_vm2, %v11184_v53  ;;  %v5746_v34 = vld [vmem:[#allocation2 + $0x241] sm:$0xff] }
 0x30c   :  { %10350 = vmatprep.mubr.msk.f32.mxu1 %vm745_vm2, %v5726_v52  ;;  %v5747_v52 = vld [vmem:[#allocation2 + $0x249] sm:$0xff] }
 0x30d   :  { %v12788_v58 = vpop.f32.mrb[108].mxu0 }
 0x30e   :  { %v12790_v14 = vpop.f32.mrb[109].mxu0  ;;  %10598 = vmatmul.mubr.msk.f32.gmra.mrb[182].mxu0 %vm745_vm2, %v11185_v21 }
 0x30f   :  { %10351 = vmatmul.mubr.msk.f32.gmra.mrb[52].mxu1 %vm745_vm2, %v5727_v4  ;;  %10600 = vmatprep.mubr.msk.f32.mxu0 %vm745_vm2, %v11186_v43  ;;  %v5748_v4 = vld [vmem:[#allocation2 + $0x259] sm:$0xff] }
 0x310   :  { %10353 = vmatprep.mubr.msk.f32.mxu1 %vm745_vm2, %v5728_v23  ;;  %v5749_v23 = vld [vmem:[#allocation2 + $0x261] sm:$0xff] }
 0x311   :  { %v12796_v44 = vpop.f32.mrb[110].mxu0 }
 0x312   :  { %v12798_v22 = vpop.f32.mrb[111].mxu0  ;;  %10601 = vmatmul.mubr.msk.f32.gmra.mrb[184].mxu0 %vm745_vm2, %v11187_v2 }
 0x313   :  { %10354 = vmatmul.mubr.msk.f32.gmra.mrb[54].mxu1 %vm745_vm2, %v5729_v50  ;;  %10603 = vmatprep.mubr.msk.f32.mxu0 %vm745_vm2, %v11188_v28  ;;  %v5750_v50 = vld [vmem:[#allocation2 + $0x271] sm:$0xff] }
 0x314   :  { %10356 = vmatprep.mubr.msk.f32.mxu1 %vm745_vm2, %v5730_v1  ;;  %v5751_v1 = vld [vmem:[#allocation2 + $0x279] sm:$0xff] }
 0x315   :  { %v12804_v39 = vpop.f32.mrb[112].mxu0 }
 0x316   :  { %v12806_v30 = vpop.f32.mrb[113].mxu0  ;;  %10604 = vmatmul.mubr.msk.f32.gmra.mrb[186].mxu0 %vm745_vm2, %v11189_v5 }
 0x317   :  { %10357 = vmatmul.mubr.msk.f32.gmra.mrb[56].mxu1 %vm745_vm2, %v5731_v63  ;;  %10606 = vmatprep.mubr.msk.f32.mxu0 %vm745_vm2, %v11190_v38  ;;  %v5752_v63 = vld [vmem:[#allocation2 + $0x289] sm:$0xff] }
 0x318   :  { %10359 = vmatprep.mubr.msk.f32.mxu1 %vm745_vm2, %v5732_v32  ;;  %v5753_v32 = vld [vmem:[#allocation2 + $0x291] sm:$0xff] }
 0x319   :  { %v12812_v18 = vpop.f32.mrb[114].mxu0 }
 0x31a   :  { %13719 = vst [vmem:[#allocation6_spill] sm:$0xff] %v12812_v18  ;;  %v12814_v55 = vpop.f32.mrb[115].mxu0  ;;  %10607 = vmatmul.mubr.msk.f32.gmra.mrb[188].mxu0 %vm745_vm2, %v11191_v45 }
 0x31b   :  { %13720 = vst [vmem:[#allocation8_spill] sm:$0xff] %v12814_v55  ;;  %10360 = vmatmul.mubr.msk.f32.gmra.mrb[58].mxu1 %vm745_vm2, %v5733_v36  ;;  %10609 = vmatprep.mubr.msk.f32.mxu0 %vm745_vm2, %v11192_v24  ;;  %v5754_v36 = vld [vmem:[#allocation2 + $0x2a1] sm:$0xff] }
 0x31c   :  { %10362 = vmatprep.mubr.msk.f32.mxu1 %vm745_vm2, %v5734_v60  ;;  %v5755_v60 = vld [vmem:[#allocation2 + $0x2a9] sm:$0xff] }
 0x31d   :  { %v12820_v40 = vpop.f32.mrb[116].mxu0 }
 0x31e   :  { %13721 = vst [vmem:[#allocation7_spill] sm:$0xff] %v12820_v40  ;;  %v12822_v48 = vpop.f32.mrb[117].mxu0  ;;  %10610 = vmatmul.mubr.msk.f32.gmra.mrb[190].mxu0 %vm745_vm2, %v11193_v54  ;;  %v5757_v54 = vld [vmem:[#allocation2 + $0x2c1] sm:$0xff] }
 0x31f   :  { %13722 = vst [vmem:[#allocation9_spill] sm:$0xff] %v12822_v48  ;;  %10363 = vmatmul.mubr.msk.f32.gmra.mrb[60].mxu1 %vm745_vm2, %v5735_v46 }
 0x320   :  { %10365 = vmatprep.mubr.msk.f32.mxu1 %vm745_vm2, %v5736_v26  ;;  %v5756_v26 = vld [vmem:[#allocation2 + $0x2b9] sm:$0xff] }
 0x321   :  { %v12827_v62 = vpop.f32.mrb[118].mxu0 }
 0x322   :  { %13723 = vst [vmem:[#allocation10_spill] sm:$0xff] %v12827_v62  ;;  %v12829_v11 = vpop.f32.mrb[119].mxu0  ;;  %v6441_v62 = vld [vmem:[#allocation2 + $0x18a] sm:$0xff] }
 0x323   :  { %13724 = vst [vmem:[#allocation12_spill] sm:$0xff] %v12829_v11  ;;  %10366 = vmatmul.mubr.msk.f32.gmra.mrb[62].mxu1 %vm745_vm2, %v5737_v56 }
 0x324   :  { %10368 = vmatprep.mubr.msk.f32.mxu1 %vm745_vm2, %v5738_v19  ;;  %v5758_v19 = vld [vmem:[#allocation2 + $0x2d1] sm:$0xff] }
 0x325   :  { %v12833_v25 = vpop.f32.mrb[120].mxu0 }
 0x326   :  { %13725 = vst [vmem:[#allocation11_spill] sm:$0xff] %v12833_v25  ;;  %v12835_v35 = vpop.f32.mrb[121].mxu0  ;;  %v6423_v25 = vld [vmem:[#allocation2 + $0xb2] sm:$0xff] }
 0x327   :  { %13726 = vst [vmem:[#allocation13_spill] sm:$0xff] %v12835_v35  ;;  %10369 = vmatmul.mubr.msk.f32.gmra.mrb[0].mxu1 %vm745_vm2, %v5739_v27 }
 0x328   :  { %10371 = vmatprep.mubr.msk.f32.mxu1 %vm745_vm2, %v5740_v49  ;;  %v5759_v49 = vld [vmem:[#allocation2 + $0x2d9] sm:$0xff] }
 0x329   :  { %v12839_v57 = vpop.f32.mrb[122].mxu0 }
 0x32a   :  { %13727 = vst [vmem:[#allocation14_spill] sm:$0xff] %v12839_v57  ;;  %v12841_v0 = vpop.f32.mrb[123].mxu0  ;;  %v6421_v57 = vld [vmem:[#allocation2 + $0x9a] sm:$0xff] }
 0x32b   :  { %13728 = vst [vmem:[#allocation16_spill] sm:$0xff] %v12841_v0  ;;  %10372 = vmatmul.mubr.msk.f32.gmra.mrb[2].mxu1 %vm745_vm2, %v5741_v59 }
 0x32c   :  { %10374 = vmatprep.mubr.msk.f32.mxu1 %vm745_vm2, %v5742_v8  ;;  %v5760_v8 = vld [vmem:[#allocation2 + $0x2e9] sm:$0xff] }
 0x32d   :  { %v12845_v20 = vpop.f32.mrb[124].mxu0 }
 0x32e   :  { %13729 = vst [vmem:[#allocation15_spill] sm:$0xff] %v12845_v20  ;;  %v12847_v42 = vpop.f32.mrb[125].mxu0  ;;  %v6419_v20 = vld [vmem:[#allocation2 + $0x82] sm:$0xff] }
 0x32f   :  { %13730 = vst [vmem:[#allocation17_spill] sm:$0xff] %v12847_v42  ;;  %10375 = vmatmul.mubr.msk.f32.gmra.mrb[4].mxu1 %vm745_vm2, %v5743_v31 }
 0x330   :  { %10377 = vmatprep.mubr.msk.f32.mxu1 %vm745_vm2, %v5744_v10  ;;  %v5761_v10 = vld [vmem:[#allocation2 + $0x2f1] sm:$0xff] }
 0x331   :  { %v12851_v13 = vpop.f32.mrb[126].mxu0 }
 0x332   :  { %13731 = vst [vmem:[#allocation18_spill] sm:$0xff] %v12851_v13  ;;  %v12853_v29 = vpop.f32.mrb[127].mxu0  ;;  %v6417_v13 = vld [vmem:[#allocation2 + $0x6a] sm:$0xff] }
 0x333   :  { %13732 = vst [vmem:[#allocation20_spill] sm:$0xff] %v12853_v29  ;;  %10378 = vmatmul.mubr.msk.f32.gmra.mrb[6].mxu1 %vm745_vm2, %v5745_v15 }
 0x334   :  { %10380 = vmatprep.mubr.msk.f32.mxu1 %vm745_vm2, %v5746_v34  ;;  %v5762_v34 = vld [vmem:[#allocation2 + $0x301] sm:$0xff] }
 0x335   :  { %v12857_v51 = vpop.f32.mrb[64].mxu0 }
 0x336   :  { %v12859_v53 = vpop.f32.mrb[65].mxu0 }
 0x337   :  { %10381 = vmatmul.mubr.msk.f32.gmra.mrb[8].mxu1 %vm745_vm2, %v5747_v52 }
 0x338   :  { %10383 = vmatprep.mubr.msk.f32.mxu1 %vm745_vm2, %v5748_v4  ;;  %v5763_v4 = vld [vmem:[#allocation2 + $0x309] sm:$0xff] }
 0x339   :  { %v12863_v21 = vpop.f32.mrb[66].mxu0 }
 0x33a   :  { %v12865_v43 = vpop.f32.mrb[67].mxu0 }
 0x33b   :  { %10384 = vmatmul.mubr.msk.f32.gmra.mrb[10].mxu1 %vm745_vm2, %v5749_v23 }
 0x33c   :  { %10386 = vmatprep.mubr.msk.f32.mxu1 %vm745_vm2, %v5750_v50  ;;  %v5764_v50 = vld [vmem:[#allocation2 + $0x319] sm:$0xff] }
 0x33d   :  { %v12869_v2 = vpop.f32.mrb[68].mxu0 }
 0x33e   :  { %v12871_v28 = vpop.f32.mrb[69].mxu0 }
 0x33f   :  { %10387 = vmatmul.mubr.msk.f32.gmra.mrb[12].mxu1 %vm745_vm2, %v5751_v1 }
 0x340   :  { %10389 = vmatprep.mubr.msk.f32.mxu1 %vm745_vm2, %v5752_v63  ;;  %v5765_v63 = vld [vmem:[#allocation2 + $0x321] sm:$0xff] }
 0x341   :  { %v12875_v5 = vpop.f32.mrb[70].mxu0 }
 0x342   :  { %v12877_v38 = vpop.f32.mrb[71].mxu0 }
 0x343   :  { %10390 = vmatmul.mubr.msk.f32.gmra.mrb[14].mxu1 %vm745_vm2, %v5753_v32 }
 0x344   :  { %10392 = vmatprep.mubr.msk.f32.mxu1 %vm745_vm2, %v5754_v36  ;;  %v5766_v36 = vld [vmem:[#allocation2 + $0x331] sm:$0xff] }
 0x345   :  { %v12881_v45 = vpop.f32.mrb[72].mxu0 }
 0x346   :  { %v12883_v24 = vpop.f32.mrb[73].mxu0 }
 0x347   :  { %10393 = vmatmul.mubr.msk.f32.gmra.mrb[16].mxu1 %vm745_vm2, %v5755_v60  ;;  %v5768_v60 = vld [vmem:[#allocation2 + $0x349] sm:$0xff] }
 0x348   :  { %10395 = vmatprep.mubr.msk.f32.mxu1 %vm745_vm2, %v5756_v26 }
 0x349   :  { %v12887_v46 = vpop.f32.mrb[74].mxu0 }
 0x34a   :  { %v12889_v56 = vpop.f32.mrb[75].mxu0 }
 0x34b   :  { %10396 = vmatmul.mubr.msk.f32.gmra.mrb[18].mxu1 %vm745_vm2, %v5757_v54  ;;  %v5767_v54 = vld [vmem:[#allocation2 + $0x339] sm:$0xff] }
 0x34c   :  { %10398 = vmatprep.mubr.msk.f32.mxu1 %vm745_vm2, %v5758_v19 }
 0x34d   :  { %v12893_v27 = vpop.f32.mrb[76].mxu0 }
 0x34e   :  { %v12895_v59 = vpop.f32.mrb[77].mxu0 }
 0x34f   :  { %10399 = vmatmul.mubr.msk.f32.gmra.mrb[20].mxu1 %vm745_vm2, %v5759_v49  ;;  %v5769_v49 = vld [vmem:[#allocation2 + $0x351] sm:$0xff] }
 0x350   :  { %10401 = vmatprep.mubr.msk.f32.mxu1 %vm745_vm2, %v5760_v8 }
 0x351   :  { %v12899_v31 = vpop.f32.mrb[78].mxu0 }
 0x352   :  { %v12901_v15 = vpop.f32.mrb[79].mxu0 }
 0x353   :  { %10402 = vmatmul.mubr.msk.f32.gmra.mrb[22].mxu1 %vm745_vm2, %v5761_v10 }
 0x354   :  { %10404 = vmatprep.mubr.msk.f32.mxu1 %vm745_vm2, %v5762_v34  ;;  %v6412_v34 = vld [vmem:[#allocation2 + $0x32] sm:$0xff] }
 0x355   :  { %v12905_v52 = vpop.f32.mrb[80].mxu0 }
 0x356   :  { %v12907_v23 = vpop.f32.mrb[81].mxu0 }
 0x357   :  { %10405 = vmatmul.mubr.msk.f32.gmra.mrb[24].mxu1 %vm745_vm2, %v5763_v4 }
 0x358   :  { %10407 = vmatprep.mubr.msk.f32.mxu1 %vm745_vm2, %v5764_v50  ;;  %v6413_v50 = vld [vmem:[#allocation2 + $0x3a] sm:$0xff] }
 0x359   :  { %v12911_v1 = vpop.f32.mrb[82].mxu0 }
 0x35a   :  { %v12913_v32 = vpop.f32.mrb[83].mxu0 }
 0x35b   :  { %10408 = vmatmul.mubr.msk.f32.gmra.mrb[26].mxu1 %vm745_vm2, %v5765_v63 }
 0x35c   :  { %10410 = vmatprep.mubr.msk.f32.mxu1 %vm745_vm2, %v5766_v36  ;;  %v6414_v36 = vld [vmem:[#allocation2 + $0x4a] sm:$0xff] }
 0x35d   :  { %v12917_v26 = vpop.f32.mrb[84].mxu0 }
 0x35e   :  { %v12919_v19 = vpop.f32.mrb[85].mxu0 }
 0x35f   :  { %10411 = vmatmul.mubr.msk.f32.gmra.mrb[28].mxu1 %vm745_vm2, %v5767_v54  ;;  %v6415_v54 = vld [vmem:[#allocation2 + $0x52] sm:$0xff] }
 0x360   :  { %10413 = vmatprep.mubr.msk.f32.mxu1 %vm745_vm2, %v5768_v60 }
 0x361   :  { %v12923_v8 = vpop.f32.mrb[86].mxu0 }
 0x362   :  { %v12925_v10 = vpop.f32.mrb[87].mxu0 }
 0x363   :  { %10414 = vmatmul.mubr.msk.f32.gmra.mrb[30].mxu1 %vm745_vm2, %v5769_v49  ;;  %v6416_v49 = vld [vmem:[#allocation2 + $0x62] sm:$0xff] }
 0x364   :  { %10418 = vmatprep.mubr.msk.f32.mxu1 %vm745_vm2, %v6412_v34 }
 0x365   :  { %v12929_v4 = vpop.f32.mrb[88].mxu0 }
 0x366   :  { %v12931_v63 = vpop.f32.mrb[89].mxu0 }
 0x367   :  { %10419 = vmatmul.mubr.msk.f32.vlgmr.msra.gmra.mrb[32].mxu1 %vm745_vm2, %v6413_v50  ;;  %v6418_v50 = vld [vmem:[#allocation2 + $0x7a] sm:$0xff] }
 0x368   :  { %10421 = vmatprep.mubr.msk.f32.mxu1 %vm745_vm2, %v6414_v36 }
 0x369   :  { %v12935_v60 = vpop.f32.mrb[90].mxu0 }
 0x36a   :  { %v12937_v29 = vpop.f32.mrb[91].mxu0 }
 0x36b   :  { %10422 = vmatmul.mubr.msk.f32.gmra.mrb[34].mxu1 %vm745_vm2, %v6415_v54  ;;  %v6420_v54 = vld [vmem:[#allocation2 + $0x92] sm:$0xff] }
 0x36c   :  { %10424 = vmatprep.mubr.msk.f32.mxu1 %vm745_vm2, %v6416_v49 }
 0x36d   :  { %v12941_v34 = vpop.f32.mrb[92].mxu0 }
 0x36e   :  { %v12943_v42 = vpop.f32.mrb[93].mxu0 }
 0x36f   :  { %10425 = vmatmul.mubr.msk.f32.gmra.mrb[36].mxu1 %vm745_vm2, %v6417_v13  ;;  %v6422_v13 = vld [vmem:[#allocation2 + $0xaa] sm:$0xff] }
 0x370   :  { %10427 = vmatprep.mubr.msk.f32.mxu1 %vm745_vm2, %v6418_v50 }
 0x371   :  { %v12947_v36 = vpop.f32.mrb[94].mxu0 }
 0x372   :  { %v12949_v0 = vpop.f32.mrb[95].mxu0 }
 0x373   :  { %10428 = vmatmul.mubr.msk.f32.gmra.mrb[38].mxu1 %vm745_vm2, %v6419_v20  ;;  %v6424_v20 = vld [vmem:[#allocation2 + $0xc2] sm:$0xff] }
 0x374   :  { %10430 = vmatprep.mubr.msk.f32.mxu1 %vm745_vm2, %v6420_v54 }
 0x375   :  { %v12953_v49 = vpop.f32.mrb[128].mxu0 }
 0x376   :  { %13733 = vst [vmem:[#allocation19_spill] sm:$0xff] %v12953_v49  ;;  %v12956_v35 = vpop.f32.mrb[129].mxu0  ;;  %v6425_v49 = vld [vmem:[#allocation2 + $0xca] sm:$0xff] }
 0x377   :  { %10431 = vmatmul.mubr.msk.f32.gmra.mrb[40].mxu1 %vm745_vm2, %v6421_v57  ;;  %13734 = vst [vmem:[#allocation21_spill] sm:$0xff] %v12956_v35  ;;  %v6426_v35 = vld [vmem:[#allocation2 + $0xda] sm:$0xff] }
 0x378   :  { %10433 = vmatprep.mubr.msk.f32.mxu1 %vm745_vm2, %v6422_v13 }
 0x379   :  { %v12959_v50 = vpop.f32.mrb[130].mxu0 }
 0x37a   :  { %13735 = vst [vmem:[#allocation22_spill] sm:$0xff] %v12959_v50  ;;  %v12962_v11 = vpop.f32.mrb[131].mxu0  ;;  %v6427_v50 = vld [vmem:[#allocation2 + $0xe2] sm:$0xff] }
 0x37b   :  { %10434 = vmatmul.mubr.msk.f32.gmra.mrb[42].mxu1 %vm745_vm2, %v6423_v25  ;;  %13736 = vst [vmem:[#allocation24_spill] sm:$0xff] %v12962_v11  ;;  %v6428_v11 = vld [vmem:[#allocation2 + $0xf2] sm:$0xff] }
 0x37c   :  { %10436 = vmatprep.mubr.msk.f32.mxu1 %vm745_vm2, %v6424_v20 }
 0x37d   :  { %v12965_v54 = vpop.f32.mrb[132].mxu0 }
 0x37e   :  { %13737 = vst [vmem:[#allocation23_spill] sm:$0xff] %v12965_v54  ;;  %v12968_v57 = vpop.f32.mrb[133].mxu0  ;;  %v6429_v54 = vld [vmem:[#allocation2 + $0xfa] sm:$0xff] }
 0x37f   :  { %10437 = vmatmul.mubr.msk.f32.gmra.mrb[44].mxu1 %vm745_vm2, %v6425_v49  ;;  %13738 = vst [vmem:[#allocation25_spill] sm:$0xff] %v12968_v57  ;;  %v6430_v57 = vld [vmem:[#allocation2 + $0x10a] sm:$0xff] }
 0x380   :  { %10439 = vmatprep.mubr.msk.f32.mxu1 %vm745_vm2, %v6426_v35 }
 0x381   :  { %v12971_v13 = vpop.f32.mrb[134].mxu0 }
 0x382   :  { %13739 = vst [vmem:[#allocation26_spill] sm:$0xff] %v12971_v13  ;;  %v12974_v25 = vpop.f32.mrb[135].mxu0  ;;  %v6431_v13 = vld [vmem:[#allocation2 + $0x112] sm:$0xff] }
 0x383   :  { %10440 = vmatmul.mubr.msk.f32.gmra.mrb[46].mxu1 %vm745_vm2, %v6427_v50  ;;  %13740 = vst [vmem:[#allocation28_spill] sm:$0xff] %v12974_v25  ;;  %v6432_v25 = vld [vmem:[#allocation2 + $0x122] sm:$0xff] }
 0x384   :  { %10442 = vmatprep.mubr.msk.f32.mxu1 %vm745_vm2, %v6428_v11 }
 0x385   :  { %v12977_v20 = vpop.f32.mrb[136].mxu0 }
 0x386   :  { %13741 = vst [vmem:[#allocation27_spill] sm:$0xff] %v12977_v20  ;;  %v12980_v49 = vpop.f32.mrb[137].mxu0  ;;  %v6433_v20 = vld [vmem:[#allocation2 + $0x12a] sm:$0xff] }
 0x387   :  { %10443 = vmatmul.mubr.msk.f32.gmra.mrb[48].mxu1 %vm745_vm2, %v6429_v54  ;;  %13742 = vst [vmem:[#allocation29_spill] sm:$0xff] %v12980_v49  ;;  %v6434_v49 = vld [vmem:[#allocation2 + $0x13a] sm:$0xff] }
 0x388   :  { %10445 = vmatprep.mubr.msk.f32.mxu1 %vm745_vm2, %v6430_v57 }
 0x389   :  { %v12983_v35 = vpop.f32.mrb[138].mxu0 }
 0x38a   :  { %13743 = vst [vmem:[#allocation30_spill] sm:$0xff] %v12983_v35  ;;  %v12986_v50 = vpop.f32.mrb[139].mxu0  ;;  %v6435_v35 = vld [vmem:[#allocation2 + $0x142] sm:$0xff] }
 0x38b   :  { %10446 = vmatmul.mubr.msk.f32.gmra.mrb[50].mxu1 %vm745_vm2, %v6431_v13  ;;  %13744 = vst [vmem:[#allocation32_spill] sm:$0xff] %v12986_v50  ;;  %v6436_v50 = vld [vmem:[#allocation2 + $0x152] sm:$0xff] }
 0x38c   :  { %10448 = vmatprep.mubr.msk.f32.mxu1 %vm745_vm2, %v6432_v25 }
 0x38d   :  { %v12989_v11 = vpop.f32.mrb[140].mxu0 }
 0x38e   :  { %13745 = vst [vmem:[#allocation31_spill] sm:$0xff] %v12989_v11  ;;  %v12992_v54 = vpop.f32.mrb[141].mxu0  ;;  %v6437_v11 = vld [vmem:[#allocation2 + $0x15a] sm:$0xff] }
 0x38f   :  { %10449 = vmatmul.mubr.msk.f32.gmra.mrb[52].mxu1 %vm745_vm2, %v6433_v20  ;;  %13746 = vst [vmem:[#allocation33_spill] sm:$0xff] %v12992_v54  ;;  %v6438_v54 = vld [vmem:[#allocation2 + $0x16a] sm:$0xff] }
 0x390   :  { %10451 = vmatprep.mubr.msk.f32.mxu1 %vm745_vm2, %v6434_v49 }
 0x391   :  { %v12995_v57 = vpop.f32.mrb[142].mxu0 }
 0x392   :  { %13747 = vst [vmem:[#allocation35_spill] sm:$0xff] %v12995_v57  ;;  %v12998_v13 = vpop.f32.mrb[143].mxu0  ;;  %v6439_v57 = vld [vmem:[#allocation2 + $0x172] sm:$0xff] }
 0x393   :  { %10452 = vmatmul.mubr.msk.f32.gmra.mrb[54].mxu1 %vm745_vm2, %v6435_v35  ;;  %13748 = vst [vmem:[#allocation34_spill] sm:$0xff] %v12998_v13  ;;  %v6440_v13 = vld [vmem:[#allocation2 + $0x182] sm:$0xff] }
 0x394   :  { %10454 = vmatprep.mubr.msk.f32.mxu1 %vm745_vm2, %v6436_v50  ;;  %v6442_v50 = vld [vmem:[#allocation2 + $0x19a] sm:$0xff] }
 0x395   :  { %v13001_v25 = vpop.f32.mrb[144].mxu0 }
 0x396   :  { %13749 = vst [vmem:[#allocation36_spill] sm:$0xff] %v13001_v25  ;;  %v13004_v20 = vpop.f32.mrb[145].mxu0 }
 0x397   :  { %10455 = vmatmul.mubr.msk.f32.gmra.mrb[56].mxu1 %vm745_vm2, %v6437_v11  ;;  %13750 = vst [vmem:[#allocation37_spill] sm:$0xff] %v13004_v20  ;;  %v6473_v20 = vld [vmem:[#allocation2 + $0x33a] sm:$0xff] }
 0x398   :  { %10457 = vmatprep.mubr.msk.f32.mxu1 %vm745_vm2, %v6438_v54  ;;  %v6443_v54 = vld [vmem:[#allocation2 + $0x1a2] sm:$0xff] }
 0x399   :  { %v13007_v49 = vpop.f32.mrb[146].mxu0 }
 0x39a   :  { %13751 = vst [vmem:[#allocation38_spill] sm:$0xff] %v13007_v49  ;;  %v13010_v35 = vpop.f32.mrb[147].mxu0 }
 0x39b   :  { %10458 = vmatmul.mubr.msk.f32.gmra.mrb[58].mxu1 %vm745_vm2, %v6439_v57  ;;  %13752 = vst [vmem:[#allocation39_spill] sm:$0xff] %v13010_v35  ;;  %v6444_v35 = vld [vmem:[#allocation2 + $0x1e2] sm:$0xff] }
 0x39c   :  { %10460 = vmatprep.mubr.msk.f32.mxu1 %vm745_vm2, %v6440_v13 }
 0x39d   :  { %v13013_v25 = vpop.f32.mrb[148].mxu0 }
 0x39e   :  { %13753 = vst [vmem:[#allocation40_spill] sm:$0xff] %v13013_v25  ;;  %v13016_v11 = vpop.f32.mrb[149].mxu0  ;;  %v6445_v25 = vld [vmem:[#allocation2 + $0x1ea] sm:$0xff] }
 0x39f   :  { %10461 = vmatmul.mubr.msk.f32.gmra.mrb[60].mxu1 %vm745_vm2, %v6441_v62  ;;  %13754 = vst [vmem:[#allocation41_spill] sm:$0xff] %v13016_v11  ;;  %v6446_v11 = vld [vmem:[#allocation2 + $0x1fa] sm:$0xff] }
 0x3a0   :  { %10463 = vmatprep.mubr.msk.f32.mxu1 %vm745_vm2, %v6442_v50 }
 0x3a1   :  { %v13019_v49 = vpop.f32.mrb[150].mxu0 }
 0x3a2   :  { %13755 = vst [vmem:[#allocation42_spill] sm:$0xff] %v13019_v49  ;;  %v13022_v57 = vpop.f32.mrb[151].mxu0  ;;  %v6447_v49 = vld [vmem:[#allocation2 + $0x202] sm:$0xff] }
 0x3a3   :  { %10464 = vmatmul.mubr.msk.f32.gmra.mrb[62].mxu1 %vm745_vm2, %v6443_v54  ;;  %13756 = vst [vmem:[#allocation43_spill] sm:$0xff] %v13022_v57  ;;  %v6448_v57 = vld [vmem:[#allocation2 + $0x212] sm:$0xff] }
 0x3a4   :  { %10466 = vmatprep.mubr.msk.f32.mxu1 %vm745_vm2, %v6444_v35 }
 0x3a5   :  { %v13025_v13 = vpop.f32.mrb[152].mxu0 }
 0x3a6   :  { %13757 = vst [vmem:[#allocation44_spill] sm:$0xff] %v13025_v13  ;;  %v13028_v62 = vpop.f32.mrb[153].mxu0  ;;  %v6449_v13 = vld [vmem:[#allocation2 + $0x21a] sm:$0xff] }
 0x3a7   :  { %10467 = vmatmul.mubr.msk.f32.gmra.mrb[0].mxu1 %vm745_vm2, %v6445_v25  ;;  %13758 = vst [vmem:[#allocation45_spill] sm:$0xff] %v13028_v62  ;;  %v6450_v62 = vld [vmem:[#allocation2 + $0x22a] sm:$0xff] }
 0x3a8   :  { %10469 = vmatprep.mubr.msk.f32.mxu1 %vm745_vm2, %v6446_v11 }
 0x3a9   :  { %v13031_v50 = vpop.f32.mrb[154].mxu0 }
 0x3aa   :  { %13759 = vst [vmem:[#allocation46_spill] sm:$0xff] %v13031_v50  ;;  %v13034_v54 = vpop.f32.mrb[155].mxu0  ;;  %v6451_v50 = vld [vmem:[#allocation2 + $0x232] sm:$0xff] }
 0x3ab   :  { %10470 = vmatmul.mubr.msk.f32.gmra.mrb[2].mxu1 %vm745_vm2, %v6447_v49  ;;  %13760 = vst [vmem:[#allocation47_spill] sm:$0xff] %v13034_v54  ;;  %v6452_v54 = vld [vmem:[#allocation2 + $0x242] sm:$0xff] }
 0x3ac   :  { %10472 = vmatprep.mubr.msk.f32.mxu1 %vm745_vm2, %v6448_v57 }
 0x3ad   :  { %v13037_v35 = vpop.f32.mrb[156].mxu0 }
 0x3ae   :  { %13761 = vst [vmem:[#allocation48_spill] sm:$0xff] %v13037_v35  ;;  %v13040_v25 = vpop.f32.mrb[157].mxu0  ;;  %v6453_v35 = vld [vmem:[#allocation2 + $0x24a] sm:$0xff] }
 0x3af   :  { %10473 = vmatmul.mubr.msk.f32.gmra.mrb[4].mxu1 %vm745_vm2, %v6449_v13  ;;  %13762 = vst [vmem:[#allocation49_spill] sm:$0xff] %v13040_v25  ;;  %v6454_v25 = vld [vmem:[#allocation2 + $0x25a] sm:$0xff] }
 0x3b0   :  { %10475 = vmatprep.mubr.msk.f32.mxu1 %vm745_vm2, %v6450_v62 }
 0x3b1   :  { %v13043_v11 = vpop.f32.mrb[158].mxu0 }
 0x3b2   :  { %13763 = vst [vmem:[#allocation50_spill] sm:$0xff] %v13043_v11  ;;  %v13046_v49 = vpop.f32.mrb[159].mxu0  ;;  %v6455_v11 = vld [vmem:[#allocation2 + $0x262] sm:$0xff] }
 0x3b3   :  { %10476 = vmatmul.mubr.msk.f32.gmra.mrb[6].mxu1 %vm745_vm2, %v6451_v50  ;;  %13764 = vst [vmem:[#allocation51_spill] sm:$0xff] %v13046_v49  ;;  %v6456_v49 = vld [vmem:[#allocation2 + $0x272] sm:$0xff] }
 0x3b4   :  { %10478 = vmatprep.mubr.msk.f32.mxu1 %vm745_vm2, %v6452_v54 }
 0x3b5   :  { %v13049_v57 = vpop.f32.mrb[160].mxu0 }
 0x3b6   :  { %13765 = vst [vmem:[#allocation52_spill] sm:$0xff] %v13049_v57  ;;  %v13052_v13 = vpop.f32.mrb[161].mxu0  ;;  %v6457_v57 = vld [vmem:[#allocation2 + $0x27a] sm:$0xff] }
 0x3b7   :  { %10479 = vmatmul.mubr.msk.f32.gmra.mrb[8].mxu1 %vm745_vm2, %v6453_v35  ;;  %13766 = vst [vmem:[#allocation53_spill] sm:$0xff] %v13052_v13  ;;  %v6458_v13 = vld [vmem:[#allocation2 + $0x28a] sm:$0xff] }
 0x3b8   :  { %10481 = vmatprep.mubr.msk.f32.mxu1 %vm745_vm2, %v6454_v25 }
 0x3b9   :  { %v13055_v62 = vpop.f32.mrb[162].mxu0 }
 0x3ba   :  { %13767 = vst [vmem:[#allocation54_spill] sm:$0xff] %v13055_v62  ;;  %v13058_v50 = vpop.f32.mrb[163].mxu0  ;;  %v6459_v62 = vld [vmem:[#allocation2 + $0x292] sm:$0xff] }
 0x3bb   :  { %10482 = vmatmul.mubr.msk.f32.gmra.mrb[10].mxu1 %vm745_vm2, %v6455_v11  ;;  %13768 = vst [vmem:[#allocation55_spill] sm:$0xff] %v13058_v50  ;;  %v6460_v50 = vld [vmem:[#allocation2 + $0x2a2] sm:$0xff] }
 0x3bc   :  { %10484 = vmatprep.mubr.msk.f32.mxu1 %vm745_vm2, %v6456_v49 }
 0x3bd   :  { %v13061_v54 = vpop.f32.mrb[164].mxu0 }
 0x3be   :  { %13769 = vst [vmem:[#allocation56_spill] sm:$0xff] %v13061_v54  ;;  %v13064_v35 = vpop.f32.mrb[165].mxu0  ;;  %v6461_v54 = vld [vmem:[#allocation2 + $0x2aa] sm:$0xff] }
 0x3bf   :  { %10485 = vmatmul.mubr.msk.f32.gmra.mrb[12].mxu1 %vm745_vm2, %v6457_v57  ;;  %13770 = vst [vmem:[#allocation57_spill] sm:$0xff] %v13064_v35  ;;  %v6462_v35 = vld [vmem:[#allocation2 + $0x2ba] sm:$0xff] }
 0x3c0   :  { %10487 = vmatprep.mubr.msk.f32.mxu1 %vm745_vm2, %v6458_v13 }
 0x3c1   :  { %v13067_v25 = vpop.f32.mrb[166].mxu0 }
 0x3c2   :  { %13771 = vst [vmem:[#allocation58_spill] sm:$0xff] %v13067_v25  ;;  %v13070_v11 = vpop.f32.mrb[167].mxu0  ;;  %v6463_v25 = vld [vmem:[#allocation2 + $0x2c2] sm:$0xff] }
 0x3c3   :  { %10488 = vmatmul.mubr.msk.f32.gmra.mrb[14].mxu1 %vm745_vm2, %v6459_v62  ;;  %13772 = vst [vmem:[#allocation59_spill] sm:$0xff] %v13070_v11  ;;  %v6464_v11 = vld [vmem:[#allocation2 + $0x2d2] sm:$0xff] }
 0x3c4   :  { %10490 = vmatprep.mubr.msk.f32.mxu1 %vm745_vm2, %v6460_v50 }
 0x3c5   :  { %v13073_v49 = vpop.f32.mrb[168].mxu0 }
 0x3c6   :  { %13773 = vst [vmem:[#allocation60_spill] sm:$0xff] %v13073_v49  ;;  %v13076_v57 = vpop.f32.mrb[169].mxu0  ;;  %v6465_v49 = vld [vmem:[#allocation2 + $0x2da] sm:$0xff] }
 0x3c7   :  { %10491 = vmatmul.mubr.msk.f32.gmra.mrb[16].mxu1 %vm745_vm2, %v6461_v54  ;;  %13774 = vst [vmem:[#allocation61_spill] sm:$0xff] %v13076_v57  ;;  %v6466_v57 = vld [vmem:[#allocation2 + $0x2ea] sm:$0xff] }
 0x3c8   :  { %10493 = vmatprep.mubr.msk.f32.mxu1 %vm745_vm2, %v6462_v35 }
 0x3c9   :  { %v13079_v13 = vpop.f32.mrb[170].mxu0 }
 0x3ca   :  { %13775 = vst [vmem:[#allocation62_spill] sm:$0xff] %v13079_v13  ;;  %v13082_v62 = vpop.f32.mrb[171].mxu0  ;;  %v6467_v13 = vld [vmem:[#allocation2 + $0x2f2] sm:$0xff] }
 0x3cb   :  { %10494 = vmatmul.mubr.msk.f32.gmra.mrb[18].mxu1 %vm745_vm2, %v6463_v25  ;;  %13776 = vst [vmem:[#allocation63_spill] sm:$0xff] %v13082_v62  ;;  %v6468_v62 = vld [vmem:[#allocation2 + $0x302] sm:$0xff] }
 0x3cc   :  { %10496 = vmatprep.mubr.msk.f32.mxu1 %vm745_vm2, %v6464_v11 }
 0x3cd   :  { %v13085_v50 = vpop.f32.mrb[172].mxu0 }
 0x3ce   :  { %13777 = vst [vmem:[#allocation64_spill] sm:$0xff] %v13085_v50  ;;  %v13088_v54 = vpop.f32.mrb[173].mxu0  ;;  %v6469_v50 = vld [vmem:[#allocation2 + $0x30a] sm:$0xff] }
 0x3cf   :  { %10497 = vmatmul.mubr.msk.f32.gmra.mrb[20].mxu1 %vm745_vm2, %v6465_v49  ;;  %13778 = vst [vmem:[#allocation65_spill] sm:$0xff] %v13088_v54  ;;  %v6470_v54 = vld [vmem:[#allocation2 + $0x31a] sm:$0xff] }
 0x3d0   :  { %10499 = vmatprep.mubr.msk.f32.mxu1 %vm745_vm2, %v6466_v57 }
 0x3d1   :  { %v13091_v35 = vpop.f32.mrb[174].mxu0 }
 0x3d2   :  { %13779 = vst [vmem:[#allocation66_spill] sm:$0xff] %v13091_v35  ;;  %v13094_v25 = vpop.f32.mrb[175].mxu0  ;;  %v6471_v35 = vld [vmem:[#allocation2 + $0x322] sm:$0xff] }
 0x3d3   :  { %10500 = vmatmul.mubr.msk.f32.gmra.mrb[22].mxu1 %vm745_vm2, %v6467_v13  ;;  %13780 = vst [vmem:[#allocation67_spill] sm:$0xff] %v13094_v25  ;;  %v6472_v25 = vld [vmem:[#allocation2 + $0x332] sm:$0xff] }
 0x3d4   :  { %10502 = vmatprep.mubr.msk.f32.mxu1 %vm745_vm2, %v6468_v62  ;;  %v6474_v62 = vld [vmem:[#allocation2 + $0x34a] sm:$0xff] }
 0x3d5   :  { %v13097_v11 = vpop.f32.mrb[176].mxu0 }
 0x3d6   :  { %13781 = vst [vmem:[#allocation68_spill] sm:$0xff] %v13097_v11  ;;  %v13100_v49 = vpop.f32.mrb[177].mxu0 }
 0x3d7   :  { %10503 = vmatmul.mubr.msk.f32.gmra.mrb[24].mxu1 %vm745_vm2, %v6469_v50  ;;  %13782 = vst [vmem:[#allocation69_spill] sm:$0xff] %v13100_v49 }
 0x3d8   :  { %10505 = vmatprep.mubr.msk.f32.mxu1 %vm745_vm2, %v6470_v54  ;;  %v6475_v54 = vld [vmem:[#allocation2 + $0x352] sm:$0xff] }
 0x3d9   :  { %v13103_v57 = vpop.f32.mrb[178].mxu0 }
 0x3da   :  { %13783 = vst [vmem:[#allocation70_spill] sm:$0xff] %v13103_v57  ;;  %v13106_v13 = vpop.f32.mrb[179].mxu0 }
 0x3db   :  { %10506 = vmatmul.mubr.msk.f32.gmra.mrb[26].mxu1 %vm745_vm2, %v6471_v35  ;;  %13784 = vst [vmem:[#allocation71_spill] sm:$0xff] %v13106_v13 }
 0x3dc   :  { %10508 = vmatprep.mubr.msk.f32.mxu1 %vm745_vm2, %v6472_v25 }
 0x3dd   :  { %v13109_v11 = vpop.f32.mrb[180].mxu0 }
 0x3de   :  { %13785 = vst [vmem:[#allocation72_spill] sm:$0xff] %v13109_v11  ;;  %v13112_v50 = vpop.f32.mrb[181].mxu0 }
 0x3df   :  { %10509 = vmatmul.mubr.msk.f32.gmra.mrb[28].mxu1 %vm745_vm2, %v6473_v20  ;;  %13786 = vst [vmem:[#allocation73_spill] sm:$0xff] %v13112_v50 }
 0x3e0   :  { %10511 = vmatprep.mubr.msk.f32.mxu1 %vm745_vm2, %v6474_v62 }
 0x3e1   :  { %v13115_v57 = vpop.f32.mrb[182].mxu0 }
 0x3e2   :  { %13787 = vst [vmem:[#allocation74_spill] sm:$0xff] %v13115_v57  ;;  %v13118_v35 = vpop.f32.mrb[183].mxu0 }
 0x3e3   :  { %10512 = vmatmul.mubr.msk.f32.gmra.mrb[30].mxu1 %vm745_vm2, %v6475_v54  ;;  %13788 = vst [vmem:[#allocation75_spill] sm:$0xff] %v13118_v35  ;;  %v13139_v54 = vld [vmem:[%s13612_s6] ss:$0 sm:$0xff] }
 0x3e5   :  { %v13120_v13 = vpop.f32.mrb[184].mxu0 }
 0x3e6   :  { %13789 = vst [vmem:[#allocation76_spill] sm:$0xff] %v13120_v13  ;;  %v13122_v25 = vpop.f32.mrb[185].mxu0 }
 0x3e7   :  { %13790 = vst [vmem:[#allocation77_spill] sm:$0xff] %v13122_v25 }
 0x3e9   :  { %v13124_v49 = vpop.f32.mrb[186].mxu0 }
 0x3ea   :  { %13791 = vst [vmem:[#allocation78_spill] sm:$0xff] %v13124_v49  ;;  %v13126_v11 = vpop.f32.mrb[187].mxu0 }
 0x3eb   :  { %13792 = vst [vmem:[#allocation79_spill] sm:$0xff] %v13126_v11 }
 0x3ed   :  { %v13128_v20 = vpop.f32.mrb[188].mxu0 }
 0x3ee   :  { %13793 = vst [vmem:[#allocation80_spill] sm:$0xff] %v13128_v20  ;;  %v13130_v50 = vpop.f32.mrb[189].mxu0 }
 0x3ef   :  { %13794 = vst [vmem:[#allocation81_spill] sm:$0xff] %v13130_v50 }
 0x3f1   :  { %v13132_v62 = vpop.f32.mrb[190].mxu0 }
 0x3f2   :  { %13795 = vst [vmem:[#allocation82_spill] sm:$0xff] %v13132_v62  ;;  %v13134_v48 = vpop.f32.mrb[191].mxu0 }
 0x3f3   :  { %13796 = vst [vmem:[#allocation83_spill] sm:$0xff] %v13134_v48 }
 0x43a   :  { %v10420_v57 = vpop.f32.mrb[32].mxu1 }
 0x43b   :  { %v10614_v13 = vadd.f32 %v10420_v57, %v12857_v51  ;;  %v6735_v25 = vpop.f32.mrb[33].mxu1 }
 0x43c   :  { %v10615_v49 = vadd.f32 %v6735_v25, %v12859_v53 }
 0x43d   :  { %v7582_v11 = vadd.f32 %v10614_v13, %v13139_v54 }
 0x43e   :  { %v10423_v20 = vpop.f32.mrb[34].mxu1  ;;  %v7581_v50 = vadd.f32 %v10615_v49, %v13139_v54 }
 0x43f   :  { %v10616_v62 = vadd.f32 %v10423_v20, %v12863_v21  ;;  %v6745_v35 = vpop.f32.mrb[35].mxu1  ;;  %v7646_v48 = vmax.f32 %v7582_v11, 0.0 }
 0x440   :  { %v10617_v40 = vadd.f32 %v6745_v35, %v12865_v43  ;;  %v7645_v57 = vmax.f32 %v7581_v50, 0.0 }
 0x441   :  { %7775 = vrot.lane.b32.xlu0 %v7646_v48, %s11219_s1  ;;  %v7584_v55 = vadd.f32 %v10616_v62, %v13139_v54 }
 0x442   :  { %v10426_v51 = vpop.f32.mrb[36].mxu1  ;;  %v7583_v53 = vadd.f32 %v10617_v40, %v13139_v54 }
 0x443   :  { %v10618_v13 = vadd.f32 %v10426_v51, %v12869_v2  ;;  %v6755_v25 = vpop.f32.mrb[37].mxu1  ;;  %v7648_v18 = vmax.f32 %v7584_v55, 0.0 }
 0x444   :  { %v10619_v49 = vadd.f32 %v6755_v25, %v12871_v28  ;;  %v7647_v48 = vmax.f32 %v7583_v53, 0.0 }
 0x445   :  { %7773 = vrot.lane.b32.xlu0 %v7645_v57, %s11219_s1  ;;  %7779 = vrot.lane.b32.xlu1 %v7648_v18, %s11219_s1  ;;  %v7586_v11 = vadd.f32 %v10618_v13, %v13139_v54 }
 0x446   :  { %v7585_v21 = vadd.f32 %v10619_v49, %v13139_v54  ;;  %v10429_v43 = vpop.f32.mrb[38].mxu1 }
 0x447   :  { %v10620_v50 = vadd.f32 %v10429_v43, %v12875_v5  ;;  %v6765_v35 = vpop.f32.mrb[39].mxu1  ;;  %v7650_v18 = vmax.f32 %v7586_v11, 0.0 }
 0x448   :  { %v7649_v40 = vmax.f32 %v7585_v21, 0.0  ;;  %v10621_v2 = vadd.f32 %v6765_v35, %v12877_v38 }
 0x449   :  { %7777 = vrot.lane.b32.xlu1 %v7647_v48, %s11219_s1  ;;  %v7588_v20 = vadd.f32 %v10620_v50, %v13139_v54 }
 0x44a   :  { %v7587_v55 = vadd.f32 %v10621_v2, %v13139_v54  ;;  %v10432_v28 = vpop.f32.mrb[40].mxu1  ;;  %7781 = vrot.lane.b32.xlu0 %v7649_v40, %s11219_s1 }
 0x44b   :  { %v10622_v62 = vadd.f32 %v10432_v28, %v12881_v45  ;;  %v6775_v51 = vpop.f32.mrb[41].mxu1  ;;  %v7652_v13 = vmax.f32 %v7588_v20, 0.0 }
 0x44c   :  { %v7651_v57 = vmax.f32 %v7587_v55, 0.0  ;;  %v10623_v5 = vadd.f32 %v6775_v51, %v12883_v24 }
 0x44d   :  { %7783 = vrot.lane.b32.xlu1 %v7650_v18, %s11219_s1  ;;  %v7590_v25 = vadd.f32 %v10622_v62, %v13139_v54 }
 0x44e   :  { %v7589_v38 = vadd.f32 %v10623_v5, %v13139_v54  ;;  %v10435_v53 = vpop.f32.mrb[42].mxu1  ;;  %7785 = vrot.lane.b32.xlu0 %v7651_v57, %s11219_s1 }
 0x44f   :  { %v10624_v49 = vadd.f32 %v10435_v53, %v12887_v46  ;;  %v6785_v21 = vpop.f32.mrb[43].mxu1  ;;  %v7654_v11 = vmax.f32 %v7590_v25, 0.0 }
 0x450   :  { %v7653_v43 = vmax.f32 %v7589_v38, 0.0  ;;  %v10625_v45 = vadd.f32 %v6785_v21, %v12889_v56 }
 0x451   :  { %7787 = vrot.lane.b32.xlu1 %v7652_v13, %s11219_s1  ;;  %v7592_v50 = vadd.f32 %v10624_v49, %v13139_v54 }
 0x452   :  { %v7591_v24 = vadd.f32 %v10625_v45, %v13139_v54  ;;  %v10438_v48 = vpop.f32.mrb[44].mxu1  ;;  %7789 = vrot.lane.b32.xlu0 %v7653_v43, %s11219_s1 }
 0x453   :  { %v10626_v35 = vadd.f32 %v10438_v48, %v12893_v27  ;;  %v6795_v40 = vpop.f32.mrb[45].mxu1  ;;  %v7656_v28 = vmax.f32 %v7592_v50, 0.0 }
 0x454   :  { %v7655_v2 = vmax.f32 %v7591_v24, 0.0  ;;  %v10627_v46 = vadd.f32 %v6795_v40, %v12895_v59 }
 0x455   :  { %7791 = vrot.lane.b32.xlu1 %v7654_v11, %s11219_s1  ;;  %v7594_v18 = vadd.f32 %v10626_v35, %v13139_v54 }
 0x456   :  { %v7593_v56 = vadd.f32 %v10627_v46, %v13139_v54  ;;  %v10441_v55 = vpop.f32.mrb[46].mxu1  ;;  %7793 = vrot.lane.b32.xlu0 %v7655_v2, %s11219_s1 }
 0x457   :  { %v10628_v20 = vadd.f32 %v10441_v55, %v12899_v31  ;;  %v6805_v62 = vpop.f32.mrb[47].mxu1  ;;  %v7658_v5 = vmax.f32 %v7594_v18, 0.0 }
 0x458   :  { %v7657_v51 = vmax.f32 %v7593_v56, 0.0  ;;  %v10629_v27 = vadd.f32 %v6805_v62, %v12901_v15 }
 0x459   :  { %7795 = vrot.lane.b32.xlu1 %v7656_v28, %s11219_s1  ;;  %v7596_v38 = vadd.f32 %v10628_v20, %v13139_v54 }
 0x45a   :  { %v7595_v59 = vadd.f32 %v10629_v27, %v13139_v54  ;;  %v10444_v57 = vpop.f32.mrb[48].mxu1  ;;  %7797 = vrot.lane.b32.xlu0 %v7657_v51, %s11219_s1 }
 0x45b   :  { %v10630_v53 = vadd.f32 %v10444_v57, %v12905_v52  ;;  %v6815_v13 = vpop.f32.mrb[49].mxu1  ;;  %v7660_v21 = vmax.f32 %v7596_v38, 0.0 }
 0x45c   :  { %v7659_v25 = vmax.f32 %v7595_v59, 0.0  ;;  %v10631_v31 = vadd.f32 %v6815_v13, %v12907_v23 }
 0x45d   :  { %7799 = vrot.lane.b32.xlu1 %v7658_v5, %s11219_s1  ;;  %v7598_v43 = vadd.f32 %v10630_v53, %v13139_v54 }
 0x45e   :  { %v7597_v15 = vadd.f32 %v10631_v31, %v13139_v54  ;;  %v10447_v49 = vpop.f32.mrb[50].mxu1  ;;  %7801 = vrot.lane.b32.xlu0 %v7659_v25, %s11219_s1 }
 0x45f   :  { %v10632_v45 = vadd.f32 %v10447_v49, %v12911_v1  ;;  %v6825_v24 = vpop.f32.mrb[51].mxu1  ;;  %v7662_v50 = vmax.f32 %v7598_v43, 0.0 }
 0x460   :  { %v7661_v48 = vmax.f32 %v7597_v15, 0.0  ;;  %v10633_v52 = vadd.f32 %v6825_v24, %v12913_v32 }
 0x461   :  { %7803 = vrot.lane.b32.xlu1 %v7660_v21, %s11219_s1  ;;  %v7600_v35 = vadd.f32 %v10632_v45, %v13139_v54 }
 0x462   :  { %v7599_v23 = vadd.f32 %v10633_v52, %v13139_v54  ;;  %v10450_v11 = vpop.f32.mrb[52].mxu1  ;;  %7805 = vrot.lane.b32.xlu0 %v7661_v48, %s11219_s1 }
 0x463   :  { %v10634_v40 = vadd.f32 %v10450_v11, %v12917_v26  ;;  %v6835_v2 = vpop.f32.mrb[53].mxu1  ;;  %v7664_v55 = vmax.f32 %v7600_v35, 0.0 }
 0x464   :  { %v7663_v46 = vmax.f32 %v7599_v23, 0.0  ;;  %v10635_v1 = vadd.f32 %v6835_v2, %v12919_v19 }
 0x465   :  { %7807 = vrot.lane.b32.xlu1 %v7662_v50, %s11219_s1  ;;  %v7602_v28 = vadd.f32 %v10634_v40, %v13139_v54 }
 0x466   :  { %v7601_v32 = vadd.f32 %v10635_v1, %v13139_v54  ;;  %v10453_v56 = vpop.f32.mrb[54].mxu1  ;;  %7809 = vrot.lane.b32.xlu0 %v7663_v46, %s11219_s1 }
 0x467   :  { %v10636_v18 = vadd.f32 %v10453_v56, %v12923_v8  ;;  %v6845_v20 = vpop.f32.mrb[55].mxu1  ;;  %v7666_v27 = vmax.f32 %v7602_v28, 0.0 }
 0x468   :  { %v7665_v62 = vmax.f32 %v7601_v32, 0.0  ;;  %v10637_v26 = vadd.f32 %v6845_v20, %v12925_v10 }
 0x469   :  { %7811 = vrot.lane.b32.xlu1 %v7664_v55, %s11219_s1  ;;  %v7604_v59 = vadd.f32 %v10636_v18, %v13139_v54 }
 0x46a   :  { %v7603_v19 = vadd.f32 %v10637_v26, %v13139_v54  ;;  %v10456_v51 = vpop.f32.mrb[56].mxu1  ;;  %7813 = vrot.lane.b32.xlu0 %v7665_v62, %s11219_s1 }
 0x46b   :  { %v10638_v57 = vadd.f32 %v10456_v51, %v12929_v4  ;;  %v6855_v5 = vpop.f32.mrb[57].mxu1  ;;  %v7668_v13 = vmax.f32 %v7604_v59, 0.0 }
 0x46c   :  { %v7667_v38 = vmax.f32 %v7603_v19, 0.0  ;;  %v10639_v8 = vadd.f32 %v6855_v5, %v12931_v63 }
 0x46d   :  { %7815 = vrot.lane.b32.xlu1 %v7666_v27, %s11219_s1  ;;  %v7606_v25 = vadd.f32 %v10638_v57, %v13139_v54 }
 0x46e   :  { %v7605_v10 = vadd.f32 %v10639_v8, %v13139_v54  ;;  %v10459_v53 = vpop.f32.mrb[58].mxu1  ;;  %7817 = vrot.lane.b32.xlu0 %v7667_v38, %s11219_s1 }
 0x46f   :  { %v10640_v31 = vadd.f32 %v10459_v53, %v12935_v60  ;;  %v6865_v15 = vpop.f32.mrb[59].mxu1  ;;  %v7670_v43 = vmax.f32 %v7606_v25, 0.0 }
 0x470   :  { %v7669_v49 = vmax.f32 %v7605_v10, 0.0  ;;  %v10641_v4 = vadd.f32 %v6865_v15, %v12937_v29 }
 0x471   :  { %7819 = vrot.lane.b32.xlu1 %v7668_v13, %s11219_s1  ;;  %v7608_v45 = vadd.f32 %v10640_v31, %v13139_v54 }
 0x472   :  { %v7607_v63 = vadd.f32 %v10641_v4, %v13139_v54  ;;  %v10462_v21 = vpop.f32.mrb[60].mxu1  ;;  %7821 = vrot.lane.b32.xlu0 %v7669_v49, %s11219_s1 }
 0x473   :  { %v10642_v24 = vadd.f32 %v10462_v21, %v12941_v34  ;;  %v6875_v48 = vpop.f32.mrb[61].mxu1  ;;  %v7672_v11 = vmax.f32 %v7608_v45, 0.0 }
 0x474   :  { %v7671_v52 = vmax.f32 %v7607_v63, 0.0  ;;  %v10643_v60 = vadd.f32 %v6875_v48, %v12943_v42 }
 0x475   :  { %7823 = vrot.lane.b32.xlu1 %v7670_v43, %s11219_s1  ;;  %v7610_v50 = vadd.f32 %v10642_v24, %v13139_v54 }
 0x476   :  { %v7609_v29 = vadd.f32 %v10643_v60, %v13139_v54  ;;  %v10465_v23 = vpop.f32.mrb[62].mxu1  ;;  %7825 = vrot.lane.b32.xlu0 %v7671_v52, %s11219_s1 }
 0x477   :  { %v10644_v35 = vadd.f32 %v10465_v23, %v12947_v36  ;;  %v6885_v40 = vpop.f32.mrb[63].mxu1  ;;  %v7674_v1 = vmax.f32 %v7610_v50, 0.0 }
 0x478   :  { %v7673_v2 = vmax.f32 %v7609_v29, 0.0  ;;  %v10645_v34 = vadd.f32 %v6885_v40, %v12949_v0 }
 0x479   :  { %7827 = vrot.lane.b32.xlu1 %v7672_v11, %s11219_s1  ;;  %v7612_v32 = vadd.f32 %v10644_v35, %v13139_v54 }
 0x47a   :  { %v7611_v42 = vadd.f32 %v10645_v34, %v13139_v54  ;;  %v10468_v46 = vpop.f32.mrb[0].mxu1  ;;  %7829 = vrot.lane.b32.xlu0 %v7673_v2, %s11219_s1 }
 0x47b   :  { %v10646_v56 = vadd.f32 %v10468_v46, %v12740_v41  ;;  %v6895_v55 = vpop.f32.mrb[1].mxu1  ;;  %v7676_v20 = vmax.f32 %v7612_v32, 0.0 }
 0x47c   :  { %v7675_v28 = vmax.f32 %v7611_v42, 0.0  ;;  %v10647_v36 = vadd.f32 %v6895_v55, %v12744_v9 }
 0x47d   :  { %7831 = vrot.lane.b32.xlu1 %v7674_v1, %s11219_s1  ;;  %v7614_v62 = vadd.f32 %v10646_v56, %v13139_v54 }
 0x47e   :  { %v7613_v0 = vadd.f32 %v10647_v36, %v13139_v54  ;;  %v10471_v18 = vpop.f32.mrb[2].mxu1  ;;  %7833 = vrot.lane.b32.xlu0 %v7675_v28, %s11219_s1 }
 0x47f   :  { %v10648_v26 = vadd.f32 %v10471_v18, %v12748_v17  ;;  %v6905_v19 = vpop.f32.mrb[3].mxu1  ;;  %v7678_v59 = vmax.f32 %v7614_v62, 0.0 }
 0x480   :  { %v7677_v51 = vmax.f32 %v7613_v0, 0.0  ;;  %v10649_v41 = vadd.f32 %v6905_v19, %v12750_v61 }
 0x481   :  { %7835 = vrot.lane.b32.xlu1 %v7676_v20, %s11219_s1  ;;  %v7616_v57 = vadd.f32 %v10648_v26, %v13139_v54 }
 0x482   :  { %v7615_v9 = vadd.f32 %v10649_v41, %v13139_v54  ;;  %v10474_v27 = vpop.f32.mrb[4].mxu1  ;;  %7837 = vrot.lane.b32.xlu0 %v7677_v51, %s11219_s1  ;;  %v13797_v41 = vld [vmem:[#allocation6_spill] sm:$0xff] }
 0x483   :  { %v10650_v5 = vadd.f32 %v10474_v27, %v12756_v37  ;;  %v6915_v38 = vpop.f32.mrb[5].mxu1  ;;  %v7680_v53 = vmax.f32 %v7616_v57, 0.0  ;;  %v13798_v57 = vld [vmem:[#allocation8_spill] sm:$0xff] }
 0x484   :  { %v7679_v8 = vmax.f32 %v7615_v9, 0.0  ;;  %v10651_v17 = vadd.f32 %v6915_v38, %v12758_v7 }
 0x485   :  { %7839 = vrot.lane.b32.xlu1 %v7678_v59, %s11219_s1  ;;  %v7618_v13 = vadd.f32 %v10650_v5, %v13139_v54 }
 0x486   :  { %v7617_v61 = vadd.f32 %v10651_v17, %v13139_v54  ;;  %v10477_v10 = vpop.f32.mrb[6].mxu1  ;;  %7841 = vrot.lane.b32.xlu0 %v7679_v8, %s11219_s1  ;;  %v13799_v17 = vld [vmem:[#allocation7_spill] sm:$0xff] }
 0x487   :  { %v10652_v25 = vadd.f32 %v10477_v10, %v12764_v3  ;;  %v6925_v31 = vpop.f32.mrb[7].mxu1  ;;  %v7682_v4 = vmax.f32 %v7618_v13, 0.0  ;;  %v13800_v13 = vld [vmem:[#allocation9_spill] sm:$0xff] }
 0x488   :  { %v7681_v15 = vmax.f32 %v7617_v61, 0.0  ;;  %v10653_v37 = vadd.f32 %v6925_v31, %v12766_v16 }
 0x489   :  { %7843 = vrot.lane.b32.xlu1 %v7680_v53, %s11219_s1  ;;  %v7620_v63 = vadd.f32 %v10652_v25, %v13139_v54 }
 0x48a   :  { %v7619_v7 = vadd.f32 %v10653_v37, %v13139_v54  ;;  %v10480_v49 = vpop.f32.mrb[8].mxu1  ;;  %7845 = vrot.lane.b32.xlu0 %v7681_v15, %s11219_s1 }
 0x48b   :  { %v10654_v21 = vadd.f32 %v10480_v49, %v12772_v47  ;;  %v6935_v43 = vpop.f32.mrb[9].mxu1  ;;  %v7684_v48 = vmax.f32 %v7620_v63, 0.0  ;;  %v13801_v49 = vld [vmem:[#allocation10_spill] sm:$0xff] }
 0x48c   :  { %v7683_v45 = vmax.f32 %v7619_v7, 0.0  ;;  %v10655_v3 = vadd.f32 %v6935_v43, %v12774_v12  ;;  %v13802_v43 = vld [vmem:[#allocation12_spill] sm:$0xff] }
 0x48d   :  { %7847 = vrot.lane.b32.xlu1 %v7682_v4, %s11219_s1  ;;  %v7622_v52 = vadd.f32 %v10654_v21, %v13139_v54 }
 0x48e   :  { %v7621_v16 = vadd.f32 %v10655_v3, %v13139_v54  ;;  %v10483_v24 = vpop.f32.mrb[10].mxu1  ;;  %7849 = vrot.lane.b32.xlu0 %v7683_v45, %s11219_s1 }
 0x48f   :  { %v10656_v60 = vadd.f32 %v10483_v24, %v12780_v33  ;;  %v6945_v29 = vpop.f32.mrb[11].mxu1  ;;  %v7686_v50 = vmax.f32 %v7622_v52, 0.0  ;;  %v13308_v24 = vld [vmem:[%s13610_s4] ss:$0 sm:$0xff]  ;;  %s11220_s4 = smov [#allocation3]  }
 0x490   :  { %v7685_v23 = vmax.f32 %v7621_v16, 0.0  ;;  %v10657_v47 = vadd.f32 %v6945_v29, %v12782_v6  ;;  %s8100_s10 = sshll.u32 %s11220_s4, 4  ;;  %s8101_s10 = int_to_ptr.vmem [resolvable:$true] %s8100_s10 }
 0x491   :  { %7851 = vrot.lane.b32.xlu1 %v7684_v48, %s11219_s1  ;;  %v7624_v35 = vadd.f32 %v10656_v60, %v13139_v54  ;;  %v13803_v60 = vld [vmem:[#allocation11_spill] sm:$0xff]  ;;  %s11194_s11 = scalar_lea.vmem %s8101_s10, 8192  ;;  %p11199_p1 = scmp.lt.s32.totalorder %s8101_s10, %s8101_s10 }
 0x492   :  { %v7623_v12 = vadd.f32 %v10657_v47, %v13139_v54  ;;  %v10486_v11 = vpop.f32.mrb[12].mxu1  ;;  %7853 = vrot.lane.b32.xlu0 %v7685_v23, %s11219_s1  ;;  %p11195_p0 = scmp.ne.s32.totalorder %s8101_s10, %s11194_s11  ;;  %p11200_p2 = scmp.lt.s32.totalorder %s11194_s11, %s11194_s11 }
 0x493   :  { %v10658_v40 = vadd.f32 %v10486_v11, %v12788_v58  ;;  %v6955_v2 = vpop.f32.mrb[13].mxu1  ;;  %v7688_v46 = vmax.f32 %v7624_v35, 0.0 }
 0x494   :  { %v7687_v34 = vmax.f32 %v7623_v12, 0.0  ;;  %v10659_v33 = vadd.f32 %v6955_v2, %v12790_v14  ;;  %v13804_v12 = vld [vmem:[#allocation13_spill] sm:$0xff]  ;;  %p11201_p3 = por %p11200_p2, %p11199_p1 }
 0x495   :  { %7855 = vrot.lane.b32.xlu1 %v7686_v50, %s11219_s1  ;;  %v7626_v1 = vadd.f32 %v10658_v40, %v13139_v54  ;;  %v13805_v50 = vld [vmem:[#allocation19_spill] sm:$0xff] }
 0x496   :  { %v7625_v6 = vadd.f32 %v10659_v33, %v13139_v54  ;;  %v10489_v42 = vpop.f32.mrb[14].mxu1  ;;  %7857 = vrot.lane.b32.xlu0 %v7687_v34, %s11219_s1  ;;  %v7197_v35 = vadd.f32 %v13805_v50, %v13308_v24  ;;  %p11202_p4 = pnand %p11201_p3, %p11195_p0 }
 0x497   :  { %v10660_v32 = vadd.f32 %v10489_v42, %v12796_v44  ;;  %v6965_v56 = vpop.f32.mrb[15].mxu1  ;;  %v7690_v36 = vmax.f32 %v7626_v1, 0.0 }
 0x498   :  { %v7689_v55 = vmax.f32 %v7625_v6, 0.0  ;;  %v10661_v58 = vadd.f32 %v6965_v56, %v12798_v22  ;;  %v13806_v6 = vld [vmem:[#allocation14_spill] sm:$0xff] }
 0x499   :  { %7859 = vrot.lane.b32.xlu1 %v7688_v46, %s11219_s1  ;;  %v7628_v0 = vadd.f32 %v10660_v32, %v13139_v54  ;;  %v13807_v32 = vld [vmem:[#allocation16_spill] sm:$0xff] }
 0x49a   :  { %v7627_v14 = vadd.f32 %v10661_v58, %v13139_v54  ;;  %v10492_v28 = vpop.f32.mrb[16].mxu1  ;;  %7861 = vrot.lane.b32.xlu0 %v7689_v55, %s11219_s1  ;;  %v13808_v55 = vld [vmem:[#allocation21_spill] sm:$0xff] }
 0x49b   :  { %v10662_v18 = vadd.f32 %v10492_v28, %v12804_v39  ;;  %v6975_v20 = vpop.f32.mrb[17].mxu1  ;;  %v7692_v19 = vmax.f32 %v7628_v0, 0.0  ;;  %v7192_v58 = vadd.f32 %v13308_v24, %v13808_v55  ;;  %v13809_v28 = vld [vmem:[#allocation22_spill] sm:$0xff]  ;;  %v13820_v55 = vld [vmem:[#allocation27_spill] sm:$0xff] }
 0x49c   :  { %v7691_v62 = vmax.f32 %v7627_v14, 0.0  ;;  %v10663_v44 = vadd.f32 %v6975_v20, %v12806_v30  ;;  %v7511_v14 = vmax.f32 %v7197_v35, 0.0 }
 0x49d   :  { %7863 = vrot.lane.b32.xlu1 %v7690_v36, %s11219_s1  ;;  %v7630_v51 = vadd.f32 %v10662_v18, %v13139_v54  ;;  %v7207_v36 = vadd.f32 %v13809_v28, %v13308_v24  ;;  %v13821_v28 = vld [vmem:[#allocation32_spill] sm:$0xff] }
 0x49e   :  { %v7629_v22 = vadd.f32 %v10663_v44, %v13139_v54  ;;  %v10495_v26 = vpop.f32.mrb[18].mxu1  ;;  %7865 = vrot.lane.b32.xlu0 %v7691_v62, %s11219_s1  ;;  %v13810_v44 = vld [vmem:[#allocation15_spill] sm:$0xff] }
 0x49f   :  { %v10664_v9 = vadd.f32 %v10495_v26, %v13797_v41  ;;  %v6985_v27 = vpop.f32.mrb[19].mxu1  ;;  %v7694_v38 = vmax.f32 %v7630_v51, 0.0  ;;  %v13811_v41 = vld [vmem:[#allocation17_spill] sm:$0xff] }
 0x4a0   :  { %v7693_v59 = vmax.f32 %v7629_v22, 0.0  ;;  %v10665_v39 = vadd.f32 %v6985_v27, %v13798_v57  ;;  %v7513_v57 = vmax.f32 %v7207_v36, 0.0  ;;  %v7242_v36 = vadd.f32 %v13308_v24, %v13821_v28 }
 0x4a1   :  { %7867 = vrot.lane.b32.xlu1 %v7692_v19, %s11219_s1  ;;  %v7632_v8 = vadd.f32 %v10664_v9, %v13139_v54 }
 0x4a2   :  { %v7631_v30 = vadd.f32 %v10665_v39, %v13139_v54  ;;  %v10498_v5 = vpop.f32.mrb[20].mxu1  ;;  %7869 = vrot.lane.b32.xlu0 %v7693_v59, %s11219_s1  ;;  %v7510_v59 = vmax.f32 %v7192_v58, 0.0  ;;  %v13812_v39 = vld [vmem:[#allocation24_spill] sm:$0xff]  ;;  %v7237_v58 = vadd.f32 %v13820_v55, %v13308_v24  ;;  %v13833_v55 = vld [vmem:[#allocation43_spill] sm:$0xff] }
 0x4a3   :  { %v10666_v61 = vadd.f32 %v10498_v5, %v13799_v17  ;;  %v6995_v10 = vpop.f32.mrb[21].mxu1  ;;  %v7696_v37 = vmax.f32 %v7632_v8, 0.0  ;;  %v13813_v8 = vld [vmem:[#allocation25_spill] sm:$0xff] }
 0x4a4   :  { %v7695_v53 = vmax.f32 %v7631_v30, 0.0  ;;  %v10667_v25 = vadd.f32 %v6995_v10, %v13800_v13  ;;  %v7202_v30 = vadd.f32 %v13308_v24, %v13812_v39  ;;  %v7212_v17 = vadd.f32 %v13308_v24, %v13813_v8  ;;  %v13825_v8 = vld [vmem:[#allocation34_spill] sm:$0xff] }
 0x4a5   :  { %7871 = vrot.lane.b32.xlu1 %v7694_v38, %s11219_s1  ;;  %v7634_v7 = vadd.f32 %v10666_v61, %v13139_v54 }
 0x4a6   :  { %v7633_v31 = vadd.f32 %v10667_v25, %v13139_v54  ;;  %v10501_v15 = vpop.f32.mrb[22].mxu1  ;;  %7873 = vrot.lane.b32.xlu0 %v7695_v53, %s11219_s1  ;;  %v13814_v53 = vld [vmem:[#allocation18_spill] sm:$0xff] }
 0x4a7   :  { %v10668_v4 = vadd.f32 %v10501_v15, %v13801_v49  ;;  %v7005_v63 = vpop.f32.mrb[23].mxu1  ;;  %v7698_v48 = vmax.f32 %v7634_v7, 0.0 }
 0x4a8   :  { %v7697_v21 = vmax.f32 %v7633_v31, 0.0  ;;  %v10669_v45 = vadd.f32 %v7005_v63, %v13802_v43  ;;  %v13816_v43 = vld [vmem:[#allocation23_spill] sm:$0xff] }
 0x4a9   :  { %7875 = vrot.lane.b32.xlu1 %v7696_v37, %s11219_s1  ;;  %v7636_v52 = vadd.f32 %v10668_v4, %v13139_v54  ;;  %v13815_v37 = vld [vmem:[#allocation20_spill] sm:$0xff] }
 0x4aa   :  { %v7635_v3 = vadd.f32 %v10669_v45, %v13139_v54  ;;  %v10504_v16 = vpop.f32.mrb[24].mxu1  ;;  %7877 = vrot.lane.b32.xlu0 %v7697_v21, %s11219_s1  ;;  %v7512_v21 = vmax.f32 %v7202_v30, 0.0  ;;  %v7217_v45 = vadd.f32 %v13816_v43, %v13308_v24  ;;  %v13824_v30 = vld [vmem:[#allocation31_spill] sm:$0xff] }
 0x4ab   :  { %v10670_v29 = vadd.f32 %v10504_v16, %v13803_v60  ;;  %v7015_v23 = vpop.f32.mrb[25].mxu1  ;;  %v7700_v34 = vmax.f32 %v7636_v52, 0.0  ;;  %v7514_v16 = vmax.f32 %v7212_v17, 0.0  ;;  %v7262_v17 = vadd.f32 %v13308_v24, %v13825_v8 }
 0x4ac   :  { %v7699_v47 = vmax.f32 %v7635_v3, 0.0  ;;  %v10671_v11 = vadd.f32 %v7015_v23, %v13804_v12  ;;  %v7515_v35 = vmax.f32 %v7217_v45, 0.0 }
 0x4ad   :  { %7879 = vrot.lane.b32.xlu1 %v7698_v48, %s11219_s1  ;;  %v7638_v33 = vadd.f32 %v10670_v29, %v13139_v54  ;;  %v13817_v48 = vld [vmem:[#allocation28_spill] sm:$0xff] }
 0x4ae   :  { %v7637_v40 = vadd.f32 %v10671_v11, %v13139_v54  ;;  %v10507_v2 = vpop.f32.mrb[26].mxu1  ;;  %7881 = vrot.lane.b32.xlu0 %v7699_v47, %s11219_s1  ;;  %v7222_v52 = vadd.f32 %v13308_v24, %v13817_v48 }
 0x4af   :  { %v10672_v42 = vadd.f32 %v10507_v2, %v13806_v6  ;;  %v7025_v46 = vpop.f32.mrb[27].mxu1  ;;  %v7702_v20 = vmax.f32 %v7638_v33, 0.0 }
 0x4b0   :  { %v7701_v1 = vmax.f32 %v7637_v40, 0.0  ;;  %v10673_v56 = vadd.f32 %v7025_v46, %v13807_v32  ;;  %v13818_v40 = vld [vmem:[#allocation26_spill] sm:$0xff] }
 0x4b1   :  { %7883 = vrot.lane.b32.xlu1 %v7700_v34, %s11219_s1  ;;  %v7640_v62 = vadd.f32 %v10672_v42, %v13139_v54  ;;  %v7227_v2 = vadd.f32 %v13818_v40, %v13308_v24  ;;  %v13819_v34 = vld [vmem:[#allocation29_spill] sm:$0xff] }
 0x4b2   :  { %v7639_v0 = vadd.f32 %v10673_v56, %v13139_v54  ;;  %v10510_v18 = vpop.f32.mrb[28].mxu1  ;;  %7885 = vrot.lane.b32.xlu0 %v7701_v1, %s11219_s1  ;;  %v7232_v33 = vadd.f32 %v13308_v24, %v13819_v34 }
 0x4b3   :  { %v10674_v22 = vadd.f32 %v10510_v18, %v13810_v44  ;;  %v7035_v26 = vpop.f32.mrb[29].mxu1  ;;  %v7776_v19 = vpop.permute.xlu0 %7775  ;;  %v7704_v61 = vmax.f32 %v7640_v62, 0.0  ;;  %v7517_v56 = vmax.f32 %v7227_v2, 0.0  ;;  %v7519_v44 = vmax.f32 %v7237_v58, 0.0  ;;  %v13831_v2 = vld [vmem:[#allocation41_spill] sm:$0xff] }
 0x4b4   :  { %v7703_v51 = vmax.f32 %v7639_v0, 0.0  ;;  %v10675_v9 = vadd.f32 %v7035_v26, %v13811_v41  ;;  %v7967_v27 = vsel %vm7965_vm5, %v7511_v14, %v7776_v19  ;;  %v7518_v14 = vmax.f32 %v7232_v33, 0.0 }
 0x4b5   :  { %8032 = vst.msk [vmem:[#allocation3 + $0x8] sm:$0xff] %vm8030_vm6, %v7967_v27  ;;  %7887 = vrot.lane.b32.xlu1 %v7702_v20, %s11219_s1  ;;  %v7642_v10 = vadd.f32 %v10674_v22, %v13139_v54  ;;  %v13822_v22 = vld [vmem:[#allocation30_spill] sm:$0xff]  ;;  %v7520_v19 = vmax.f32 %v7242_v36, 0.0  ;;  %v7302_v58 = vadd.f32 %v13308_v24, %v13833_v55 }
 0x4b6   :  { %v7641_v5 = vadd.f32 %v10675_v9, %v13139_v54  ;;  %v10513_v38 = vpop.f32.mrb[30].mxu1  ;;  %7889 = vrot.lane.b32.xlu0 %v7703_v51, %s11219_s1  ;;  %v7247_v26 = vadd.f32 %v13822_v22, %v13308_v24  ;;  %v13823_v51 = vld [vmem:[#allocation33_spill] sm:$0xff] }
 0x4b7   :  { %v10676_v13 = vadd.f32 %v10513_v38, %v13814_v53  ;;  %v7045_v25 = vpop.f32.mrb[31].mxu1  ;;  %v7774_v31 = vpop.permute.xlu0 %7773  ;;  %v7706_v60 = vmax.f32 %v7642_v10, 0.0  ;;  %v7252_v41 = vadd.f32 %v13308_v24, %v13823_v51  ;;  %v13835_v22 = vld [vmem:[#allocation45_spill] sm:$0xff] }
 0x4b8   :  { %v7705_v15 = vmax.f32 %v7641_v5, 0.0  ;;  %v10677_v7 = vadd.f32 %v7045_v25, %v13815_v37  ;;  %v7966_v49 = vsel %vm7965_vm5, %v7510_v59, %v7774_v31  ;;  %v7780_v4 = vpop.permute.xlu1 %7779  ;;  %v7521_v39 = vmax.f32 %v7247_v26, 0.0  ;;  %v13826_v31 = vld [vmem:[#allocation35_spill] sm:$0xff] }
 0x4b9   :  { %8031 = vst.msk [vmem:[#allocation3] sm:$0xff] %vm8030_vm6, %v7966_v49  ;;  %v7969_v63 = vsel %vm7965_vm5, %v7513_v57, %v7780_v4  ;;  %7891 = vrot.lane.b32.xlu1 %v7704_v61, %s11219_s1  ;;  %v7644_v29 = vadd.f32 %v10676_v13, %v13139_v54  ;;  %v7257_v5 = vadd.f32 %v13824_v30, %v13308_v24  ;;  %v7522_v38 = vmax.f32 %v7252_v41, 0.0  ;;  %v13837_v30 = vld [vmem:[#allocation47_spill] sm:$0xff] }
 0x4ba   :  { %v7643_v3 = vadd.f32 %v10677_v7, %v13139_v54  ;;  %8034 = vst.msk [vmem:[#allocation3 + $0x18] sm:$0xff] %vm8030_vm6, %v7969_v63  ;;  %7893 = vrot.lane.b32.xlu0 %v7705_v15, %s11219_s1  ;;  %v7516_v54 = vmax.f32 %v7222_v52, 0.0  ;;  %v7267_v15 = vadd.f32 %v13826_v31, %v13308_v24  ;;  %v7524_v37 = vmax.f32 %v7262_v17, 0.0  ;;  %v13827_v7 = vld [vmem:[#allocation37_spill] sm:$0xff]  ;;  %v13829_v52 = vld [vmem:[#allocation39_spill] sm:$0xff] }
 0x4bb   :  { %v7708_v6 = vmax.f32 %v7644_v29, 0.0  ;;  %v7523_v25 = vmax.f32 %v7257_v5, 0.0  ;;  %v7272_v49 = vadd.f32 %v13308_v24, %v13827_v7  ;;  %v7312_v26 = vadd.f32 %v13308_v24, %v13835_v22  ;;  %v13839_v31 = vld [vmem:[#allocation49_spill] sm:$0xff] }
 0x4bc   :  { %v7707_v23 = vmax.f32 %v7643_v3, 0.0  ;;  %v7778_v47 = vpop.permute.xlu1 %7777  ;;  %v7782_v12 = vpop.permute.xlu0 %7781  ;;  %v7525_v45 = vmax.f32 %v7267_v15, 0.0  ;;  %v13828_v3 = vld [vmem:[#allocation36_spill] sm:$0xff]  ;;  %v7322_v5 = vadd.f32 %v13308_v24, %v13837_v30  ;;  %v7332_v15 = vadd.f32 %v13308_v24, %v13839_v31 }
 0x4bd   :  { %v7968_v11 = vsel %vm7965_vm5, %v7512_v21, %v7778_v47  ;;  %v7970_v50 = vsel %vm7965_vm5, %v7514_v16, %v7782_v12  ;;  %7895 = vrot.lane.b32.xlu1 %v7706_v60, %s11219_s1  ;;  %v7277_v16 = vadd.f32 %v13828_v3, %v13308_v24  ;;  %v7526_v48 = vmax.f32 %v7272_v49, 0.0  ;;  %v13841_v3 = vld [vmem:[#allocation51_spill] sm:$0xff] }
 0x4be   :  { %8033 = vst.msk [vmem:[#allocation3 + $0x10] sm:$0xff] %vm8030_vm6, %v7968_v11  ;;  %8035 = vst.msk [vmem:[#allocation3 + $0x20] sm:$0xff] %vm8030_vm6, %v7970_v50  ;;  %7897 = vrot.lane.b32.xlu0 %v7707_v23, %s11219_s1  ;;  %v7282_v60 = vadd.f32 %v13308_v24, %v13829_v52  ;;  %v13830_v50 = vld [vmem:[#allocation38_spill] sm:$0xff] }
 0x4bf   :  { %v7527_v11 = vmax.f32 %v7277_v16, 0.0  ;;  %v7342_v16 = vadd.f32 %v13308_v24, %v13841_v3 }
 0x4c0   :  { %v7784_v42 = vpop.permute.xlu1 %7783  ;;  %v7786_v46 = vpop.permute.xlu0 %7785  ;;  %v7528_v40 = vmax.f32 %v7282_v60, 0.0 }
 0x4c1   :  { %v7971_v1 = vsel %vm7965_vm5, %v7515_v35, %v7784_v42  ;;  %v7972_v32 = vsel %vm7965_vm5, %v7516_v54, %v7786_v46  ;;  %7899 = vrot.lane.b32.xlu1 %v7708_v6, %s11219_s1  ;;  %v7287_v35 = vadd.f32 %v13830_v50, %v13308_v24  ;;  %v7292_v54 = vadd.f32 %v13308_v24, %v13831_v2  ;;  %v13843_v50 = vld [vmem:[#allocation53_spill] sm:$0xff] }
 0x4c2   :  { %8036 = vst.msk [vmem:[#allocation3 + $0x28] sm:$0xff] %vm8030_vm6, %v7971_v1  ;;  %8037 = vst.msk [vmem:[#allocation3 + $0x30] sm:$0xff] %vm8030_vm6, %v7972_v32  ;;  %v13832_v1 = vld [vmem:[#allocation40_spill] sm:$0xff] }
 0x4c3   :  { %v7529_v46 = vmax.f32 %v7287_v35, 0.0  ;;  %v7297_v32 = vadd.f32 %v13832_v1, %v13308_v24  ;;  %v7352_v35 = vadd.f32 %v13308_v24, %v13843_v50  ;;  %v13845_v1 = vld [vmem:[#allocation55_spill] sm:$0xff] }
 0x4c4   :  { %v7788_v0 = vpop.permute.xlu1 %7787  ;;  %v7790_v18 = vpop.permute.xlu0 %7789 }
 0x4c5   :  { %v7973_v20 = vsel %vm7965_vm5, %v7517_v56, %v7788_v0  ;;  %v7974_v62 = vsel %vm7965_vm5, %v7518_v14, %v7790_v18  ;;  %v7530_v56 = vmax.f32 %v7292_v54, 0.0  ;;  %v7531_v18 = vmax.f32 %v7297_v32, 0.0 }
 0x4c6   :  { %8038 = vst.msk [vmem:[#allocation3 + $0x38] sm:$0xff] %vm8030_vm6, %v7973_v20  ;;  %8039 = vst.msk [vmem:[#allocation3 + $0x40] sm:$0xff] %vm8030_vm6, %v7974_v62  ;;  %v13834_v20 = vld [vmem:[#allocation42_spill] sm:$0xff]  ;;  %v7362_v32 = vadd.f32 %v13308_v24, %v13845_v1 }
 0x4c7   :  { %v7307_v62 = vadd.f32 %v13834_v20, %v13308_v24  ;;  %v13847_v20 = vld [vmem:[#allocation57_spill] sm:$0xff] }
 0x4c8   :  { %v7792_v9 = vpop.permute.xlu1 %7791  ;;  %v7794_v27 = vpop.permute.xlu0 %7793 }
 0x4c9   :  { %v7975_v59 = vsel %vm7965_vm5, %v7519_v44, %v7792_v9  ;;  %v7976_v57 = vsel %vm7965_vm5, %v7520_v19, %v7794_v27  ;;  %v7532_v44 = vmax.f32 %v7302_v58, 0.0  ;;  %v7533_v27 = vmax.f32 %v7307_v62, 0.0 }
 0x4ca   :  { %8040 = vst.msk [vmem:[#allocation3 + $0x48] sm:$0xff] %vm8030_vm6, %v7975_v59  ;;  %8041 = vst.msk [vmem:[#allocation3 + $0x50] sm:$0xff] %vm8030_vm6, %v7976_v57  ;;  %v13836_v59 = vld [vmem:[#allocation44_spill] sm:$0xff]  ;;  %v7372_v62 = vadd.f32 %v13308_v24, %v13847_v20 }
 0x4cb   :  { %v7317_v57 = vadd.f32 %v13836_v59, %v13308_v24  ;;  %v13849_v59 = vld [vmem:[#allocation59_spill] sm:$0xff] }
 0x4cc   :  { %v7796_v61 = vpop.permute.xlu1 %7795  ;;  %v7798_v10 = vpop.permute.xlu0 %7797 }
 0x4cd   :  { %v7977_v53 = vsel %vm7965_vm5, %v7521_v39, %v7796_v61  ;;  %v7978_v13 = vsel %vm7965_vm5, %v7522_v38, %v7798_v10  ;;  %v7534_v39 = vmax.f32 %v7312_v26, 0.0  ;;  %v7535_v10 = vmax.f32 %v7317_v57, 0.0 }
 0x4ce   :  { %8042 = vst.msk [vmem:[#allocation3 + $0x58] sm:$0xff] %vm8030_vm6, %v7977_v53  ;;  %8043 = vst.msk [vmem:[#allocation3 + $0x60] sm:$0xff] %vm8030_vm6, %v7978_v13  ;;  %v13838_v53 = vld [vmem:[#allocation46_spill] sm:$0xff]  ;;  %v7382_v57 = vadd.f32 %v13308_v24, %v13849_v59 }
 0x4cf   :  { %v7327_v13 = vadd.f32 %v13838_v53, %v13308_v24  ;;  %v13851_v53 = vld [vmem:[#allocation61_spill] sm:$0xff] }
 0x4d0   :  { %v7800_v4 = vpop.permute.xlu1 %7799  ;;  %v7802_v63 = vpop.permute.xlu0 %7801 }
 0x4d1   :  { %v7979_v21 = vsel %vm7965_vm5, %v7523_v25, %v7800_v4  ;;  %v7980_v43 = vsel %vm7965_vm5, %v7524_v37, %v7802_v63  ;;  %v7536_v25 = vmax.f32 %v7322_v5, 0.0  ;;  %v7537_v63 = vmax.f32 %v7327_v13, 0.0 }
 0x4d2   :  { %8044 = vst.msk [vmem:[#allocation3 + $0x68] sm:$0xff] %vm8030_vm6, %v7979_v21  ;;  %8045 = vst.msk [vmem:[#allocation3 + $0x70] sm:$0xff] %vm8030_vm6, %v7980_v43  ;;  %v13840_v21 = vld [vmem:[#allocation48_spill] sm:$0xff]  ;;  %v7392_v13 = vadd.f32 %v13308_v24, %v13851_v53 }
 0x4d3   :  { %v7337_v43 = vadd.f32 %v13840_v21, %v13308_v24  ;;  %v13853_v21 = vld [vmem:[#allocation63_spill] sm:$0xff] }
 0x4d4   :  { %v7804_v29 = vpop.permute.xlu1 %7803  ;;  %v7806_v23 = vpop.permute.xlu0 %7805 }
 0x4d5   :  { %v7981_v47 = vsel %vm7965_vm5, %v7525_v45, %v7804_v29  ;;  %v7982_v12 = vsel %vm7965_vm5, %v7526_v48, %v7806_v23  ;;  %v7538_v45 = vmax.f32 %v7332_v15, 0.0  ;;  %v7539_v23 = vmax.f32 %v7337_v43, 0.0 }
 0x4d6   :  { %8046 = vst.msk [vmem:[#allocation3 + $0x78] sm:$0xff] %vm8030_vm6, %v7981_v47  ;;  %8047 = vst.msk [vmem:[#allocation3 + $0x80] sm:$0xff] %vm8030_vm6, %v7982_v12  ;;  %v13842_v47 = vld [vmem:[#allocation50_spill] sm:$0xff]  ;;  %v7402_v43 = vadd.f32 %v13308_v24, %v13853_v21 }
 0x4d7   :  { %v7347_v12 = vadd.f32 %v13842_v47, %v13308_v24  ;;  %v13855_v47 = vld [vmem:[#allocation65_spill] sm:$0xff] }
 0x4d8   :  { %v7808_v34 = vpop.permute.xlu1 %7807  ;;  %v7810_v33 = vpop.permute.xlu0 %7809 }
 0x4d9   :  { %v7983_v6 = vsel %vm7965_vm5, %v7527_v11, %v7808_v34  ;;  %v7984_v42 = vsel %vm7965_vm5, %v7528_v40, %v7810_v33  ;;  %v7540_v11 = vmax.f32 %v7342_v16, 0.0  ;;  %v7541_v33 = vmax.f32 %v7347_v12, 0.0 }
 0x4da   :  { %8048 = vst.msk [vmem:[#allocation3 + $0x88] sm:$0xff] %vm8030_vm6, %v7983_v6  ;;  %8049 = vst.msk [vmem:[#allocation3 + $0x90] sm:$0xff] %vm8030_vm6, %v7984_v42  ;;  %v13844_v6 = vld [vmem:[#allocation52_spill] sm:$0xff]  ;;  %v7412_v12 = vadd.f32 %v13308_v24, %v13855_v47 }
 0x4db   :  { %v7357_v42 = vadd.f32 %v13844_v6, %v13308_v24  ;;  %v13857_v6 = vld [vmem:[#allocation67_spill] sm:$0xff] }
 0x4dc   :  { %v7812_v14 = vpop.permute.xlu1 %7811  ;;  %v7814_v28 = vpop.permute.xlu0 %7813 }
 0x4dd   :  { %v7985_v36 = vsel %vm7965_vm5, %v7529_v46, %v7812_v14  ;;  %v7986_v0 = vsel %vm7965_vm5, %v7530_v56, %v7814_v28  ;;  %v7542_v46 = vmax.f32 %v7352_v35, 0.0  ;;  %v7543_v28 = vmax.f32 %v7357_v42, 0.0 }
 0x4de   :  { %8050 = vst.msk [vmem:[#allocation3 + $0x98] sm:$0xff] %vm8030_vm6, %v7985_v36  ;;  %8051 = vst.msk [vmem:[#allocation3 + $0xa0] sm:$0xff] %vm8030_vm6, %v7986_v0  ;;  %v13846_v36 = vld [vmem:[#allocation54_spill] sm:$0xff]  ;;  %v7422_v42 = vadd.f32 %v13308_v24, %v13857_v6 }
 0x4df   :  { %v7367_v0 = vadd.f32 %v13846_v36, %v13308_v24  ;;  %v13859_v36 = vld [vmem:[#allocation69_spill] sm:$0xff] }
 0x4e0   :  { %v7816_v19 = vpop.permute.xlu1 %7815  ;;  %v7818_v51 = vpop.permute.xlu0 %7817 }
 0x4e1   :  { %v7987_v41 = vsel %vm7965_vm5, %v7531_v18, %v7816_v19  ;;  %v7988_v9 = vsel %vm7965_vm5, %v7532_v44, %v7818_v51  ;;  %v7544_v18 = vmax.f32 %v7362_v32, 0.0  ;;  %v7545_v51 = vmax.f32 %v7367_v0, 0.0 }
 0x4e2   :  { %8052 = vst.msk [vmem:[#allocation3 + $0xa8] sm:$0xff] %vm8030_vm6, %v7987_v41  ;;  %8053 = vst.msk [vmem:[#allocation3 + $0xb0] sm:$0xff] %vm8030_vm6, %v7988_v9  ;;  %v13848_v41 = vld [vmem:[#allocation56_spill] sm:$0xff]  ;;  %v7432_v0 = vadd.f32 %v13308_v24, %v13859_v36 }
 0x4e3   :  { %v7377_v9 = vadd.f32 %v13848_v41, %v13308_v24  ;;  %v13861_v41 = vld [vmem:[#allocation71_spill] sm:$0xff] }
 0x4e4   :  { %v7820_v38 = vpop.permute.xlu1 %7819  ;;  %v7822_v8 = vpop.permute.xlu0 %7821 }
 0x4e5   :  { %v7989_v17 = vsel %vm7965_vm5, %v7533_v27, %v7820_v38  ;;  %v7990_v61 = vsel %vm7965_vm5, %v7534_v39, %v7822_v8  ;;  %v7546_v27 = vmax.f32 %v7372_v62, 0.0  ;;  %v7547_v8 = vmax.f32 %v7377_v9, 0.0 }
 0x4e6   :  { %8054 = vst.msk [vmem:[#allocation3 + $0xb8] sm:$0xff] %vm8030_vm6, %v7989_v17  ;;  %8055 = vst.msk [vmem:[#allocation3 + $0xc0] sm:$0xff] %vm8030_vm6, %v7990_v61  ;;  %v13850_v17 = vld [vmem:[#allocation58_spill] sm:$0xff]  ;;  %v7442_v9 = vadd.f32 %v13308_v24, %v13861_v41 }
 0x4e7   :  { %v7387_v61 = vadd.f32 %v13850_v17, %v13308_v24  ;;  %v13863_v17 = vld [vmem:[#allocation73_spill] sm:$0xff] }
 0x4e8   :  { %v7824_v37 = vpop.permute.xlu1 %7823  ;;  %v7826_v7 = vpop.permute.xlu0 %7825 }
 0x4e9   :  { %v7991_v49 = vsel %vm7965_vm5, %v7535_v10, %v7824_v37  ;;  %v7992_v4 = vsel %vm7965_vm5, %v7536_v25, %v7826_v7  ;;  %v7548_v10 = vmax.f32 %v7382_v57, 0.0  ;;  %v7549_v7 = vmax.f32 %v7387_v61, 0.0 }
 0x4ea   :  { %8056 = vst.msk [vmem:[#allocation3 + $0xc8] sm:$0xff] %vm8030_vm6, %v7991_v49  ;;  %8057 = vst.msk [vmem:[#allocation3 + $0xd0] sm:$0xff] %vm8030_vm6, %v7992_v4  ;;  %v13852_v49 = vld [vmem:[#allocation60_spill] sm:$0xff]  ;;  %v7452_v61 = vadd.f32 %v13308_v24, %v13863_v17 }
 0x4eb   :  { %v7397_v4 = vadd.f32 %v13852_v49, %v13308_v24  ;;  %v13865_v49 = vld [vmem:[#allocation75_spill] sm:$0xff] }
 0x4ec   :  { %v7828_v48 = vpop.permute.xlu1 %7827  ;;  %v7830_v52 = vpop.permute.xlu0 %7829 }
 0x4ed   :  { %v7993_v60 = vsel %vm7965_vm5, %v7537_v63, %v7828_v48  ;;  %v7994_v29 = vsel %vm7965_vm5, %v7538_v45, %v7830_v52  ;;  %v7550_v63 = vmax.f32 %v7392_v13, 0.0  ;;  %v7551_v52 = vmax.f32 %v7397_v4, 0.0 }
 0x4ee   :  { %8058 = vst.msk [vmem:[#allocation3 + $0xd8] sm:$0xff] %vm8030_vm6, %v7993_v60  ;;  %8059 = vst.msk [vmem:[#allocation3 + $0xe0] sm:$0xff] %vm8030_vm6, %v7994_v29  ;;  %v13854_v60 = vld [vmem:[#allocation62_spill] sm:$0xff]  ;;  %v7462_v4 = vadd.f32 %v13308_v24, %v13865_v49 }
 0x4ef   :  { %v7407_v29 = vadd.f32 %v13854_v60, %v13308_v24  ;;  %v13867_v60 = vld [vmem:[#allocation77_spill] sm:$0xff] }
 0x4f0   :  { %v7832_v40 = vpop.permute.xlu1 %7831  ;;  %v7834_v2 = vpop.permute.xlu0 %7833 }
 0x4f1   :  { %v7995_v54 = vsel %vm7965_vm5, %v7539_v23, %v7832_v40  ;;  %v7996_v34 = vsel %vm7965_vm5, %v7540_v11, %v7834_v2  ;;  %v7552_v23 = vmax.f32 %v7402_v43, 0.0  ;;  %v7553_v2 = vmax.f32 %v7407_v29, 0.0 }
 0x4f2   :  { %8060 = vst.msk [vmem:[#allocation3 + $0xe8] sm:$0xff] %vm8030_vm6, %v7995_v54  ;;  %8061 = vst.msk [vmem:[#allocation3 + $0xf0] sm:$0xff] %vm8030_vm6, %v7996_v34  ;;  %v13856_v54 = vld [vmem:[#allocation64_spill] sm:$0xff]  ;;  %v7472_v29 = vadd.f32 %v13308_v24, %v13867_v60 }
 0x4f3   :  { %v7417_v34 = vadd.f32 %v13856_v54, %v13308_v24  ;;  %v13869_v54 = vld [vmem:[#allocation79_spill] sm:$0xff] }
 0x4f4   :  { %v7836_v56 = vpop.permute.xlu1 %7835  ;;  %v7838_v55 = vpop.permute.xlu0 %7837 }
 0x4f5   :  { %v7997_v58 = vsel %vm7965_vm5, %v7541_v33, %v7836_v56  ;;  %v7998_v14 = vsel %vm7965_vm5, %v7542_v46, %v7838_v55  ;;  %v7554_v33 = vmax.f32 %v7412_v12, 0.0  ;;  %v7555_v55 = vmax.f32 %v7417_v34, 0.0 }
 0x4f6   :  { %8062 = vst.msk [vmem:[#allocation3 + $0xf8] sm:$0xff] %vm8030_vm6, %v7997_v58  ;;  %8063 = vst.msk [vmem:[#allocation3 + $0x100] sm:$0xff] %vm8030_vm6, %v7998_v14  ;;  %v13858_v58 = vld [vmem:[#allocation66_spill] sm:$0xff]  ;;  %v7482_v34 = vadd.f32 %v13308_v24, %v13869_v54 }
 0x4f7   :  { %v7427_v14 = vadd.f32 %v13858_v58, %v13308_v24  ;;  %v13871_v58 = vld [vmem:[#allocation81_spill] sm:$0xff] }
 0x4f8   :  { %v7840_v44 = vpop.permute.xlu1 %7839  ;;  %v7842_v22 = vpop.permute.xlu0 %7841 }
 0x4f9   :  { %v7999_v26 = vsel %vm7965_vm5, %v7543_v28, %v7840_v44  ;;  %v8000_v19 = vsel %vm7965_vm5, %v7544_v18, %v7842_v22  ;;  %v7556_v28 = vmax.f32 %v7422_v42, 0.0  ;;  %v7557_v22 = vmax.f32 %v7427_v14, 0.0 }
 0x4fa   :  { %8064 = vst.msk [vmem:[#allocation3 + $0x108] sm:$0xff] %vm8030_vm6, %v7999_v26  ;;  %8065 = vst.msk [vmem:[#allocation3 + $0x110] sm:$0xff] %vm8030_vm6, %v8000_v19  ;;  %v13860_v26 = vld [vmem:[#allocation68_spill] sm:$0xff]  ;;  %v7492_v14 = vadd.f32 %v13308_v24, %v13871_v58 }
 0x4fb   :  { %v7437_v19 = vadd.f32 %v13860_v26, %v13308_v24  ;;  %v13873_v26 = vld [vmem:[#allocation83_spill] sm:$0xff] }
 0x4fc   :  { %v7844_v39 = vpop.permute.xlu1 %7843  ;;  %v7846_v30 = vpop.permute.xlu0 %7845 }
 0x4fd   :  { %v8001_v5 = vsel %vm7965_vm5, %v7545_v51, %v7844_v39  ;;  %v8002_v38 = vsel %vm7965_vm5, %v7546_v27, %v7846_v30  ;;  %v7558_v51 = vmax.f32 %v7432_v0, 0.0  ;;  %v7559_v30 = vmax.f32 %v7437_v19, 0.0 }
 0x4fe   :  { %8066 = vst.msk [vmem:[#allocation3 + $0x118] sm:$0xff] %vm8030_vm6, %v8001_v5  ;;  %8067 = vst.msk [vmem:[#allocation3 + $0x120] sm:$0xff] %vm8030_vm6, %v8002_v38  ;;  %v13862_v5 = vld [vmem:[#allocation70_spill] sm:$0xff]  ;;  %v7502_v19 = vadd.f32 %v13308_v24, %v13873_v26 }
 0x4ff   :  { %v7447_v38 = vadd.f32 %v13862_v5, %v13308_v24 }
 0x500   :  { %v7848_v25 = vpop.permute.xlu1 %7847  ;;  %v7850_v31 = vpop.permute.xlu0 %7849 }
 0x501   :  { %v8003_v15 = vsel %vm7965_vm5, %v7547_v8, %v7848_v25  ;;  %v8004_v37 = vsel %vm7965_vm5, %v7548_v10, %v7850_v31  ;;  %v7560_v8 = vmax.f32 %v7442_v9, 0.0  ;;  %v7561_v31 = vmax.f32 %v7447_v38, 0.0 }
 0x502   :  { %8068 = vst.msk [vmem:[#allocation3 + $0x128] sm:$0xff] %vm8030_vm6, %v8003_v15  ;;  %8069 = vst.msk [vmem:[#allocation3 + $0x130] sm:$0xff] %vm8030_vm6, %v8004_v37  ;;  %v13864_v15 = vld [vmem:[#allocation72_spill] sm:$0xff] }
 0x503   :  { %v7457_v37 = vadd.f32 %v13864_v15, %v13308_v24 }
 0x504   :  { %v7852_v45 = vpop.permute.xlu1 %7851  ;;  %v7854_v3 = vpop.permute.xlu0 %7853 }
 0x505   :  { %v8005_v16 = vsel %vm7965_vm5, %v7549_v7, %v7852_v45  ;;  %v8006_v48 = vsel %vm7965_vm5, %v7550_v63, %v7854_v3  ;;  %v7562_v7 = vmax.f32 %v7452_v61, 0.0  ;;  %v7563_v3 = vmax.f32 %v7457_v37, 0.0 }
 0x506   :  { %8070 = vst.msk [vmem:[#allocation3 + $0x138] sm:$0xff] %vm8030_vm6, %v8005_v16  ;;  %8071 = vst.msk [vmem:[#allocation3 + $0x140] sm:$0xff] %vm8030_vm6, %v8006_v48  ;;  %v13866_v16 = vld [vmem:[#allocation74_spill] sm:$0xff] }
 0x507   :  { %v7467_v48 = vadd.f32 %v13866_v16, %v13308_v24 }
 0x508   :  { %v7856_v11 = vpop.permute.xlu1 %7855  ;;  %v7858_v50 = vpop.permute.xlu0 %7857 }
 0x509   :  { %v8007_v35 = vsel %vm7965_vm5, %v7551_v52, %v7856_v11  ;;  %v8008_v40 = vsel %vm7965_vm5, %v7552_v23, %v7858_v50  ;;  %v7564_v52 = vmax.f32 %v7462_v4, 0.0  ;;  %v7565_v50 = vmax.f32 %v7467_v48, 0.0 }
 0x50a   :  { %8072 = vst.msk [vmem:[#allocation3 + $0x148] sm:$0xff] %vm8030_vm6, %v8007_v35  ;;  %8073 = vst.msk [vmem:[#allocation3 + $0x150] sm:$0xff] %vm8030_vm6, %v8008_v40  ;;  %v13868_v35 = vld [vmem:[#allocation76_spill] sm:$0xff] }
 0x50b   :  { %v7477_v40 = vadd.f32 %v13868_v35, %v13308_v24 }
 0x50c   :  { %v7860_v46 = vpop.permute.xlu1 %7859  ;;  %v7862_v1 = vpop.permute.xlu0 %7861 }
 0x50d   :  { %v8009_v32 = vsel %vm7965_vm5, %v7553_v2, %v7860_v46  ;;  %v8010_v56 = vsel %vm7965_vm5, %v7554_v33, %v7862_v1  ;;  %v7566_v2 = vmax.f32 %v7472_v29, 0.0  ;;  %v7567_v1 = vmax.f32 %v7477_v40, 0.0 }
 0x50e   :  { %8074 = vst.msk [vmem:[#allocation3 + $0x158] sm:$0xff] %vm8030_vm6, %v8009_v32  ;;  %8075 = vst.msk [vmem:[#allocation3 + $0x160] sm:$0xff] %vm8030_vm6, %v8010_v56  ;;  %v13870_v32 = vld [vmem:[#allocation78_spill] sm:$0xff] }
 0x50f   :  { %v7487_v56 = vadd.f32 %v13870_v32, %v13308_v24 }
 0x510   :  { %v7864_v18 = vpop.permute.xlu1 %7863  ;;  %v7866_v20 = vpop.permute.xlu0 %7865 }
 0x511   :  { %v8011_v62 = vsel %vm7965_vm5, %v7555_v55, %v7864_v18  ;;  %v8012_v44 = vsel %vm7965_vm5, %v7556_v28, %v7866_v20  ;;  %v7568_v55 = vmax.f32 %v7482_v34, 0.0  ;;  %v7569_v20 = vmax.f32 %v7487_v56, 0.0 }
 0x512   :  { %8076 = vst.msk [vmem:[#allocation3 + $0x168] sm:$0xff] %vm8030_vm6, %v8011_v62  ;;  %8077 = vst.msk [vmem:[#allocation3 + $0x170] sm:$0xff] %vm8030_vm6, %v8012_v44  ;;  %v13872_v62 = vld [vmem:[#allocation80_spill] sm:$0xff] }
 0x513   :  { %v7497_v44 = vadd.f32 %v13872_v62, %v13308_v24 }
 0x514   :  { %v7868_v27 = vpop.permute.xlu1 %7867  ;;  %v7870_v59 = vpop.permute.xlu0 %7869 }
 0x515   :  { %v8013_v57 = vsel %vm7965_vm5, %v7557_v22, %v7868_v27  ;;  %v8014_v39 = vsel %vm7965_vm5, %v7558_v51, %v7870_v59  ;;  %v7570_v22 = vmax.f32 %v7492_v14, 0.0  ;;  %v7571_v59 = vmax.f32 %v7497_v44, 0.0 }
 0x516   :  { %8078 = vst.msk [vmem:[#allocation3 + $0x178] sm:$0xff] %vm8030_vm6, %v8013_v57  ;;  %8079 = vst.msk [vmem:[#allocation3 + $0x180] sm:$0xff] %vm8030_vm6, %v8014_v39  ;;  %v13874_v57 = vld [vmem:[#allocation82_spill] sm:$0xff] }
 0x517   :  { %v7507_v39 = vadd.f32 %v13874_v57, %v13308_v24 }
 0x518   :  { %v7872_v10 = vpop.permute.xlu1 %7871  ;;  %v7874_v53 = vpop.permute.xlu0 %7873 }
 0x519   :  { %v8015_v13 = vsel %vm7965_vm5, %v7559_v30, %v7872_v10  ;;  %v8016_v25 = vsel %vm7965_vm5, %v7560_v8, %v7874_v53  ;;  %v7572_v30 = vmax.f32 %v7502_v19, 0.0  ;;  %v7573_v61 = vmax.f32 %v7507_v39, 0.0 }
 0x51a   :  { %8080 = vst.msk [vmem:[#allocation3 + $0x188] sm:$0xff] %vm8030_vm6, %v8015_v13  ;;  %8081 = vst.msk [vmem:[#allocation3 + $0x190] sm:$0xff] %vm8030_vm6, %v8016_v25 }
 0x51c   :  { %v7876_v63 = vpop.permute.xlu1 %7875  ;;  %v7878_v21 = vpop.permute.xlu0 %7877 }
 0x51d   :  { %v8017_v43 = vsel %vm7965_vm5, %v7561_v31, %v7876_v63  ;;  %v8018_v45 = vsel %vm7965_vm5, %v7562_v7, %v7878_v21 }
 0x51e   :  { %8082 = vst.msk [vmem:[#allocation3 + $0x198] sm:$0xff] %vm8030_vm6, %v8017_v43  ;;  %8083 = vst.msk [vmem:[#allocation3 + $0x1a0] sm:$0xff] %vm8030_vm6, %v8018_v45 }
 0x520   :  { %v7880_v23 = vpop.permute.xlu1 %7879  ;;  %v7882_v47 = vpop.permute.xlu0 %7881 }
 0x521   :  { %v8019_v12 = vsel %vm7965_vm5, %v7563_v3, %v7880_v23  ;;  %v8020_v11 = vsel %vm7965_vm5, %v7564_v52, %v7882_v47 }
 0x522   :  { %8084 = vst.msk [vmem:[#allocation3 + $0x1a8] sm:$0xff] %vm8030_vm6, %v8019_v12  ;;  %8085 = vst.msk [vmem:[#allocation3 + $0x1b0] sm:$0xff] %vm8030_vm6, %v8020_v11 }
 0x524   :  { %v7884_v33 = vpop.permute.xlu1 %7883  ;;  %v7886_v6 = vpop.permute.xlu0 %7885 }
 0x525   :  { %v8021_v42 = vsel %vm7965_vm5, %v7565_v50, %v7884_v33  ;;  %v8022_v46 = vsel %vm7965_vm5, %v7566_v2, %v7886_v6 }
 0x526   :  { %8086 = vst.msk [vmem:[#allocation3 + $0x1b8] sm:$0xff] %vm8030_vm6, %v8021_v42  ;;  %8087 = vst.msk [vmem:[#allocation3 + $0x1c0] sm:$0xff] %vm8030_vm6, %v8022_v46 }
 0x528   :  { %v7888_v28 = vpop.permute.xlu1 %7887  ;;  %v7890_v36 = vpop.permute.xlu0 %7889 }
 0x529   :  { %v8023_v0 = vsel %vm7965_vm5, %v7567_v1, %v7888_v28  ;;  %v8024_v18 = vsel %vm7965_vm5, %v7568_v55, %v7890_v36 }
 0x52a   :  { %8088 = vst.msk [vmem:[#allocation3 + $0x1c8] sm:$0xff] %vm8030_vm6, %v8023_v0  ;;  %8089 = vst.msk [vmem:[#allocation3 + $0x1d0] sm:$0xff] %vm8030_vm6, %v8024_v18 }
 0x52c   :  { %v7892_v51 = vpop.permute.xlu1 %7891  ;;  %v7894_v41 = vpop.permute.xlu0 %7893 }
 0x52d   :  { %v8025_v9 = vsel %vm7965_vm5, %v7569_v20, %v7892_v51  ;;  %v8026_v27 = vsel %vm7965_vm5, %v7570_v22, %v7894_v41 }
 0x52e   :  { %8090 = vst.msk [vmem:[#allocation3 + $0x1d8] sm:$0xff] %vm8030_vm6, %v8025_v9  ;;  %8091 = vst.msk [vmem:[#allocation3 + $0x1e0] sm:$0xff] %vm8030_vm6, %v8026_v27 }
 0x530   :  { %v7896_v5 = vpop.permute.xlu1 %7895  ;;  %v7898_v38 = vpop.permute.xlu0 %7897 }
 0x531   :  { %v8027_v8 = vsel %vm7965_vm5, %v7571_v59, %v7896_v5  ;;  %v8028_v17 = vsel %vm7965_vm5, %v7572_v30, %v7898_v38 }
 0x532   :  { %8092 = vst.msk [vmem:[#allocation3 + $0x1e8] sm:$0xff] %vm8030_vm6, %v8027_v8  ;;  %8093 = vst.msk [vmem:[#allocation3 + $0x1f0] sm:$0xff] %vm8030_vm6, %v8028_v17 }
 0x534   :  { %v7900_v10 = vpop.permute.xlu1 %7899 }
 0x535   :  { %v8029_v53 = vsel %vm7965_vm5, %v7573_v61, %v7900_v10 }
 0x536   :  { %8094 = vst.msk [vmem:[#allocation3 + $0x1f8] sm:$0xff] %vm8030_vm6, %v8029_v53 }
 0x537   :  { %11205 = shalt.err (!%p11202_p4)
}
 0x538   :  { %s11206_s14 = scalar_lea.hbm %s13613_s7, 8192 }
 0x539   :  { %p11207_p5 = scmp.ne.s32.totalorder %s13613_s7, %s11206_s14  ;;  %p11210_p6 = scmp.lt.u32.totalorder %s11206_s14, %s13613_s7 }
 0x53b   :  { %p11212_p7 = pnand %p11210_p6, %p11207_p5 }
 0x53d   :  { %11215 = shalt.err (!%p11212_p7)
}
 0x53e   :  { %s11221_s17 = smov 128   ;;  %s11222_s18 = smov 8  }
 0x53f   :  { %8106 = dma.vmem_to_hbm [thread:$0]  %s8101_s10, 8192, %s13613_s7, [#allocation4], %s11221_s17, %s11221_s17, %s11222_s18  }
 0x540   :  { %11216 = dma.done.wait [#allocation4], 8192  }
 0x541   :  { %11217 = vsyncadd [#allocation4], 4294959104 }
 0x542   :  { %8110 = vsyncpa [#allocation4], 1 }

</bundles_post_ra>
